<compile_context>
chip_gen: v7x
topology: tpu7x:2x2x1
jax: 0.10.0
libtpu: 0.0.40
codegen_flags: <defaults>
</compile_context>

<pallas_src>
import jax
import jax.numpy as jnp
import numpy as np
from jax.experimental import pallas as pl
from jax.experimental.pallas import tpu as pltpu

C_IN, C_OUT, FC_OUT = 64, 128, 4
KH = KW = 3
STRIDE = 2
FC_PAD = 128               # lane-dense padded FC output width
NEG_SLOPE = 0.01           # PyTorch LeakyReLU default


# ----------------------------- Pallas kernel --------------------------------
def attention_kernel(x_ref, we_ref, bc_ref, wf_ref, bf_ref, out_ref):
    # x_ref:   (tile_n, C*H*W)   bf16  flattened NCHW input rows
    # we_ref:  (C*H*W, C_OUT)    bf16  conv weight with 3x3/stride-2 gather + GAP folded in
    # bc_ref:  (1, C_OUT)        f32   conv bias (commutes with the mean)
    # wf_ref:  (C_OUT, FC_PAD)   bf16  fc weight, zero-padded past column 4
    # bf_ref:  (1, FC_PAD)       f32   fc bias,   zero-padded past column 4
    # out_ref: (tile_n, FC_PAD)  f32
    conv = jnp.dot(x_ref[...], we_ref[...],
                   preferred_element_type=jnp.float32) + bc_ref[...]     # (tile_n, 128) f32
    act = jnp.where(conv >= 0, conv, NEG_SLOPE * conv)                   # LeakyReLU(0.01)
    out_ref[...] = jnp.dot(act.astype(jnp.bfloat16), wf_ref[...],
                           preferred_element_type=jnp.float32) + bf_ref[...]


# ------------------------------- wrapper -------------------------------------
def _build_eff_conv_weight(w_conv, H, W):
    """Fold the 3x3 / stride-2 VALID gather and the global-average-pool into the conv weight.

    Returns (C_IN*H*W, C_OUT) f32 with index ci*H*W + r*W + c matching x.reshape(N, -1)."""
    Ho = (H - KH) // STRIDE + 1
    Wo = (W - KW) // STRIDE + 1
    P = Ho * Wo
    rows = np.zeros((KH, H), np.float32)
    for i in range(KH):
        rows[i, i:i + STRIDE * Ho:STRIDE] = 1.0
    cols = np.zeros((KW, W), np.float32)
    for j in range(KW):
        cols[j, j:j + STRIDE * Wo:STRIDE] = 1.0
    cover = jnp.asarray(np.einsum("ir,jc->ijrc", rows, cols))            # (KH, KW, H, W)
    w_eff = jnp.einsum("oiyx,yxrc->irco", w_conv.astype(jnp.float32), cover) / float(P)
    return w_eff.reshape(C_IN * H * W, C_OUT)


def _pick_tile_n(N):
    # Aim for >= 4 grid steps when N allows (pipeline depth + dual-TC sharding on v7x),
    # cap at 64 rows, floor at 16 (bf16 sublane packing).
    target = -(-N // 4)                      # cdiv(N, 4)
    tile = ((target + 15) // 16) * 16        # round up to multiple of 16
    return max(16, min(64, tile))


def attention_forward(x, w_conv, b_conv, w_fc, b_fc):
    """x: (N, 64, H, W) NCHW float32, like the PyTorch module. Returns (N, 4) f32."""
    N, C, H, W = x.shape
    assert C == C_IN
    CHW = C_IN * H * W

    # Lane-dense flat view of x (contiguous reshape is free); single bf16 cast pass.
    xr = x.reshape(N, CHW).astype(jnp.bfloat16)

    tile_n = _pick_tile_n(N)
    n_pad = pl.cdiv(N, tile_n) * tile_n
    if n_pad != N:
        xr = jnp.pad(xr, ((0, n_pad - N), (0, 0)))

    we = _build_eff_conv_weight(w_conv, H, W).astype(jnp.bfloat16)        # (CHW, 128)
    bc = b_conv.reshape(1, C_OUT).astype(jnp.float32)                     # (1, 128)
    wf = jnp.zeros((C_OUT, FC_PAD), jnp.bfloat16).at[:, :FC_OUT].set(
        w_fc.T.astype(jnp.bfloat16))                                      # (128, 128), cols>=4 zero
    bf = jnp.zeros((1, FC_PAD), jnp.float32).at[:, :FC_OUT].set(
        b_fc.astype(jnp.float32))                                         # (1, 128),   cols>=4 zero

    # Explicit VMEM budget: double-buffered x blocks + (worst-case double-buffered) resident
    # weights + output blocks + 4 MiB slack. ~12.5 MiB at tile_n=64 -> fits every generation.
    vmem_limit = int(2 * tile_n * CHW * 2          # x blocks, bf16, double-buffered
                     + 2 * CHW * C_OUT * 2         # W_eff, bf16
                     + 4 * tile_n * FC_PAD * 4     # output blocks, f32
                     + (4 << 20))                  # small operands + internal slack

    out = pl.pallas_call(
        attention_kernel,
        out_shape=jax.ShapeDtypeStruct((n_pad, FC_PAD), jnp.float32),
        grid=(n_pad // tile_n,),
        in_specs=[
            pl.BlockSpec((tile_n, CHW), lambda i: (i, 0)),     # x: tiled over batch
            pl.BlockSpec((CHW, C_OUT), lambda i: (0, 0)),      # weights stay VMEM-resident
            pl.BlockSpec((1, C_OUT), lambda i: (0, 0)),
            pl.BlockSpec((C_OUT, FC_PAD), lambda i: (0, 0)),
            pl.BlockSpec((1, FC_PAD), lambda i: (0, 0)),
        ],
        out_specs=pl.BlockSpec((tile_n, FC_PAD), lambda i: (i, 0)),
        compiler_params=pltpu.CompilerParams(
            dimension_semantics=("parallel",),                 # megacore sharding on v7x
            vmem_limit_bytes=vmem_limit),
    )(xr, we, bc, wf, bf)
    return out[:N, :FC_OUT]


# ------------------------------ reference ------------------------------------
def reference_forward(x, w_conv, b_conv, w_fc, b_fc):
    y = jax.lax.conv_general_dilated(
        x, w_conv, window_strides=(STRIDE, STRIDE), padding="VALID",
        dimension_numbers=("NCHW", "OIHW", "NCHW"))
    y = y + b_conv[None, :, None, None]
    y = jnp.mean(y, axis=(2, 3))                            # GAP -> (N, 128)
    y = jnp.where(y >= 0, y, NEG_SLOPE * y)                 # LeakyReLU(0.01)
    return y @ w_fc.T + b_fc


# --------------------------------- main ---------------------------------------
if __name__ == "__main__":
    key = jax.random.PRNGKey(0)
    k_x, k_wc, k_bc, k_wf, k_bf = jax.random.split(key, 5)

    N, H, W = 2, 16, 16                 # channels fixed by the module: Conv2d(64, 128, 3, 2)

    x = jax.random.normal(k_x, (N, C_IN, H, W), dtype=jnp.float32)

    # Deterministic synthetic parameter init (PyTorch-like uniform fan-in scale).
    fan_in_conv = C_IN * KH * KW
    w_conv = jax.random.uniform(k_wc, (C_OUT, C_IN, KH, KW), jnp.float32,
                                -1.0 / np.sqrt(fan_in_conv), 1.0 / np.sqrt(fan_in_conv))
    b_conv = jax.random.uniform(k_bc, (C_OUT,), jnp.float32,
                                -1.0 / np.sqrt(fan_in_conv), 1.0 / np.sqrt(fan_in_conv))
    w_fc = jax.random.uniform(k_wf, (FC_OUT, C_OUT), jnp.float32,
                              -1.0 / np.sqrt(C_OUT), 1.0 / np.sqrt(C_OUT))
    b_fc = jax.random.uniform(k_bf, (FC_OUT,), jnp.float32,
                              -1.0 / np.sqrt(C_OUT), 1.0 / np.sqrt(C_OUT))

    out = jax.block_until_ready(attention_forward(x, w_conv, b_conv, w_fc, b_fc))
    ref = jax.block_until_ready(reference_forward(x, w_conv, b_conv, w_fc, b_fc))

    # Tolerance accounts for bf16 MXU operands (f32 accumulation) vs. the f32 reference.
    np.testing.assert_allclose(np.asarray(out), np.asarray(ref), rtol=5e-2, atol=5e-3)

    print("KERNEL_OK")
</pallas_src>

<mosaic_0001>
module attributes {stable_mosaic.version = 11 : i64} {
  func.func @attention_kernel(%arg0: i32, %arg1: memref<16x16384xbf16, #tpu.memory_space<vmem>>, %arg2: memref<16384x128xbf16, #tpu.memory_space<vmem>>, %arg3: memref<1x128xf32, #tpu.memory_space<vmem>>, %arg4: memref<128x128xbf16, #tpu.memory_space<vmem>>, %arg5: memref<1x128xf32, #tpu.memory_space<vmem>>, %arg6: memref<16x128xf32, #tpu.memory_space<vmem>>) attributes {dimension_semantics = [#tpu.dimension_semantics<parallel>], iteration_bounds = array<i64: 1>, scalar_prefetch = 0 : i64, scratch_operands = 0 : i64, tpu.core_type = #tpu.core_type<tc>, window_params = [{transform_indices = @transform_0, window_bounds = array<i64: 16, 16384>}, {pipeline_mode = #tpu.pipeline_mode<synchronous>, transform_indices = @transform_1, window_bounds = array<i64: 16384, 128>}, {pipeline_mode = #tpu.pipeline_mode<synchronous>, transform_indices = @transform_2, window_bounds = array<i64: 1, 128>}, {pipeline_mode = #tpu.pipeline_mode<synchronous>, transform_indices = @transform_3, window_bounds = array<i64: 128, 128>}, {pipeline_mode = #tpu.pipeline_mode<synchronous>, transform_indices = @transform_4, window_bounds = array<i64: 1, 128>}, {transform_indices = @transform_5, window_bounds = array<i64: 16, 128>}]} {
    %c0 = arith.constant 0 : index
    %c0_0 = arith.constant 0 : index
    %0 = vector.load %arg1[%c0, %c0_0] : memref<16x16384xbf16, #tpu.memory_space<vmem>>, vector<16x16384xbf16>
    %c0_1 = arith.constant 0 : index
    %c0_2 = arith.constant 0 : index
    %1 = vector.load %arg2[%c0_1, %c0_2] : memref<16384x128xbf16, #tpu.memory_space<vmem>>, vector<16384x128xbf16>
    %cst = arith.constant dense<0.000000e+00> : vector<16x128xf32>
    %2 = tpu.matmul %0, %1, %cst {dimension_numbers = #tpu.dot_dimension_numbers<[1], [0], [0], [1], [0, 0, 1, 1], [], []>} : vector<16x16384xbf16>, vector<16384x128xbf16>, vector<16x128xf32> -> vector<16x128xf32>
    %c0_3 = arith.constant 0 : index
    %c0_4 = arith.constant 0 : index
    %3 = vector.load %arg3[%c0_3, %c0_4] : memref<1x128xf32, #tpu.memory_space<vmem>>, vector<1x128xf32>
    %4 = vector.broadcast %3 : vector<1x128xf32> to vector<16x128xf32>
    %5 = arith.addf %2, %4 : vector<16x128xf32>
    %cst_5 = arith.constant 0.000000e+00 : f32
    %6 = vector.broadcast %cst_5 : f32 to vector<16x128xf32>
    %7 = arith.cmpf oge, %5, %6 : vector<16x128xf32>
    %cst_6 = arith.constant 0.00999999977 : f32
    %8 = vector.broadcast %cst_6 : f32 to vector<16x128xf32>
    %9 = arith.mulf %8, %5 : vector<16x128xf32>
    %10 = arith.select %7, %5, %9 : vector<16x128xi1>, vector<16x128xf32>
    %11 = arith.truncf %10 : vector<16x128xf32> to vector<16x128xbf16>
    %c0_7 = arith.constant 0 : index
    %c0_8 = arith.constant 0 : index
    %12 = vector.load %arg4[%c0_7, %c0_8] : memref<128x128xbf16, #tpu.memory_space<vmem>>, vector<128x128xbf16>
    %cst_9 = arith.constant dense<0.000000e+00> : vector<16x128xf32>
    %13 = tpu.matmul %11, %12, %cst_9 {dimension_numbers = #tpu.dot_dimension_numbers<[1], [0], [0], [1], [0, 0, 1, 1], [], []>} : vector<16x128xbf16>, vector<128x128xbf16>, vector<16x128xf32> -> vector<16x128xf32>
    %c0_10 = arith.constant 0 : index
    %c0_11 = arith.constant 0 : index
    %14 = vector.load %arg5[%c0_10, %c0_11] : memref<1x128xf32, #tpu.memory_space<vmem>>, vector<1x128xf32>
    %15 = vector.broadcast %14 : vector<1x128xf32> to vector<16x128xf32>
    %16 = arith.addf %13, %15 : vector<16x128xf32>
    %c0_12 = arith.constant 0 : index
    %c0_13 = arith.constant 0 : index
    %17 = vector.load %arg6[%c0_12, %c0_13] : memref<16x128xf32, #tpu.memory_space<vmem>>, vector<16x128xf32>
    tpu.vector_store %arg6[%c0_12, %c0_13], %16 {strides = array<i32>} : memref<16x128xf32, #tpu.memory_space<vmem>>, vector<16x128xf32>,
    return
  }
  func.func @transform_0(%arg0: i32) -> (i32, i32) {
    %c0_i32 = arith.constant 0 : i32
    %c0_i32_0 = arith.constant 0 : i32
    return %arg0, %c0_i32 : i32, i32
  }
  func.func @transform_1(%arg0: i32) -> (i32, i32) {
    %c0_i32 = arith.constant 0 : i32
    %c0_i32_0 = arith.constant 0 : i32
    %c0_i32_1 = arith.constant 0 : i32
    return %c0_i32, %c0_i32_0 : i32, i32
  }
  func.func @transform_2(%arg0: i32) -> (i32, i32) {
    %c0_i32 = arith.constant 0 : i32
    %c0_i32_0 = arith.constant 0 : i32
    %c0_i32_1 = arith.constant 0 : i32
    return %c0_i32, %c0_i32_0 : i32, i32
  }
  func.func @transform_3(%arg0: i32) -> (i32, i32) {
    %c0_i32 = arith.constant 0 : i32
    %c0_i32_0 = arith.constant 0 : i32
    %c0_i32_1 = arith.constant 0 : i32
    return %c0_i32, %c0_i32_0 : i32, i32
  }
  func.func @transform_4(%arg0: i32) -> (i32, i32) {
    %c0_i32 = arith.constant 0 : i32
    %c0_i32_0 = arith.constant 0 : i32
    %c0_i32_1 = arith.constant 0 : i32
    return %c0_i32, %c0_i32_0 : i32, i32
  }
  func.func @transform_5(%arg0: i32) -> (i32, i32) {
    %c0_i32 = arith.constant 0 : i32
    %c0_i32_0 = arith.constant 0 : i32
    return %arg0, %c0_i32 : i32, i32
  }
}

</mosaic_0001>

<bundles_post_ra>
// kernel: tpu_custom_call.1
= control target key start
LH: loop header
LB: loop body
LE: loop exit
PB: predicated region body
PF: predicated region fallthrough
CT: control target
= control target key end

     0   :  { %10 = vsyncpa [#allocation3], 0  ;;  %s15862_s0 = inlined_call_operand.hbm [shape: bf16[16,16384], index: 0, kind: input, shape index: {}]   ;;  %s15863_s1 = inlined_call_operand.hbm [shape: bf16[16384,128], index: 1, kind: input, shape index: {}]   ;;  %s15864_s2 = inlined_call_operand.hbm [shape: f32[1,128], index: 2, kind: input, shape index: {}]   ;;  %s15865_s3 = inlined_call_operand.hbm [shape: bf16[128,128], index: 3, kind: input, shape index: {}]   ;;  %s15866_s4 = inlined_call_operand.hbm [shape: f32[1,128], index: 4, kind: input, shape index: {}]   ;;  %s15867_s5 = inlined_call_operand.hbm [shape: f32[16,128], index: 5, kind: output, shape index: {}]  }
   0x1   :  { %11 = vsyncpa [#allocation6], 0 }
   0x2   :  { %12 = vsyncpa [#allocation9], 0 }
   0x3   :  { %13 = vsyncpa [#allocation4], 0  ;;  %s15602_s18 = smov [#allocation5]   ;;  %s15462_s22 = scalar_lea.hbm %s15863_s1, 131072 }
   0x4   :  { %s31_s19 = sshll.u32 %s15602_s18, 4  ;;  %p15463_p0 = scmp.ne.s32.totalorder %s15863_s1, %s15462_s22  ;;  %s32_s19 = int_to_ptr.vmem [resolvable:$true] %s31_s19 }
   0x5   :  { %p15466_p1 = scmp.lt.u32.totalorder %s15462_s22, %s15863_s1 }
   0x7   :  { %p15468_p2 = pnand %p15466_p1, %p15463_p0 }
   0x9   :  { %15471 = shalt.err (!%p15468_p2)
}
   0xa   :  { %s15472_s27 = scalar_lea.vmem %s32_s19, 131072  ;;  %p15477_p4 = scmp.lt.s32.totalorder %s32_s19, %s32_s19 }
   0xb   :  { %p15473_p3 = scmp.ne.s32.totalorder %s32_s19, %s15472_s27  ;;  %p15478_p5 = scmp.lt.s32.totalorder %s15472_s27, %s15472_s27 }
   0xd   :  { %p15479_p6 = por %p15478_p5, %p15477_p4 }
   0xf   :  { %p15480_p7 = pnand %p15479_p6, %p15473_p3 }
  0x11   :  { %15483 = shalt.err (!%p15480_p7)
}
  0x12   :  { %s15603_s28 = smov 64   ;;  %s15604_s29 = smov 4  }
  0x13   :  { %37 = dma.hbm_to_vmem [thread:$0]  %s15863_s1, 131072, %s32_s19, [#allocation6], %s15603_s28, %s15603_s28, %s15604_s29  }
  0x14   :  { %s15605_s7 = smov [#allocation8]   ;;  %s15606_s9 = smov [#allocation2]  }
  0x15   :  { %s53_s8 = sshll.u32 %s15605_s7, 4  ;;  %s19_s10 = sshll.u32 %s15606_s9, 4  ;;  %s54_s8 = int_to_ptr.vmem [resolvable:$true] %s53_s8  ;;  %s20_s10 = int_to_ptr.vmem [resolvable:$true] %s19_s10 }
  0x16   :  { %s15484_s13 = scalar_lea.hbm %s15865_s3, 1024 }
  0x17   :  { %p15485_p8 = scmp.ne.s32.totalorder %s15865_s3, %s15484_s13  ;;  %p15488_p9 = scmp.lt.u32.totalorder %s15484_s13, %s15865_s3 }
  0x19   :  { %p15490_p10 = pnand %p15488_p9, %p15485_p8 }
  0x1b   :  { %15493 = shalt.err (!%p15490_p10)
}
  0x1c   :  { %s15494_s1 = scalar_lea.vmem %s54_s8, 1024  ;;  %p15499_p12 = scmp.lt.s32.totalorder %s54_s8, %s54_s8 }
  0x1d   :  { %p15495_p11 = scmp.ne.s32.totalorder %s54_s8, %s15494_s1  ;;  %p15500_p13 = scmp.lt.s32.totalorder %s15494_s1, %s15494_s1 }
  0x1f   :  { %p15501_p0 = por %p15500_p13, %p15499_p12 }
  0x21   :  { %p15502_p1 = pnand %p15501_p0, %p15495_p11 }
  0x23   :  { %15505 = shalt.err (!%p15502_p1)
}
  0x24   :  { %59 = dma.hbm_to_vmem [thread:$0]  %s15865_s3, 1024, %s54_s8, [#allocation9], %s15603_s28, %s15603_s28, %s15604_s29  }
  0x25   :  { %s15506_s22 = scalar_lea.hbm %s15862_s0, 16384 }
  0x26   :  { %p15507_p2 = scmp.ne.s32.totalorder %s15862_s0, %s15506_s22  ;;  %p15510_p3 = scmp.lt.u32.totalorder %s15506_s22, %s15862_s0 }
  0x28   :  { %p15512_p4 = pnand %p15510_p3, %p15507_p2 }
  0x2a   :  { %15515 = shalt.err (!%p15512_p4)
}
  0x2b   :  { %s15516_s27 = scalar_lea.vmem %s20_s10, 16384  ;;  %p15521_p6 = scmp.lt.s32.totalorder %s20_s10, %s20_s10 }
  0x2c   :  { %p15517_p5 = scmp.ne.s32.totalorder %s20_s10, %s15516_s27  ;;  %p15522_p7 = scmp.lt.s32.totalorder %s15516_s27, %s15516_s27 }
  0x2e   :  { %p15523_p8 = por %p15522_p7, %p15521_p6 }
  0x30   :  { %p15524_p9 = pnand %p15523_p8, %p15517_p5 }
  0x32   :  { %15527 = shalt.err (!%p15524_p9)
}
  0x33   :  { %s15607_s3 = smov 8192   ;;  %s15608_s28 = smov 512  }
  0x34   :  { %25 = dma.hbm_to_vmem [thread:$0]  %s15862_s0, 16384, %s20_s10, [#allocation3], %s15607_s3, %s15607_s3, %s15608_s28  }
  0x35   :  { %s15609_s6 = smov [#allocation7]   ;;  %s15610_s8 = smov [#allocation10]  }
  0x36   :  { %s44_s7 = sshll.u32 %s15609_s6, 4  ;;  %s66_s9 = sshll.u32 %s15610_s8, 4  ;;  %s45_s7 = int_to_ptr.vmem [resolvable:$true] %s44_s7  ;;  %s67_s9 = int_to_ptr.vmem [resolvable:$true] %s66_s9 }
  0x37   :  { %s15528_s13 = scalar_lea.hbm %s15864_s2, 16 }
  0x38   :  { %p15529_p10 = scmp.ne.s32.totalorder %s15864_s2, %s15528_s13  ;;  %p15532_p11 = scmp.lt.u32.totalorder %s15528_s13, %s15864_s2 }
  0x3a   :  { %p15534_p12 = pnand %p15532_p11, %p15529_p10 }
  0x3c   :  { %15537 = shalt.err (!%p15534_p12)
}
  0x3d   :  { %s15538_s0 = scalar_lea.vmem %s45_s7, 16  ;;  %s15542_s10 = scalar_lea.vmem %s45_s7, 32 }
  0x3e   :  { %p15539_p13 = scmp.ne.s32.totalorder %s45_s7, %s15538_s0  ;;  %p15543_p0 = scmp.lt.s32.totalorder %s45_s7, %s45_s7 }
  0x3f   :  { %p15544_p1 = scmp.lt.s32.totalorder %s15542_s10, %s15538_s0 }
  0x41   :  { %p15545_p2 = por %p15544_p1, %p15543_p0 }
  0x43   :  { %p15546_p3 = pnand %p15545_p2, %p15539_p13 }
  0x45   :  { %15549 = shalt.err (!%p15546_p3)
}
  0x46   :  { %47 = dma.hbm_to_vmem [thread:$0]  %s15864_s2, 16, %s45_s7, [#allocation6]  }
  0x47   :  { %s15550_s21 = scalar_lea.hbm %s15866_s4, 16 }
  0x48   :  { %p15551_p4 = scmp.ne.s32.totalorder %s15866_s4, %s15550_s21  ;;  %p15554_p5 = scmp.lt.u32.totalorder %s15550_s21, %s15866_s4 }
  0x4a   :  { %p15556_p6 = pnand %p15554_p5, %p15551_p4 }
  0x4c   :  { %15559 = shalt.err (!%p15556_p6)
}
  0x4d   :  { %s15560_s26 = scalar_lea.vmem %s67_s9, 16  ;;  %s15564_s27 = scalar_lea.vmem %s67_s9, 32 }
  0x4e   :  { %p15561_p7 = scmp.ne.s32.totalorder %s67_s9, %s15560_s26  ;;  %p15565_p8 = scmp.lt.s32.totalorder %s67_s9, %s67_s9 }
  0x4f   :  { %p15566_p9 = scmp.lt.s32.totalorder %s15564_s27, %s15560_s26 }
  0x51   :  { %p15567_p10 = por %p15566_p9, %p15565_p8 }
  0x53   :  { %p15568_p11 = pnand %p15567_p10, %p15561_p7 }
  0x55   :  { %15571 = shalt.err (!%p15568_p11)
}
  0x56   :  { %69 = dma.hbm_to_vmem [thread:$0]  %s15866_s4, 16, %s67_s9, [#allocation9]  }
  0x57   :  { %15594 = dma.done.wait [#allocation3], 16384  }
  0x58   :  { %15595 = vsyncadd [#allocation3], 4294950912 }
  0x59   :  { %15596 = dma.done.wait [#allocation6], 131088  }
  0x5a   :  { %15597 = vsyncadd [#allocation6], 4294836208 }
  0x5b   :  { %15598 = dma.done.wait [#allocation9], 1040  }
  0x5c   :  { %15599 = vsyncadd [#allocation9], 4294966256  ;;  %v14430_v0 = vld [vmem:[#allocation5 + $0x40] sm:$0xff]   ;;  %v14434_v4 = vld [vmem:[#allocation5 + $0x48] sm:$0xff]   ;;  %vm15612_vm0 = vmmov 0   ;;  %s15613_s4 = smov [#allocation11]  }
  0x5d   :  { %v14431_v1 = vld [vmem:[#allocation5 + $0xc0] sm:$0xff]   ;;  %12979 = vmatprep.subr.bf16.mxu0 %v14430_v0  ;;  %v14435_v5 = vld [vmem:[#allocation5 + $0xc8] sm:$0xff]   ;;  %v14438_v8 = vld [vmem:[#allocation5 + $0x50] sm:$0xff]   ;;  %s11803_s28 = sshll.u32 %s15613_s4, 4  ;;  %s11804_s28 = int_to_ptr.vmem [resolvable:$true] %s11803_s28 }
  0x5e   :  { %v14432_v2 = vld [vmem:[#allocation5] sm:$0xff]   ;;  %13001 = vmatprep.subr.bf16.mxu1 %v14431_v1  ;;  %v14436_v6 = vld [vmem:[#allocation5 + $0x8] sm:$0xff]   ;;  %v14439_v9 = vld [vmem:[#allocation5 + $0xd0] sm:$0xff]   ;;  %s15572_s29 = scalar_lea.vmem %s11804_s28, 256  ;;  %p15577_p13 = scmp.lt.s32.totalorder %s11804_s28, %s11804_s28 }
  0x5f   :  { %v14433_v3 = vld [vmem:[#allocation5 + $0x80] sm:$0xff]   ;;  %12980 = vmatpush3.bf16.msra.mxu0 %v14432_v2  ;;  %v14437_v7 = vld [vmem:[#allocation5 + $0x88] sm:$0xff]   ;;  %v14440_v10 = vld [vmem:[#allocation5 + $0x10] sm:$0xff]   ;;  %p15573_p12 = scmp.ne.s32.totalorder %s11804_s28, %s15572_s29  ;;  %p15578_p0 = scmp.lt.s32.totalorder %s15572_s29, %s15572_s29 }
  0x60   :  { %13002 = vmatpush3.bf16.msra.mxu1 %v14433_v3  ;;  %12981 = vmatprep.subr.bf16.mxu0 %v14434_v4  ;;  %v14441_v11 = vld [vmem:[#allocation5 + $0x90] sm:$0xff]   ;;  %v14442_v12 = vld [vmem:[#allocation5 + $0x58] sm:$0xff]   ;;  %v14446_v16 = vld [vmem:[#allocation5 + $0x60] sm:$0xff]  }
  0x61   :  { %13003 = vmatprep.subr.bf16.mxu1 %v14435_v5  ;;  %v14443_v13 = vld [vmem:[#allocation5 + $0xd8] sm:$0xff]   ;;  %v14447_v17 = vld [vmem:[#allocation5 + $0xe0] sm:$0xff]   ;;  %v14450_v20 = vld [vmem:[#allocation5 + $0x68] sm:$0xff]   ;;  %p15579_p1 = por %p15578_p0, %p15577_p13 }
  0x62   :  { %v14444_v14 = vld [vmem:[#allocation5 + $0x18] sm:$0xff]   ;;  %v14448_v18 = vld [vmem:[#allocation5 + $0x20] sm:$0xff]   ;;  %v14451_v21 = vld [vmem:[#allocation5 + $0xe8] sm:$0xff]  }
  0x63   :  { %12982 = vmatpush3.bf16.msra.mxu0 %v14436_v6  ;;  %v14445_v15 = vld [vmem:[#allocation5 + $0x98] sm:$0xff]   ;;  %v14449_v19 = vld [vmem:[#allocation5 + $0xa0] sm:$0xff]   ;;  %v14452_v22 = vld [vmem:[#allocation5 + $0x28] sm:$0xff]   ;;  %p15580_p2 = pnand %p15579_p1, %p15573_p12 }
  0x64   :  { %13004 = vmatpush3.bf16.msra.mxu1 %v14437_v7  ;;  %12983 = vmatprep.subr.bf16.mxu0 %v14438_v8  ;;  %v14453_v23 = vld [vmem:[#allocation5 + $0xa8] sm:$0xff]   ;;  %v14454_v24 = vld [vmem:[#allocation5 + $0x70] sm:$0xff]   ;;  %v14458_v28 = vld [vmem:[#allocation5 + $0x78] sm:$0xff]  }
  0x65   :  { %13005 = vmatprep.subr.bf16.mxu1 %v14439_v9  ;;  %v14455_v25 = vld [vmem:[#allocation5 + $0xf0] sm:$0xff]   ;;  %v14459_v29 = vld [vmem:[#allocation5 + $0xf8] sm:$0xff]   ;;  %v86_v32 = vld [vmem:[#allocation2] sm:$0xff] }
  0x66   :  { %v14456_v26 = vld [vmem:[#allocation5 + $0x30] sm:$0xff]   ;;  %v14460_v30 = vld [vmem:[#allocation5 + $0x38] sm:$0xff]   ;;  %v150_v33 = vld [vmem:[#allocation2 + $0x200] sm:$0xff] }
  0x67   :  { %12984 = vmatpush3.bf16.msra.mxu0 %v14440_v10  ;;  %v14457_v27 = vld [vmem:[#allocation5 + $0xb0] sm:$0xff]   ;;  %v14461_v31 = vld [vmem:[#allocation5 + $0xb8] sm:$0xff]   ;;  %v87_v34 = vld [vmem:[#allocation2 + $0x8] sm:$0xff]  ;;  %v11818_v35 = vcombine.low %v86_v32, %v150_v33  ;;  %v11819_v36 = vcombine.high %v86_v32, %v150_v33 }
  0x68   :  { %13006 = vmatpush3.bf16.msra.mxu1 %v14441_v11  ;;  %12985 = vmatprep.subr.bf16.mxu0 %v14442_v12  ;;  %v151_v37 = vld [vmem:[#allocation2 + $0x208] sm:$0xff]  ;;  %v14462_v40 = vld [vmem:[#allocation5 + $0x140] sm:$0xff]   ;;  %v14470_v48 = vld [vmem:[#allocation5 + $0x150] sm:$0xff]  }
  0x69   :  { %13007 = vmatprep.subr.bf16.mxu1 %v14443_v13  ;;  %v11820_v38 = vcombine.low %v87_v34, %v151_v37  ;;  %v11821_v39 = vcombine.high %v87_v34, %v151_v37  ;;  %9085 = vmatprep.mubr.bf16.mxu0 %v11819_v36  ;;  %v14463_v41 = vld [vmem:[#allocation5 + $0x1c0] sm:$0xff]   ;;  %v14466_v44 = vld [vmem:[#allocation5 + $0x148] sm:$0xff]   ;;  %v14471_v49 = vld [vmem:[#allocation5 + $0x1d0] sm:$0xff]  }
  0x6a   :  { %v14464_v42 = vld [vmem:[#allocation5 + $0x100] sm:$0xff]   ;;  %v14467_v45 = vld [vmem:[#allocation5 + $0x1c8] sm:$0xff]   ;;  %v14472_v50 = vld [vmem:[#allocation5 + $0x110] sm:$0xff]  }
  0x6b   :  { %12986 = vmatpush3.bf16.msra.mxu0 %v14444_v14  ;;  %9126 = vmatprep.mubr.bf16.mxu1 %v11821_v39  ;;  %v14465_v43 = vld [vmem:[#allocation5 + $0x180] sm:$0xff]   ;;  %v14468_v46 = vld [vmem:[#allocation5 + $0x108] sm:$0xff]   ;;  %v14473_v51 = vld [vmem:[#allocation5 + $0x190] sm:$0xff]  }
  0x6c   :  { %13008 = vmatpush3.bf16.msra.mxu1 %v14445_v15  ;;  %12987 = vmatprep.subr.bf16.mxu0 %v14446_v16  ;;  %v14469_v47 = vld [vmem:[#allocation5 + $0x188] sm:$0xff]   ;;  %v14474_v52 = vld [vmem:[#allocation5 + $0x158] sm:$0xff]   ;;  %v14478_v56 = vld [vmem:[#allocation5 + $0x160] sm:$0xff]  }
  0x6d   :  { %13009 = vmatprep.subr.bf16.mxu1 %v14447_v17  ;;  %v14475_v53 = vld [vmem:[#allocation5 + $0x1d8] sm:$0xff]   ;;  %v14479_v57 = vld [vmem:[#allocation5 + $0x1e0] sm:$0xff]   ;;  %v14482_v60 = vld [vmem:[#allocation5 + $0x168] sm:$0xff]  }
  0x6e   :  { %v14476_v54 = vld [vmem:[#allocation5 + $0x118] sm:$0xff]   ;;  %v14480_v58 = vld [vmem:[#allocation5 + $0x120] sm:$0xff]   ;;  %v14483_v61 = vld [vmem:[#allocation5 + $0x1e8] sm:$0xff]  }
  0x6f   :  { %12988 = vmatpush3.bf16.msra.mxu0 %v14448_v18  ;;  %v14477_v55 = vld [vmem:[#allocation5 + $0x198] sm:$0xff]   ;;  %v14481_v59 = vld [vmem:[#allocation5 + $0x1a0] sm:$0xff]   ;;  %v14484_v62 = vld [vmem:[#allocation5 + $0x128] sm:$0xff]  }
  0x70   :  { %13010 = vmatpush3.bf16.msra.mxu1 %v14449_v19  ;;  %12989 = vmatprep.subr.bf16.mxu0 %v14450_v20  ;;  %v14485_v63 = vld [vmem:[#allocation5 + $0x1a8] sm:$0xff]   ;;  %v14486_v0 = vld [vmem:[#allocation5 + $0x170] sm:$0xff]   ;;  %v14490_v4 = vld [vmem:[#allocation5 + $0x178] sm:$0xff]  }
  0x71   :  { %13011 = vmatprep.subr.bf16.mxu1 %v14451_v21  ;;  %v14487_v1 = vld [vmem:[#allocation5 + $0x1f0] sm:$0xff]   ;;  %v14491_v5 = vld [vmem:[#allocation5 + $0x1f8] sm:$0xff]   ;;  %v14494_v16 = vld [vmem:[#allocation5 + $0x240] sm:$0xff]  }
  0x72   :  { %v14488_v2 = vld [vmem:[#allocation5 + $0x130] sm:$0xff]   ;;  %v14492_v6 = vld [vmem:[#allocation5 + $0x138] sm:$0xff]   ;;  %v14495_v17 = vld [vmem:[#allocation5 + $0x2c0] sm:$0xff]  }
  0x73   :  { %12990 = vmatpush3.bf16.msra.mxu0 %v14452_v22  ;;  %v14489_v3 = vld [vmem:[#allocation5 + $0x1b0] sm:$0xff]   ;;  %v14493_v7 = vld [vmem:[#allocation5 + $0x1b8] sm:$0xff]   ;;  %v14496_v18 = vld [vmem:[#allocation5 + $0x200] sm:$0xff]  }
  0x74   :  { %13012 = vmatpush3.bf16.msra.mxu1 %v14453_v23  ;;  %12991 = vmatprep.subr.bf16.mxu0 %v14454_v24  ;;  %v88_v8 = vld [vmem:[#allocation2 + $0x10] sm:$0xff]  ;;  %v89_v12 = vld [vmem:[#allocation2 + $0x18] sm:$0xff]  ;;  %v14497_v19 = vld [vmem:[#allocation5 + $0x280] sm:$0xff]  }
  0x75   :  { %13013 = vmatprep.subr.bf16.mxu1 %v14455_v25  ;;  %v152_v9 = vld [vmem:[#allocation2 + $0x210] sm:$0xff]  ;;  %v153_v13 = vld [vmem:[#allocation2 + $0x218] sm:$0xff]  ;;  %v14498_v20 = vld [vmem:[#allocation5 + $0x248] sm:$0xff]  }
  0x76   :  { %v11822_v10 = vcombine.low %v88_v8, %v152_v9  ;;  %v11823_v11 = vcombine.high %v88_v8, %v152_v9  ;;  %v11824_v14 = vcombine.low %v89_v12, %v153_v13  ;;  %v11825_v15 = vcombine.high %v89_v12, %v153_v13  ;;  %v14499_v21 = vld [vmem:[#allocation5 + $0x2c8] sm:$0xff]   ;;  %v14502_v24 = vld [vmem:[#allocation5 + $0x250] sm:$0xff]   ;;  %v14510_v32 = vld [vmem:[#allocation5 + $0x260] sm:$0xff]  }
  0x77   :  { %12992 = vmatpush3.bf16.msra.mxu0 %v14456_v26  ;;  %v14500_v22 = vld [vmem:[#allocation5 + $0x208] sm:$0xff]   ;;  %v14503_v25 = vld [vmem:[#allocation5 + $0x2d0] sm:$0xff]   ;;  %v14511_v33 = vld [vmem:[#allocation5 + $0x2e0] sm:$0xff]  }
  0x78   :  { %13014 = vmatpush3.bf16.msra.mxu1 %v14457_v27  ;;  %12993 = vmatprep.subr.bf16.mxu0 %v14458_v28  ;;  %v14501_v23 = vld [vmem:[#allocation5 + $0x288] sm:$0xff]   ;;  %v14504_v26 = vld [vmem:[#allocation5 + $0x210] sm:$0xff]   ;;  %v14506_v28 = vld [vmem:[#allocation5 + $0x258] sm:$0xff]  }
  0x79   :  { %13015 = vmatprep.subr.bf16.mxu1 %v14459_v29  ;;  %v14505_v27 = vld [vmem:[#allocation5 + $0x290] sm:$0xff]   ;;  %v14507_v29 = vld [vmem:[#allocation5 + $0x2d8] sm:$0xff]   ;;  %v14512_v34 = vld [vmem:[#allocation5 + $0x220] sm:$0xff]  }
  0x7a   :  { %v14514_v36 = vld [vmem:[#allocation5 + $0x268] sm:$0xff]   ;;  %v14542_v8 = vld [vmem:[#allocation5 + $0x360] sm:$0xff]  }
  0x7b   :  { %12994 = vmatpush3.bf16.msra.mxu0 %v14460_v30  ;;  %v14508_v30 = vld [vmem:[#allocation5 + $0x218] sm:$0xff]   ;;  %v14515_v37 = vld [vmem:[#allocation5 + $0x2e8] sm:$0xff]   ;;  %v14543_v9 = vld [vmem:[#allocation5 + $0x3e0] sm:$0xff]  }
  0x7c   :  { %13016 = vmatpush3.bf16.msra.mxu1 %v14461_v31  ;;  %13023 = vmatprep.subr.bf16.mxu0 %v14462_v40  ;;  %v14509_v31 = vld [vmem:[#allocation5 + $0x298] sm:$0xff]   ;;  %v14517_v39 = vld [vmem:[#allocation5 + $0x2a8] sm:$0xff]   ;;  %v14518_v40 = vld [vmem:[#allocation5 + $0x270] sm:$0xff]  }
  0x7d   :  { %13045 = vmatprep.subr.bf16.mxu1 %v14463_v41  ;;  %v14519_v41 = vld [vmem:[#allocation5 + $0x2f0] sm:$0xff]   ;;  %v14546_v12 = vld [vmem:[#allocation5 + $0x368] sm:$0xff]  }
  0x7e   :  { %9086 = vmatmul.mubr.bf16.vlgmr.msra.gmra.mrb[0].mxu0 %v11818_v35  ;;  %v14513_v35 = vld [vmem:[#allocation5 + $0x2a0] sm:$0xff]   ;;  %v14547_v13 = vld [vmem:[#allocation5 + $0x3e8] sm:$0xff]  }
  0x7f   :  { %9127 = vmatmul.mubr.bf16.vlgmr.msra.gmra.mrb[0].mxu1 %v11820_v38  ;;  %13024 = vmatpush3.bf16.msra.mxu0 %v14464_v42  ;;  %v14516_v38 = vld [vmem:[#allocation5 + $0x228] sm:$0xff]   ;;  %v14520_v42 = vld [vmem:[#allocation5 + $0x230] sm:$0xff]  }
  0x80   :  { %13046 = vmatpush3.bf16.msra.mxu1 %v14465_v43  ;;  %13025 = vmatprep.subr.bf16.mxu0 %v14466_v44  ;;  %v14521_v43 = vld [vmem:[#allocation5 + $0x2b0] sm:$0xff]   ;;  %v14522_v44 = vld [vmem:[#allocation5 + $0x278] sm:$0xff]  }
  0x81   :  { %13047 = vmatprep.subr.bf16.mxu1 %v14467_v45  ;;  %9167 = vmatprep.mubr.bf16.mxu0 %v11823_v11  ;;  %v14523_v45 = vld [vmem:[#allocation5 + $0x2f8] sm:$0xff]   ;;  %v14545_v11 = vld [vmem:[#allocation5 + $0x3a0] sm:$0xff]  }
  0x82   :  { %9208 = vmatprep.mubr.bf16.mxu1 %v11825_v15  ;;  %v14549_v15 = vld [vmem:[#allocation5 + $0x3a8] sm:$0xff]  }
  0x83   :  { %13026 = vmatpush3.bf16.msra.mxu0 %v14468_v46  ;;  %v14524_v46 = vld [vmem:[#allocation5 + $0x238] sm:$0xff]  }
  0x84   :  { %13048 = vmatpush3.bf16.msra.mxu1 %v14469_v47  ;;  %13027 = vmatprep.subr.bf16.mxu0 %v14470_v48  ;;  %v14525_v47 = vld [vmem:[#allocation5 + $0x2b8] sm:$0xff]   ;;  %v90_v48 = vld [vmem:[#allocation2 + $0x20] sm:$0xff] }
  0x85   :  { %13049 = vmatprep.subr.bf16.mxu1 %v14471_v49  ;;  %v154_v49 = vld [vmem:[#allocation2 + $0x220] sm:$0xff] }
  0x87   :  { %13028 = vmatpush3.bf16.msra.mxu0 %v14472_v50  ;;  %v91_v50 = vld [vmem:[#allocation2 + $0x28] sm:$0xff] }
  0x88   :  { %13050 = vmatpush3.bf16.msra.mxu1 %v14473_v51  ;;  %13029 = vmatprep.subr.bf16.mxu0 %v14474_v52  ;;  %v155_v51 = vld [vmem:[#allocation2 + $0x228] sm:$0xff]  ;;  %v11826_v52 = vcombine.low %v90_v48, %v154_v49 }
  0x89   :  { %13051 = vmatprep.subr.bf16.mxu1 %v14475_v53  ;;  %v11827_v53 = vcombine.high %v90_v48, %v154_v49  ;;  %v14574_v48 = vld [vmem:[#allocation5 + $0x460] sm:$0xff]  }
  0x8a   :  { %v14575_v49 = vld [vmem:[#allocation5 + $0x4e0] sm:$0xff]  }
  0x8b   :  { %13030 = vmatpush3.bf16.msra.mxu0 %v14476_v54  ;;  %v11828_v54 = vcombine.low %v91_v50, %v155_v51 }
  0x8c   :  { %13052 = vmatpush3.bf16.msra.mxu1 %v14477_v55  ;;  %13031 = vmatprep.subr.bf16.mxu0 %v14478_v56  ;;  %v11829_v55 = vcombine.high %v91_v50, %v155_v51  ;;  %v14526_v56 = vld [vmem:[#allocation5 + $0x340] sm:$0xff]  }
  0x8d   :  { %13053 = vmatprep.subr.bf16.mxu1 %v14479_v57  ;;  %v14527_v57 = vld [vmem:[#allocation5 + $0x3c0] sm:$0xff]  }
  0x8e   :  { %v14576_v50 = vld [vmem:[#allocation5 + $0x420] sm:$0xff]  }
  0x8f   :  { %13032 = vmatpush3.bf16.msra.mxu0 %v14480_v58  ;;  %v14528_v58 = vld [vmem:[#allocation5 + $0x300] sm:$0xff]  }
  0x90   :  { %13054 = vmatpush3.bf16.msra.mxu1 %v14481_v59  ;;  %13033 = vmatprep.subr.bf16.mxu0 %v14482_v60  ;;  %v14529_v59 = vld [vmem:[#allocation5 + $0x380] sm:$0xff]   ;;  %v14530_v60 = vld [vmem:[#allocation5 + $0x348] sm:$0xff]  }
  0x91   :  { %13055 = vmatprep.subr.bf16.mxu1 %v14483_v61  ;;  %v14531_v61 = vld [vmem:[#allocation5 + $0x3c8] sm:$0xff]   ;;  %v14577_v51 = vld [vmem:[#allocation5 + $0x4a0] sm:$0xff]  }
  0x93   :  { %13034 = vmatpush3.bf16.msra.mxu0 %v14484_v62  ;;  %v14532_v62 = vld [vmem:[#allocation5 + $0x308] sm:$0xff]  }
  0x94   :  { %13056 = vmatpush3.bf16.msra.mxu1 %v14485_v63  ;;  %13035 = vmatprep.subr.bf16.mxu0 %v14486_v0  ;;  %v14533_v63 = vld [vmem:[#allocation5 + $0x388] sm:$0xff]   ;;  %v14534_v0 = vld [vmem:[#allocation5 + $0x350] sm:$0xff]  }
  0x95   :  { %13057 = vmatprep.subr.bf16.mxu1 %v14487_v1  ;;  %v14535_v1 = vld [vmem:[#allocation5 + $0x3d0] sm:$0xff]  }
  0x97   :  { %13036 = vmatpush3.bf16.msra.mxu0 %v14488_v2  ;;  %v14536_v2 = vld [vmem:[#allocation5 + $0x310] sm:$0xff]  }
  0x98   :  { %13058 = vmatpush3.bf16.msra.mxu1 %v14489_v3  ;;  %13037 = vmatprep.subr.bf16.mxu0 %v14490_v4  ;;  %v14537_v3 = vld [vmem:[#allocation5 + $0x390] sm:$0xff]   ;;  %v14538_v4 = vld [vmem:[#allocation5 + $0x358] sm:$0xff]  }
  0x99   :  { %13059 = vmatprep.subr.bf16.mxu1 %v14491_v5  ;;  %v14539_v5 = vld [vmem:[#allocation5 + $0x3d8] sm:$0xff]  }
  0x9b   :  { %13038 = vmatpush3.bf16.msra.mxu0 %v14492_v6  ;;  %v14540_v6 = vld [vmem:[#allocation5 + $0x318] sm:$0xff]  }
  0x9c   :  { %13060 = vmatpush3.bf16.msra.mxu1 %v14493_v7  ;;  %13067 = vmatprep.subr.bf16.mxu0 %v14494_v16  ;;  %v14541_v7 = vld [vmem:[#allocation5 + $0x398] sm:$0xff]   ;;  %v14550_v16 = vld [vmem:[#allocation5 + $0x370] sm:$0xff]  }
  0x9d   :  { %13089 = vmatprep.subr.bf16.mxu1 %v14495_v17  ;;  %v14551_v17 = vld [vmem:[#allocation5 + $0x3f0] sm:$0xff]  }
  0x9e   :  { %9168 = vmatmul.mubr.bf16.vlgmr.msra.gmra.mrb[4].mxu0 %v11822_v10  ;;  %v14544_v10 = vld [vmem:[#allocation5 + $0x320] sm:$0xff]  }
  0x9f   :  { %9209 = vmatmul.mubr.bf16.vlgmr.msra.gmra.mrb[4].mxu1 %v11824_v14  ;;  %13068 = vmatpush3.bf16.msra.mxu0 %v14496_v18  ;;  %v14548_v14 = vld [vmem:[#allocation5 + $0x328] sm:$0xff]   ;;  %v14552_v18 = vld [vmem:[#allocation5 + $0x330] sm:$0xff]  }
  0xa0   :  { %13090 = vmatpush3.bf16.msra.mxu1 %v14497_v19  ;;  %13069 = vmatprep.subr.bf16.mxu0 %v14498_v20  ;;  %v14553_v19 = vld [vmem:[#allocation5 + $0x3b0] sm:$0xff]   ;;  %v14554_v20 = vld [vmem:[#allocation5 + $0x378] sm:$0xff]  }
  0xa1   :  { %13091 = vmatprep.subr.bf16.mxu1 %v14499_v21  ;;  %9249 = vmatprep.mubr.bf16.mxu0 %v11827_v53  ;;  %v14555_v21 = vld [vmem:[#allocation5 + $0x3f8] sm:$0xff]   ;;  %v14579_v53 = vld [vmem:[#allocation5 + $0x4e8] sm:$0xff]  }
  0xa2   :  { %9290 = vmatprep.mubr.bf16.mxu1 %v11829_v55  ;;  %v14581_v55 = vld [vmem:[#allocation5 + $0x4a8] sm:$0xff]  }
  0xa3   :  { %13070 = vmatpush3.bf16.msra.mxu0 %v14500_v22  ;;  %v14556_v22 = vld [vmem:[#allocation5 + $0x338] sm:$0xff]  }
  0xa4   :  { %13092 = vmatpush3.bf16.msra.mxu1 %v14501_v23  ;;  %13071 = vmatprep.subr.bf16.mxu0 %v14502_v24  ;;  %v14557_v23 = vld [vmem:[#allocation5 + $0x3b8] sm:$0xff]   ;;  %v92_v24 = vld [vmem:[#allocation2 + $0x30] sm:$0xff] }
  0xa5   :  { %13093 = vmatprep.subr.bf16.mxu1 %v14503_v25  ;;  %v156_v25 = vld [vmem:[#allocation2 + $0x230] sm:$0xff] }
  0xa7   :  { %13072 = vmatpush3.bf16.msra.mxu0 %v14504_v26  ;;  %v93_v26 = vld [vmem:[#allocation2 + $0x38] sm:$0xff] }
  0xa8   :  { %13094 = vmatpush3.bf16.msra.mxu1 %v14505_v27  ;;  %13073 = vmatprep.subr.bf16.mxu0 %v14506_v28  ;;  %v11830_v27 = vcombine.low %v92_v24, %v156_v25  ;;  %v11831_v28 = vcombine.high %v92_v24, %v156_v25  ;;  %v14606_v24 = vld [vmem:[#allocation5 + $0x560] sm:$0xff]  }
  0xa9   :  { %13095 = vmatprep.subr.bf16.mxu1 %v14507_v29  ;;  %v157_v29 = vld [vmem:[#allocation2 + $0x238] sm:$0xff]  ;;  %v14607_v25 = vld [vmem:[#allocation5 + $0x5e0] sm:$0xff]  }
  0xab   :  { %13074 = vmatpush3.bf16.msra.mxu0 %v14508_v30  ;;  %v11832_v30 = vcombine.low %v93_v26, %v157_v29 }
  0xac   :  { %13096 = vmatpush3.bf16.msra.mxu1 %v14509_v31  ;;  %13075 = vmatprep.subr.bf16.mxu0 %v14510_v32  ;;  %v11833_v31 = vcombine.high %v93_v26, %v157_v29  ;;  %v14558_v32 = vld [vmem:[#allocation5 + $0x440] sm:$0xff]   ;;  %v14611_v29 = vld [vmem:[#allocation5 + $0x5e8] sm:$0xff]  }
  0xad   :  { %13097 = vmatprep.subr.bf16.mxu1 %v14511_v33  ;;  %v14559_v33 = vld [vmem:[#allocation5 + $0x4c0] sm:$0xff]  }
  0xae   :  { %v14608_v26 = vld [vmem:[#allocation5 + $0x520] sm:$0xff]  }
  0xaf   :  { %13076 = vmatpush3.bf16.msra.mxu0 %v14512_v34  ;;  %v14560_v34 = vld [vmem:[#allocation5 + $0x400] sm:$0xff]  }
  0xb0   :  { %13098 = vmatpush3.bf16.msra.mxu1 %v14513_v35  ;;  %13077 = vmatprep.subr.bf16.mxu0 %v14514_v36  ;;  %v14561_v35 = vld [vmem:[#allocation5 + $0x480] sm:$0xff]   ;;  %v14562_v36 = vld [vmem:[#allocation5 + $0x448] sm:$0xff]  }
  0xb1   :  { %13099 = vmatprep.subr.bf16.mxu1 %v14515_v37  ;;  %v14563_v37 = vld [vmem:[#allocation5 + $0x4c8] sm:$0xff]  }
  0xb3   :  { %13078 = vmatpush3.bf16.msra.mxu0 %v14516_v38  ;;  %v14564_v38 = vld [vmem:[#allocation5 + $0x408] sm:$0xff]  }
  0xb4   :  { %13100 = vmatpush3.bf16.msra.mxu1 %v14517_v39  ;;  %13079 = vmatprep.subr.bf16.mxu0 %v14518_v40  ;;  %v14565_v39 = vld [vmem:[#allocation5 + $0x488] sm:$0xff]   ;;  %v14566_v40 = vld [vmem:[#allocation5 + $0x450] sm:$0xff]  }
  0xb5   :  { %13101 = vmatprep.subr.bf16.mxu1 %v14519_v41  ;;  %v14567_v41 = vld [vmem:[#allocation5 + $0x4d0] sm:$0xff]  }
  0xb7   :  { %13080 = vmatpush3.bf16.msra.mxu0 %v14520_v42  ;;  %v14568_v42 = vld [vmem:[#allocation5 + $0x410] sm:$0xff]  }
  0xb8   :  { %13102 = vmatpush3.bf16.msra.mxu1 %v14521_v43  ;;  %13081 = vmatprep.subr.bf16.mxu0 %v14522_v44  ;;  %v14569_v43 = vld [vmem:[#allocation5 + $0x490] sm:$0xff]   ;;  %v14570_v44 = vld [vmem:[#allocation5 + $0x458] sm:$0xff]  }
  0xb9   :  { %13103 = vmatprep.subr.bf16.mxu1 %v14523_v45  ;;  %v14571_v45 = vld [vmem:[#allocation5 + $0x4d8] sm:$0xff]  }
  0xbb   :  { %13082 = vmatpush3.bf16.msra.mxu0 %v14524_v46  ;;  %v14572_v46 = vld [vmem:[#allocation5 + $0x418] sm:$0xff]  }
  0xbc   :  { %13104 = vmatpush3.bf16.msra.mxu1 %v14525_v47  ;;  %13111 = vmatprep.subr.bf16.mxu0 %v14526_v56  ;;  %v14573_v47 = vld [vmem:[#allocation5 + $0x498] sm:$0xff]   ;;  %v14582_v56 = vld [vmem:[#allocation5 + $0x470] sm:$0xff]  }
  0xbd   :  { %13133 = vmatprep.subr.bf16.mxu1 %v14527_v57  ;;  %v14583_v57 = vld [vmem:[#allocation5 + $0x4f0] sm:$0xff]  }
  0xbe   :  { %9250 = vmatmul.mubr.bf16.vlgmr.msra.gmra.mrb[8].mxu0 %v11826_v52  ;;  %v14578_v52 = vld [vmem:[#allocation5 + $0x468] sm:$0xff]  }
  0xbf   :  { %9291 = vmatmul.mubr.bf16.vlgmr.msra.gmra.mrb[8].mxu1 %v11828_v54  ;;  %13112 = vmatpush3.bf16.msra.mxu0 %v14528_v58  ;;  %v14580_v54 = vld [vmem:[#allocation5 + $0x428] sm:$0xff]   ;;  %v14584_v58 = vld [vmem:[#allocation5 + $0x430] sm:$0xff]  }
  0xc0   :  { %13134 = vmatpush3.bf16.msra.mxu1 %v14529_v59  ;;  %13113 = vmatprep.subr.bf16.mxu0 %v14530_v60  ;;  %v14585_v59 = vld [vmem:[#allocation5 + $0x4b0] sm:$0xff]   ;;  %v14586_v60 = vld [vmem:[#allocation5 + $0x478] sm:$0xff]  }
  0xc1   :  { %13135 = vmatprep.subr.bf16.mxu1 %v14531_v61  ;;  %9331 = vmatprep.mubr.bf16.mxu0 %v11831_v28  ;;  %v14587_v61 = vld [vmem:[#allocation5 + $0x4f8] sm:$0xff]   ;;  %v14610_v28 = vld [vmem:[#allocation5 + $0x568] sm:$0xff]  }
  0xc2   :  { %9372 = vmatprep.mubr.bf16.mxu1 %v11833_v31  ;;  %v14613_v31 = vld [vmem:[#allocation5 + $0x5a8] sm:$0xff]  }
  0xc3   :  { %13114 = vmatpush3.bf16.msra.mxu0 %v14532_v62  ;;  %v14588_v62 = vld [vmem:[#allocation5 + $0x438] sm:$0xff]  }
  0xc4   :  { %13136 = vmatpush3.bf16.msra.mxu1 %v14533_v63  ;;  %13115 = vmatprep.subr.bf16.mxu0 %v14534_v0  ;;  %v14589_v63 = vld [vmem:[#allocation5 + $0x4b8] sm:$0xff]   ;;  %v94_v0 = vld [vmem:[#allocation2 + $0x40] sm:$0xff] }
  0xc5   :  { %13137 = vmatprep.subr.bf16.mxu1 %v14535_v1  ;;  %v158_v1 = vld [vmem:[#allocation2 + $0x240] sm:$0xff] }
  0xc7   :  { %13116 = vmatpush3.bf16.msra.mxu0 %v14536_v2  ;;  %v11834_v2 = vcombine.low %v94_v0, %v158_v1 }
  0xc8   :  { %13138 = vmatpush3.bf16.msra.mxu1 %v14537_v3  ;;  %13117 = vmatprep.subr.bf16.mxu0 %v14538_v4  ;;  %v11835_v3 = vcombine.high %v94_v0, %v158_v1  ;;  %v95_v4 = vld [vmem:[#allocation2 + $0x48] sm:$0xff]  ;;  %v14638_v0 = vld [vmem:[#allocation5 + $0x660] sm:$0xff]  }
  0xc9   :  { %13139 = vmatprep.subr.bf16.mxu1 %v14539_v5  ;;  %v159_v5 = vld [vmem:[#allocation2 + $0x248] sm:$0xff]  ;;  %v14639_v1 = vld [vmem:[#allocation5 + $0x6e0] sm:$0xff]  }
  0xcb   :  { %13118 = vmatpush3.bf16.msra.mxu0 %v14540_v6  ;;  %v11836_v6 = vcombine.low %v95_v4, %v159_v5 }
  0xcc   :  { %13140 = vmatpush3.bf16.msra.mxu1 %v14541_v7  ;;  %13119 = vmatprep.subr.bf16.mxu0 %v14542_v8  ;;  %v11837_v7 = vcombine.high %v95_v4, %v159_v5  ;;  %v14590_v8 = vld [vmem:[#allocation5 + $0x540] sm:$0xff]   ;;  %v14642_v4 = vld [vmem:[#allocation5 + $0x668] sm:$0xff]  }
  0xcd   :  { %13141 = vmatprep.subr.bf16.mxu1 %v14543_v9  ;;  %v14591_v9 = vld [vmem:[#allocation5 + $0x5c0] sm:$0xff]   ;;  %v14643_v5 = vld [vmem:[#allocation5 + $0x6e8] sm:$0xff]  }
  0xcf   :  { %13120 = vmatpush3.bf16.msra.mxu0 %v14544_v10  ;;  %v14592_v10 = vld [vmem:[#allocation5 + $0x500] sm:$0xff]  }
  0xd0   :  { %13142 = vmatpush3.bf16.msra.mxu1 %v14545_v11  ;;  %13121 = vmatprep.subr.bf16.mxu0 %v14546_v12  ;;  %v14593_v11 = vld [vmem:[#allocation5 + $0x580] sm:$0xff]   ;;  %v14594_v12 = vld [vmem:[#allocation5 + $0x548] sm:$0xff]  }
  0xd1   :  { %13143 = vmatprep.subr.bf16.mxu1 %v14547_v13  ;;  %v14595_v13 = vld [vmem:[#allocation5 + $0x5c8] sm:$0xff]  }
  0xd3   :  { %13122 = vmatpush3.bf16.msra.mxu0 %v14548_v14  ;;  %v14596_v14 = vld [vmem:[#allocation5 + $0x508] sm:$0xff]  }
  0xd4   :  { %13144 = vmatpush3.bf16.msra.mxu1 %v14549_v15  ;;  %13123 = vmatprep.subr.bf16.mxu0 %v14550_v16  ;;  %v14597_v15 = vld [vmem:[#allocation5 + $0x588] sm:$0xff]   ;;  %v14598_v16 = vld [vmem:[#allocation5 + $0x550] sm:$0xff]  }
  0xd5   :  { %13145 = vmatprep.subr.bf16.mxu1 %v14551_v17  ;;  %v14599_v17 = vld [vmem:[#allocation5 + $0x5d0] sm:$0xff]  }
  0xd7   :  { %13124 = vmatpush3.bf16.msra.mxu0 %v14552_v18  ;;  %v14600_v18 = vld [vmem:[#allocation5 + $0x510] sm:$0xff]  }
  0xd8   :  { %13146 = vmatpush3.bf16.msra.mxu1 %v14553_v19  ;;  %13125 = vmatprep.subr.bf16.mxu0 %v14554_v20  ;;  %v14601_v19 = vld [vmem:[#allocation5 + $0x590] sm:$0xff]   ;;  %v14602_v20 = vld [vmem:[#allocation5 + $0x558] sm:$0xff]  }
  0xd9   :  { %13147 = vmatprep.subr.bf16.mxu1 %v14555_v21  ;;  %v14603_v21 = vld [vmem:[#allocation5 + $0x5d8] sm:$0xff]  }
  0xdb   :  { %13126 = vmatpush3.bf16.msra.mxu0 %v14556_v22  ;;  %v14604_v22 = vld [vmem:[#allocation5 + $0x518] sm:$0xff]  }
  0xdc   :  { %13148 = vmatpush3.bf16.msra.mxu1 %v14557_v23  ;;  %13155 = vmatprep.subr.bf16.mxu0 %v14558_v32  ;;  %v14605_v23 = vld [vmem:[#allocation5 + $0x598] sm:$0xff]   ;;  %v14614_v32 = vld [vmem:[#allocation5 + $0x570] sm:$0xff]  }
  0xdd   :  { %13177 = vmatprep.subr.bf16.mxu1 %v14559_v33  ;;  %v14615_v33 = vld [vmem:[#allocation5 + $0x5f0] sm:$0xff]  }
  0xde   :  { %9332 = vmatmul.mubr.bf16.vlgmr.msra.gmra.mrb[12].mxu0 %v11830_v27  ;;  %v14609_v27 = vld [vmem:[#allocation5 + $0x5a0] sm:$0xff]  }
  0xdf   :  { %9373 = vmatmul.mubr.bf16.vlgmr.msra.gmra.mrb[12].mxu1 %v11832_v30  ;;  %13156 = vmatpush3.bf16.msra.mxu0 %v14560_v34  ;;  %v14612_v30 = vld [vmem:[#allocation5 + $0x528] sm:$0xff]   ;;  %v14616_v34 = vld [vmem:[#allocation5 + $0x530] sm:$0xff]  }
  0xe0   :  { %13178 = vmatpush3.bf16.msra.mxu1 %v14561_v35  ;;  %13157 = vmatprep.subr.bf16.mxu0 %v14562_v36  ;;  %v14617_v35 = vld [vmem:[#allocation5 + $0x5b0] sm:$0xff]   ;;  %v14618_v36 = vld [vmem:[#allocation5 + $0x578] sm:$0xff]  }
  0xe1   :  { %13179 = vmatprep.subr.bf16.mxu1 %v14563_v37  ;;  %9413 = vmatprep.mubr.bf16.mxu0 %v11835_v3  ;;  %v14619_v37 = vld [vmem:[#allocation5 + $0x5f8] sm:$0xff]   ;;  %v14641_v3 = vld [vmem:[#allocation5 + $0x6a0] sm:$0xff]  }
  0xe2   :  { %9454 = vmatprep.mubr.bf16.mxu1 %v11837_v7  ;;  %v14645_v7 = vld [vmem:[#allocation5 + $0x6a8] sm:$0xff]  }
  0xe3   :  { %13158 = vmatpush3.bf16.msra.mxu0 %v14564_v38  ;;  %v14620_v38 = vld [vmem:[#allocation5 + $0x538] sm:$0xff]  }
  0xe4   :  { %13180 = vmatpush3.bf16.msra.mxu1 %v14565_v39  ;;  %13159 = vmatprep.subr.bf16.mxu0 %v14566_v40  ;;  %v14621_v39 = vld [vmem:[#allocation5 + $0x5b8] sm:$0xff]   ;;  %v96_v40 = vld [vmem:[#allocation2 + $0x50] sm:$0xff] }
  0xe5   :  { %13181 = vmatprep.subr.bf16.mxu1 %v14567_v41  ;;  %v160_v41 = vld [vmem:[#allocation2 + $0x250] sm:$0xff] }
  0xe7   :  { %13160 = vmatpush3.bf16.msra.mxu0 %v14568_v42  ;;  %v97_v42 = vld [vmem:[#allocation2 + $0x58] sm:$0xff] }
  0xe8   :  { %13182 = vmatpush3.bf16.msra.mxu1 %v14569_v43  ;;  %13161 = vmatprep.subr.bf16.mxu0 %v14570_v44  ;;  %v161_v43 = vld [vmem:[#allocation2 + $0x258] sm:$0xff]  ;;  %v11838_v44 = vcombine.low %v96_v40, %v160_v41 }
  0xe9   :  { %13183 = vmatprep.subr.bf16.mxu1 %v14571_v45  ;;  %v11839_v45 = vcombine.high %v96_v40, %v160_v41  ;;  %v14669_v41 = vld [vmem:[#allocation5 + $0x798] sm:$0xff]  }
  0xeb   :  { %13162 = vmatpush3.bf16.msra.mxu0 %v14572_v46  ;;  %v11840_v46 = vcombine.low %v97_v42, %v161_v43 }
  0xec   :  { %13184 = vmatpush3.bf16.msra.mxu1 %v14573_v47  ;;  %13163 = vmatprep.subr.bf16.mxu0 %v14574_v48  ;;  %v11841_v47 = vcombine.high %v97_v42, %v161_v43  ;;  %v14622_v48 = vld [vmem:[#allocation5 + $0x640] sm:$0xff]  }
  0xed   :  { %13185 = vmatprep.subr.bf16.mxu1 %v14575_v49  ;;  %v14623_v49 = vld [vmem:[#allocation5 + $0x6c0] sm:$0xff]  }
  0xee   :  { %v14670_v43 = vld [vmem:[#allocation5 + $0x760] sm:$0xff]  }
  0xef   :  { %13164 = vmatpush3.bf16.msra.mxu0 %v14576_v50  ;;  %v14624_v50 = vld [vmem:[#allocation5 + $0x600] sm:$0xff]  }
  0xf0   :  { %13186 = vmatpush3.bf16.msra.mxu1 %v14577_v51  ;;  %13165 = vmatprep.subr.bf16.mxu0 %v14578_v52  ;;  %v14625_v51 = vld [vmem:[#allocation5 + $0x680] sm:$0xff]   ;;  %v14626_v52 = vld [vmem:[#allocation5 + $0x648] sm:$0xff]  }
  0xf1   :  { %13187 = vmatprep.subr.bf16.mxu1 %v14579_v53  ;;  %v14627_v53 = vld [vmem:[#allocation5 + $0x6c8] sm:$0xff]  }
  0xf3   :  { %13166 = vmatpush3.bf16.msra.mxu0 %v14580_v54  ;;  %v14628_v54 = vld [vmem:[#allocation5 + $0x608] sm:$0xff]  }
  0xf4   :  { %13188 = vmatpush3.bf16.msra.mxu1 %v14581_v55  ;;  %13167 = vmatprep.subr.bf16.mxu0 %v14582_v56  ;;  %v14629_v55 = vld [vmem:[#allocation5 + $0x688] sm:$0xff]   ;;  %v14630_v56 = vld [vmem:[#allocation5 + $0x650] sm:$0xff]  }
  0xf5   :  { %13189 = vmatprep.subr.bf16.mxu1 %v14583_v57  ;;  %v14631_v57 = vld [vmem:[#allocation5 + $0x6d0] sm:$0xff]  }
  0xf7   :  { %13168 = vmatpush3.bf16.msra.mxu0 %v14584_v58  ;;  %v14632_v58 = vld [vmem:[#allocation5 + $0x610] sm:$0xff]  }
  0xf8   :  { %13190 = vmatpush3.bf16.msra.mxu1 %v14585_v59  ;;  %13169 = vmatprep.subr.bf16.mxu0 %v14586_v60  ;;  %v14633_v59 = vld [vmem:[#allocation5 + $0x690] sm:$0xff]   ;;  %v14634_v60 = vld [vmem:[#allocation5 + $0x658] sm:$0xff]  }
  0xf9   :  { %13191 = vmatprep.subr.bf16.mxu1 %v14587_v61  ;;  %v14635_v61 = vld [vmem:[#allocation5 + $0x6d8] sm:$0xff]  }
  0xfb   :  { %13170 = vmatpush3.bf16.msra.mxu0 %v14588_v62  ;;  %v14636_v62 = vld [vmem:[#allocation5 + $0x618] sm:$0xff]  }
  0xfc   :  { %13192 = vmatpush3.bf16.msra.mxu1 %v14589_v63  ;;  %13199 = vmatprep.subr.bf16.mxu0 %v14590_v8  ;;  %v14637_v63 = vld [vmem:[#allocation5 + $0x698] sm:$0xff]   ;;  %v14646_v8 = vld [vmem:[#allocation5 + $0x670] sm:$0xff]  }
  0xfd   :  { %13221 = vmatprep.subr.bf16.mxu1 %v14591_v9  ;;  %v14647_v9 = vld [vmem:[#allocation5 + $0x6f0] sm:$0xff]  }
  0xfe   :  { %9414 = vmatmul.mubr.bf16.vlgmr.msra.gmra.mrb[16].mxu0 %v11834_v2  ;;  %v14640_v2 = vld [vmem:[#allocation5 + $0x620] sm:$0xff]  }
  0xff   :  { %9455 = vmatmul.mubr.bf16.vlgmr.msra.gmra.mrb[16].mxu1 %v11836_v6  ;;  %13200 = vmatpush3.bf16.msra.mxu0 %v14592_v10  ;;  %v14644_v6 = vld [vmem:[#allocation5 + $0x628] sm:$0xff]   ;;  %v14648_v10 = vld [vmem:[#allocation5 + $0x630] sm:$0xff]  }
 0x100   :  { %13222 = vmatpush3.bf16.msra.mxu1 %v14593_v11  ;;  %13201 = vmatprep.subr.bf16.mxu0 %v14594_v12  ;;  %v14649_v11 = vld [vmem:[#allocation5 + $0x6b0] sm:$0xff]   ;;  %v14650_v12 = vld [vmem:[#allocation5 + $0x678] sm:$0xff]  }
 0x101   :  { %13223 = vmatprep.subr.bf16.mxu1 %v14595_v13  ;;  %9495 = vmatprep.mubr.bf16.mxu0 %v11839_v45  ;;  %v14651_v13 = vld [vmem:[#allocation5 + $0x6f8] sm:$0xff]  }
 0x102   :  { %9536 = vmatprep.mubr.bf16.mxu1 %v11841_v47 }
 0x103   :  { %13202 = vmatpush3.bf16.msra.mxu0 %v14596_v14  ;;  %v14652_v14 = vld [vmem:[#allocation5 + $0x638] sm:$0xff]  }
 0x104   :  { %13224 = vmatpush3.bf16.msra.mxu1 %v14597_v15  ;;  %13203 = vmatprep.subr.bf16.mxu0 %v14598_v16  ;;  %v14653_v15 = vld [vmem:[#allocation5 + $0x6b8] sm:$0xff]   ;;  %v98_v16 = vld [vmem:[#allocation2 + $0x60] sm:$0xff] }
 0x105   :  { %13225 = vmatprep.subr.bf16.mxu1 %v14599_v17  ;;  %v162_v17 = vld [vmem:[#allocation2 + $0x260] sm:$0xff] }
 0x107   :  { %13204 = vmatpush3.bf16.msra.mxu0 %v14600_v18  ;;  %v99_v18 = vld [vmem:[#allocation2 + $0x68] sm:$0xff] }
 0x108   :  { %13226 = vmatpush3.bf16.msra.mxu1 %v14601_v19  ;;  %13205 = vmatprep.subr.bf16.mxu0 %v14602_v20  ;;  %v11842_v19 = vcombine.low %v98_v16, %v162_v17  ;;  %v11843_v20 = vcombine.high %v98_v16, %v162_v17  ;;  %v14686_v17 = vld [vmem:[#allocation5 + $0x840] sm:$0xff]  }
 0x109   :  { %13227 = vmatprep.subr.bf16.mxu1 %v14603_v21  ;;  %v163_v21 = vld [vmem:[#allocation2 + $0x268] sm:$0xff] }
 0x10b   :  { %13206 = vmatpush3.bf16.msra.mxu0 %v14604_v22  ;;  %v11844_v22 = vcombine.low %v99_v18, %v163_v21 }
 0x10c   :  { %13228 = vmatpush3.bf16.msra.mxu1 %v14605_v23  ;;  %13207 = vmatprep.subr.bf16.mxu0 %v14606_v24  ;;  %v11845_v23 = vcombine.high %v99_v18, %v163_v21  ;;  %v14654_v24 = vld [vmem:[#allocation5 + $0x740] sm:$0xff]   ;;  %v14690_v21 = vld [vmem:[#allocation5 + $0x848] sm:$0xff]  }
 0x10d   :  { %13229 = vmatprep.subr.bf16.mxu1 %v14607_v25  ;;  %v14655_v25 = vld [vmem:[#allocation5 + $0x7c0] sm:$0xff]  }
 0x10e   :  { %v14687_v18 = vld [vmem:[#allocation5 + $0x8c0] sm:$0xff]  }
 0x10f   :  { %13208 = vmatpush3.bf16.msra.mxu0 %v14608_v26  ;;  %v14656_v26 = vld [vmem:[#allocation5 + $0x700] sm:$0xff]  }
 0x110   :  { %13230 = vmatpush3.bf16.msra.mxu1 %v14609_v27  ;;  %13209 = vmatprep.subr.bf16.mxu0 %v14610_v28  ;;  %v14657_v27 = vld [vmem:[#allocation5 + $0x780] sm:$0xff]   ;;  %v14658_v28 = vld [vmem:[#allocation5 + $0x748] sm:$0xff]  }
 0x111   :  { %13231 = vmatprep.subr.bf16.mxu1 %v14611_v29  ;;  %v14659_v29 = vld [vmem:[#allocation5 + $0x7c8] sm:$0xff]  }
 0x113   :  { %13210 = vmatpush3.bf16.msra.mxu0 %v14612_v30  ;;  %v14660_v30 = vld [vmem:[#allocation5 + $0x708] sm:$0xff]  }
 0x114   :  { %13232 = vmatpush3.bf16.msra.mxu1 %v14613_v31  ;;  %13211 = vmatprep.subr.bf16.mxu0 %v14614_v32  ;;  %v14661_v31 = vld [vmem:[#allocation5 + $0x788] sm:$0xff]   ;;  %v14662_v32 = vld [vmem:[#allocation5 + $0x750] sm:$0xff]  }
 0x115   :  { %13233 = vmatprep.subr.bf16.mxu1 %v14615_v33  ;;  %v14663_v33 = vld [vmem:[#allocation5 + $0x7d0] sm:$0xff]  }
 0x117   :  { %13212 = vmatpush3.bf16.msra.mxu0 %v14616_v34  ;;  %v14664_v34 = vld [vmem:[#allocation5 + $0x710] sm:$0xff]  }
 0x118   :  { %13234 = vmatpush3.bf16.msra.mxu1 %v14617_v35  ;;  %13213 = vmatprep.subr.bf16.mxu0 %v14618_v36  ;;  %v14665_v35 = vld [vmem:[#allocation5 + $0x790] sm:$0xff]   ;;  %v14666_v36 = vld [vmem:[#allocation5 + $0x758] sm:$0xff]  }
 0x119   :  { %13235 = vmatprep.subr.bf16.mxu1 %v14619_v37  ;;  %v14667_v37 = vld [vmem:[#allocation5 + $0x7d8] sm:$0xff]  }
 0x11b   :  { %13214 = vmatpush3.bf16.msra.mxu0 %v14620_v38 }
 0x11c   :  { %13236 = vmatpush3.bf16.msra.mxu1 %v14621_v39  ;;  %13243 = vmatprep.subr.bf16.mxu0 %v14622_v48  ;;  %v14668_v39 = vld [vmem:[#allocation5 + $0x718] sm:$0xff]  }
 0x11d   :  { %13265 = vmatprep.subr.bf16.mxu1 %v14623_v49  ;;  %v14672_v49 = vld [vmem:[#allocation5 + $0x720] sm:$0xff]  }
 0x11e   :  { %9496 = vmatmul.mubr.bf16.vlgmr.msra.gmra.mrb[20].mxu0 %v11838_v44 }
 0x11f   :  { %9537 = vmatmul.mubr.bf16.vlgmr.msra.gmra.mrb[20].mxu1 %v11840_v46  ;;  %13244 = vmatpush3.bf16.msra.mxu0 %v14624_v50  ;;  %v14671_v46 = vld [vmem:[#allocation5 + $0x7e0] sm:$0xff]  }
 0x120   :  { %13266 = vmatpush3.bf16.msra.mxu1 %v14625_v51  ;;  %13245 = vmatprep.subr.bf16.mxu0 %v14626_v52  ;;  %v14673_v51 = vld [vmem:[#allocation5 + $0x7a0] sm:$0xff]  }
 0x121   :  { %13267 = vmatprep.subr.bf16.mxu1 %v14627_v53  ;;  %9577 = vmatprep.mubr.bf16.mxu0 %v11843_v20  ;;  %v11817_v52 = vld [vmem:[#allocation7] ss:$0 sm:$0xff] }
 0x122   :  { %9618 = vmatprep.mubr.bf16.mxu1 %v11845_v23  ;;  %v14689_v20 = vld [vmem:[#allocation5 + $0x880] sm:$0xff]   ;;  %v14692_v23 = vld [vmem:[#allocation5 + $0x808] sm:$0xff]  }
 0x123   :  { %13246 = vmatpush3.bf16.msra.mxu0 %v14628_v54 }
 0x124   :  { %13268 = vmatpush3.bf16.msra.mxu1 %v14629_v55  ;;  %13247 = vmatprep.subr.bf16.mxu0 %v14630_v56  ;;  %v14674_v55 = vld [vmem:[#allocation5 + $0x768] sm:$0xff]  }
 0x125   :  { %13269 = vmatprep.subr.bf16.mxu1 %v14631_v57 }
 0x127   :  { %13248 = vmatpush3.bf16.msra.mxu0 %v14632_v58  ;;  %v14675_v58 = vld [vmem:[#allocation5 + $0x7e8] sm:$0xff]  }
 0x128   :  { %13270 = vmatpush3.bf16.msra.mxu1 %v14633_v59  ;;  %13249 = vmatprep.subr.bf16.mxu0 %v14634_v60 }
 0x129   :  { %13271 = vmatprep.subr.bf16.mxu1 %v14635_v61  ;;  %v14676_v61 = vld [vmem:[#allocation5 + $0x728] sm:$0xff]  }
 0x12b   :  { %13250 = vmatpush3.bf16.msra.mxu0 %v14636_v62 }
 0x12c   :  { %13272 = vmatpush3.bf16.msra.mxu1 %v14637_v63  ;;  %13251 = vmatprep.subr.bf16.mxu0 %v14638_v0  ;;  %v14677_v63 = vld [vmem:[#allocation5 + $0x7a8] sm:$0xff]  }
 0x12d   :  { %13273 = vmatprep.subr.bf16.mxu1 %v14639_v1  ;;  %v14678_v1 = vld [vmem:[#allocation5 + $0x770] sm:$0xff]  }
 0x12f   :  { %13252 = vmatpush3.bf16.msra.mxu0 %v14640_v2  ;;  %v14679_v2 = vld [vmem:[#allocation5 + $0x7f0] sm:$0xff]  }
 0x130   :  { %13274 = vmatpush3.bf16.msra.mxu1 %v14641_v3  ;;  %13253 = vmatprep.subr.bf16.mxu0 %v14642_v4  ;;  %v14680_v3 = vld [vmem:[#allocation5 + $0x730] sm:$0xff]  }
 0x131   :  { %13275 = vmatprep.subr.bf16.mxu1 %v14643_v5  ;;  %v14681_v4 = vld [vmem:[#allocation5 + $0x7b0] sm:$0xff]   ;;  %v14682_v5 = vld [vmem:[#allocation5 + $0x778] sm:$0xff]  }
 0x133   :  { %13254 = vmatpush3.bf16.msra.mxu0 %v14644_v6  ;;  %v14683_v6 = vld [vmem:[#allocation5 + $0x7f8] sm:$0xff]  }
 0x134   :  { %13276 = vmatpush3.bf16.msra.mxu1 %v14645_v7  ;;  %13255 = vmatprep.subr.bf16.mxu0 %v14646_v8  ;;  %v14684_v7 = vld [vmem:[#allocation5 + $0x738] sm:$0xff]  }
 0x135   :  { %13277 = vmatprep.subr.bf16.mxu1 %v14647_v9  ;;  %v14685_v8 = vld [vmem:[#allocation5 + $0x7b8] sm:$0xff]   ;;  %v100_v9 = vld [vmem:[#allocation2 + $0x70] sm:$0xff] }
 0x137   :  { %13256 = vmatpush3.bf16.msra.mxu0 %v14648_v10  ;;  %v164_v10 = vld [vmem:[#allocation2 + $0x270] sm:$0xff] }
 0x138   :  { %13278 = vmatpush3.bf16.msra.mxu1 %v14649_v11  ;;  %13257 = vmatprep.subr.bf16.mxu0 %v14650_v12  ;;  %v101_v11 = vld [vmem:[#allocation2 + $0x78] sm:$0xff] }
 0x139   :  { %13279 = vmatprep.subr.bf16.mxu1 %v14651_v13  ;;  %v165_v12 = vld [vmem:[#allocation2 + $0x278] sm:$0xff]  ;;  %v11846_v13 = vcombine.low %v100_v9, %v164_v10 }
 0x13a   :  { %v11849_v16 = vcombine.high %v101_v11, %v165_v12 }
 0x13b   :  { %13258 = vmatpush3.bf16.msra.mxu0 %v14652_v14  ;;  %v11847_v14 = vcombine.high %v100_v9, %v164_v10  ;;  %v14718_v9 = vld [vmem:[#allocation5 + $0x940] sm:$0xff]  }
 0x13c   :  { %13280 = vmatpush3.bf16.msra.mxu1 %v14653_v15  ;;  %13287 = vmatprep.subr.bf16.mxu0 %v14654_v24  ;;  %v11848_v15 = vcombine.low %v101_v11, %v165_v12  ;;  %v14693_v24 = vld [vmem:[#allocation5 + $0x888] sm:$0xff]   ;;  %v14719_v10 = vld [vmem:[#allocation5 + $0x9c0] sm:$0xff]  }
 0x13d   :  { %13309 = vmatprep.subr.bf16.mxu1 %v14655_v25  ;;  %v14694_v25 = vld [vmem:[#allocation5 + $0x850] sm:$0xff]   ;;  %v14720_v11 = vld [vmem:[#allocation5 + $0x900] sm:$0xff]  }
 0x13e   :  { %9578 = vmatmul.mubr.bf16.vlgmr.msra.gmra.mrb[24].mxu0 %v11842_v19  ;;  %v14688_v19 = vld [vmem:[#allocation5 + $0x800] sm:$0xff]  }
 0x13f   :  { %9619 = vmatmul.mubr.bf16.vlgmr.msra.gmra.mrb[24].mxu1 %v11844_v22  ;;  %13288 = vmatpush3.bf16.msra.mxu0 %v14656_v26  ;;  %v14691_v22 = vld [vmem:[#allocation5 + $0x8c8] sm:$0xff]   ;;  %v14695_v26 = vld [vmem:[#allocation5 + $0x8d0] sm:$0xff]   ;;  %v14721_v12 = vld [vmem:[#allocation5 + $0x980] sm:$0xff]  }
 0x140   :  { %13310 = vmatpush3.bf16.msra.mxu1 %v14657_v27  ;;  %13289 = vmatprep.subr.bf16.mxu0 %v14658_v28  ;;  %v14696_v27 = vld [vmem:[#allocation5 + $0x810] sm:$0xff]  }
 0x141   :  { %13311 = vmatprep.subr.bf16.mxu1 %v14659_v29  ;;  %9659 = vmatprep.mubr.bf16.mxu0 %v11847_v14  ;;  %v14697_v28 = vld [vmem:[#allocation5 + $0x890] sm:$0xff]   ;;  %v14698_v29 = vld [vmem:[#allocation5 + $0x858] sm:$0xff]   ;;  %v14723_v14 = vld [vmem:[#allocation5 + $0x9c8] sm:$0xff]  }
 0x142   :  { %9700 = vmatprep.mubr.bf16.mxu1 %v11849_v16  ;;  %v14725_v16 = vld [vmem:[#allocation5 + $0x988] sm:$0xff]  }
 0x143   :  { %13290 = vmatpush3.bf16.msra.mxu0 %v14660_v30  ;;  %v14699_v30 = vld [vmem:[#allocation5 + $0x8d8] sm:$0xff]  }
 0x144   :  { %13312 = vmatpush3.bf16.msra.mxu1 %v14661_v31  ;;  %13291 = vmatprep.subr.bf16.mxu0 %v14662_v32  ;;  %v14700_v32 = vld [vmem:[#allocation5 + $0x818] sm:$0xff]  }
 0x145   :  { %13313 = vmatprep.subr.bf16.mxu1 %v14663_v33 }
 0x147   :  { %13292 = vmatpush3.bf16.msra.mxu0 %v14664_v34  ;;  %v14701_v34 = vld [vmem:[#allocation5 + $0x898] sm:$0xff]  }
 0x148   :  { %13314 = vmatpush3.bf16.msra.mxu1 %v14665_v35  ;;  %13293 = vmatprep.subr.bf16.mxu0 %v14666_v36  ;;  %v14702_v36 = vld [vmem:[#allocation5 + $0x860] sm:$0xff]  }
 0x149   :  { %13315 = vmatprep.subr.bf16.mxu1 %v14667_v37 }
 0x14b   :  { %13294 = vmatpush3.bf16.msra.mxu0 %v14668_v39  ;;  %v14703_v39 = vld [vmem:[#allocation5 + $0x8e0] sm:$0xff]  }
 0x14c   :  { %13316 = vmatpush3.bf16.msra.mxu1 %v14669_v41  ;;  %13295 = vmatprep.subr.bf16.mxu0 %v14670_v43 }
 0x14d   :  { %13317 = vmatprep.subr.bf16.mxu1 %v14671_v46 }
 0x14f   :  { %13296 = vmatpush3.bf16.msra.mxu0 %v14672_v49 }
 0x150   :  { %13318 = vmatpush3.bf16.msra.mxu1 %v14673_v51  ;;  %13297 = vmatprep.subr.bf16.mxu0 %v14674_v55  ;;  %v14707_v51 = vld [vmem:[#allocation5 + $0x8e8] sm:$0xff]  }
 0x151   :  { %v12995_v38 = vpop.f32.mrb[0].mxu0  ;;  %13319 = vmatprep.subr.bf16.mxu1 %v14675_v58  ;;  %v14709_v55 = vld [vmem:[#allocation5 + $0x8a8] sm:$0xff]   ;;  %v14711_v58 = vld [vmem:[#allocation5 + $0x8f0] sm:$0xff]  }
 0x152   :  { %v13017_v40 = vpop.f32.mrb[0].mxu1  ;;  %v12996_v42 = vpop.f32.mrb[1].mxu0 }
 0x153   :  { %v12997_v44 = vadd.f32 %v12996_v42, %v12995_v38  ;;  %v13018_v45 = vpop.f32.mrb[1].mxu1  ;;  %v12998_v48 = vpop.f32.mrb[2].mxu0  ;;  %13298 = vmatpush3.bf16.msra.mxu0 %v14676_v61  ;;  %v14704_v42 = vld [vmem:[#allocation5 + $0x820] sm:$0xff]   ;;  %v14714_v61 = vld [vmem:[#allocation5 + $0x878] sm:$0xff]  }
 0x154   :  { %v13019_v47 = vadd.f32 %v13018_v45, %v13017_v40  ;;  %v13020_v50 = vpop.f32.mrb[2].mxu1  ;;  %v12999_v53 = vpop.f32.mrb[3].mxu0  ;;  %13320 = vmatpush3.bf16.msra.mxu1 %v14677_v63  ;;  %13299 = vmatprep.subr.bf16.mxu0 %v14678_v1  ;;  %v14705_v45 = vld [vmem:[#allocation5 + $0x8a0] sm:$0xff]   ;;  %v14716_v63 = vld [vmem:[#allocation5 + $0x838] sm:$0xff]  }
 0x155   :  { %v9088_v54 = vadd.f32 %v12997_v44, %v11817_v52  ;;  %v13000_v56 = vadd.f32 %v12999_v53, %v12998_v48  ;;  %v13021_v57 = vpop.f32.mrb[3].mxu1  ;;  %13321 = vmatprep.subr.bf16.mxu1 %v14679_v2  ;;  %v14706_v48 = vld [vmem:[#allocation5 + $0x868] sm:$0xff]   ;;  %v102_v1 = vld [vmem:[#allocation2 + $0x80] sm:$0xff] }
 0x156   :  { %v13022_v59 = vadd.f32 %v13021_v57, %v13020_v50  ;;  %v14708_v53 = vld [vmem:[#allocation5 + $0x828] sm:$0xff]   ;;  %v14710_v57 = vld [vmem:[#allocation5 + $0x870] sm:$0xff]   ;;  %v166_v2 = vld [vmem:[#allocation2 + $0x280] sm:$0xff] }
 0x157   :  { %v15706_v60 = vadd.f32 %v13019_v47, %v9088_v54  ;;  %v9091_v62 = vadd.f32 %v13000_v56, %v11817_v52  ;;  %13300 = vmatpush3.bf16.msra.mxu0 %v14680_v3  ;;  %v103_v3 = vld [vmem:[#allocation2 + $0x88] sm:$0xff] }
 0x158   :  { %13322 = vmatpush3.bf16.msra.mxu1 %v14681_v4  ;;  %13301 = vmatprep.subr.bf16.mxu0 %v14682_v5  ;;  %v11850_v4 = vcombine.low %v102_v1, %v166_v2  ;;  %v11851_v5 = vcombine.high %v102_v1, %v166_v2  ;;  %v14750_v1 = vld [vmem:[#allocation5 + $0xa40] sm:$0xff]  }
 0x159   :  { %v15708_v0 = vadd.f32 %v13022_v59, %v9091_v62  ;;  %13323 = vmatprep.subr.bf16.mxu1 %v14683_v6  ;;  %v14712_v59 = vld [vmem:[#allocation5 + $0x830] sm:$0xff]   ;;  %v14715_v62 = vld [vmem:[#allocation5 + $0x8f8] sm:$0xff]   ;;  %v167_v6 = vld [vmem:[#allocation2 + $0x288] sm:$0xff] }
 0x15a   :  { %v14751_v2 = vld [vmem:[#allocation5 + $0xac0] sm:$0xff]  }
 0x15b   :  { %13302 = vmatpush3.bf16.msra.mxu0 %v14684_v7  ;;  %v11852_v7 = vcombine.low %v103_v3, %v167_v6 }
 0x15c   :  { %13324 = vmatpush3.bf16.msra.mxu1 %v14685_v8  ;;  %13331 = vmatprep.subr.bf16.mxu0 %v14686_v17  ;;  %v11853_v8 = vcombine.high %v103_v3, %v167_v6  ;;  %v14726_v17 = vld [vmem:[#allocation5 + $0x950] sm:$0xff]   ;;  %v14752_v3 = vld [vmem:[#allocation5 + $0xa00] sm:$0xff]   ;;  %v14755_v6 = vld [vmem:[#allocation5 + $0xac8] sm:$0xff]  }
 0x15d   :  { %13353 = vmatprep.subr.bf16.mxu1 %v14687_v18  ;;  %v14727_v18 = vld [vmem:[#allocation5 + $0x9d0] sm:$0xff]  }
 0x15e   :  { %9660 = vmatmul.mubr.bf16.vlgmr.msra.gmra.mrb[28].mxu0 %v11846_v13  ;;  %v14722_v13 = vld [vmem:[#allocation5 + $0x948] sm:$0xff]  }
 0x15f   :  { %9701 = vmatmul.mubr.bf16.vlgmr.msra.gmra.mrb[28].mxu1 %v11848_v15  ;;  %13332 = vmatpush3.bf16.msra.mxu0 %v14688_v19  ;;  %v14724_v15 = vld [vmem:[#allocation5 + $0x908] sm:$0xff]   ;;  %v14728_v19 = vld [vmem:[#allocation5 + $0x910] sm:$0xff]  }
 0x160   :  { %13354 = vmatpush3.bf16.msra.mxu1 %v14689_v20  ;;  %13333 = vmatprep.subr.bf16.mxu0 %v14690_v21  ;;  %v14729_v20 = vld [vmem:[#allocation5 + $0x990] sm:$0xff]   ;;  %v14730_v21 = vld [vmem:[#allocation5 + $0x958] sm:$0xff]  }
 0x161   :  { %13355 = vmatprep.subr.bf16.mxu1 %v14691_v22  ;;  %9741 = vmatprep.mubr.bf16.mxu0 %v11851_v5  ;;  %v14731_v22 = vld [vmem:[#allocation5 + $0x9d8] sm:$0xff]   ;;  %v14754_v5 = vld [vmem:[#allocation5 + $0xa48] sm:$0xff]  }
 0x162   :  { %9782 = vmatprep.mubr.bf16.mxu1 %v11853_v8  ;;  %v14757_v8 = vld [vmem:[#allocation5 + $0xa88] sm:$0xff]  }
 0x163   :  { %13334 = vmatpush3.bf16.msra.mxu0 %v14692_v23 }
 0x164   :  { %13356 = vmatpush3.bf16.msra.mxu1 %v14693_v24  ;;  %13335 = vmatprep.subr.bf16.mxu0 %v14694_v25  ;;  %v14732_v24 = vld [vmem:[#allocation5 + $0x918] sm:$0xff]  }
 0x165   :  { %13357 = vmatprep.subr.bf16.mxu1 %v14695_v26  ;;  %v14733_v26 = vld [vmem:[#allocation5 + $0x998] sm:$0xff]  }
 0x167   :  { %13336 = vmatpush3.bf16.msra.mxu0 %v14696_v27 }
 0x168   :  { %13358 = vmatpush3.bf16.msra.mxu1 %v14697_v28  ;;  %13337 = vmatprep.subr.bf16.mxu0 %v14698_v29  ;;  %v14734_v28 = vld [vmem:[#allocation5 + $0x960] sm:$0xff]  }
 0x169   :  { %13359 = vmatprep.subr.bf16.mxu1 %v14699_v30 }
 0x16b   :  { %13338 = vmatpush3.bf16.msra.mxu0 %v14700_v32 }
 0x16c   :  { %13360 = vmatpush3.bf16.msra.mxu1 %v14701_v34  ;;  %13339 = vmatprep.subr.bf16.mxu0 %v14702_v36  ;;  %v14736_v34 = vld [vmem:[#allocation5 + $0x920] sm:$0xff]  }
 0x16d   :  { %13361 = vmatprep.subr.bf16.mxu1 %v14703_v39 }
 0x16f   :  { %13340 = vmatpush3.bf16.msra.mxu0 %v14704_v42 }
 0x170   :  { %13362 = vmatpush3.bf16.msra.mxu1 %v14705_v45  ;;  %13341 = vmatprep.subr.bf16.mxu0 %v14706_v48  ;;  %v14740_v45 = vld [vmem:[#allocation5 + $0x928] sm:$0xff]  }
 0x171   :  { %v13039_v31 = vpop.f32.mrb[4].mxu0  ;;  %13363 = vmatprep.subr.bf16.mxu1 %v14707_v51  ;;  %v14741_v48 = vld [vmem:[#allocation5 + $0x9a8] sm:$0xff]   ;;  %v14744_v51 = vld [vmem:[#allocation5 + $0x930] sm:$0xff]  }
 0x172   :  { %v13061_v33 = vpop.f32.mrb[4].mxu1  ;;  %v13040_v35 = vpop.f32.mrb[5].mxu0 }
 0x173   :  { %v13041_v37 = vadd.f32 %v13040_v35, %v13039_v31  ;;  %v13062_v38 = vpop.f32.mrb[5].mxu1  ;;  %v13042_v41 = vpop.f32.mrb[6].mxu0  ;;  %13342 = vmatpush3.bf16.msra.mxu0 %v14708_v53  ;;  %v14735_v31 = vld [vmem:[#allocation5 + $0x9e0] sm:$0xff]   ;;  %v14746_v53 = vld [vmem:[#allocation5 + $0x978] sm:$0xff]  }
 0x174   :  { %v13063_v40 = vadd.f32 %v13062_v38, %v13061_v33  ;;  %v13064_v44 = vpop.f32.mrb[6].mxu1  ;;  %v13043_v46 = vpop.f32.mrb[7].mxu0  ;;  %13364 = vmatpush3.bf16.msra.mxu1 %v14709_v55  ;;  %13343 = vmatprep.subr.bf16.mxu0 %v14710_v57  ;;  %v14748_v55 = vld [vmem:[#allocation5 + $0x938] sm:$0xff]   ;;  %v104_v57 = vld [vmem:[#allocation2 + $0x90] sm:$0xff] }
 0x175   :  { %v9170_v43 = vadd.f32 %v13041_v37, %v15706_v60  ;;  %v13044_v49 = vadd.f32 %v13043_v46, %v13042_v41  ;;  %v13065_v50 = vpop.f32.mrb[7].mxu1  ;;  %13365 = vmatprep.subr.bf16.mxu1 %v14711_v58  ;;  %v14713_v60 = vld [vmem:[#allocation5 + $0x8b0] sm:$0xff]   ;;  %v14737_v37 = vld [vmem:[#allocation5 + $0x9a0] sm:$0xff]  }
 0x176   :  { %v13066_v52 = vadd.f32 %v13065_v50, %v13064_v44  ;;  %v14743_v50 = vld [vmem:[#allocation5 + $0x9f0] sm:$0xff]  }
 0x177   :  { %v15711_v47 = vadd.f32 %v13063_v40, %v9170_v43  ;;  %v9173_v54 = vadd.f32 %v13044_v49, %v15708_v0  ;;  %13344 = vmatpush3.bf16.msra.mxu0 %v14712_v59  ;;  %v14717_v0 = vld [vmem:[#allocation5 + $0x8b8] sm:$0xff]   ;;  %v14738_v40 = vld [vmem:[#allocation5 + $0x968] sm:$0xff]   ;;  %v14742_v49 = vld [vmem:[#allocation5 + $0x970] sm:$0xff]  }
 0x178   :  { %13366 = vmatpush3.bf16.msra.mxu1 %v14713_v60  ;;  %13345 = vmatprep.subr.bf16.mxu0 %v14714_v61  ;;  %v14739_v43 = vld [vmem:[#allocation5 + $0x9e8] sm:$0xff]   ;;  %v168_v58 = vld [vmem:[#allocation2 + $0x290] sm:$0xff]  ;;  %v105_v61 = vld [vmem:[#allocation2 + $0x98] sm:$0xff] }
 0x179   :  { %v15714_v56 = vadd.f32 %v13066_v52, %v9173_v54  ;;  %13367 = vmatprep.subr.bf16.mxu1 %v14715_v62  ;;  %v14745_v52 = vld [vmem:[#allocation5 + $0x9b0] sm:$0xff]   ;;  %v14747_v54 = vld [vmem:[#allocation5 + $0x9f8] sm:$0xff]   ;;  %v11854_v59 = vcombine.low %v104_v57, %v168_v58  ;;  %v11855_v60 = vcombine.high %v104_v57, %v168_v58  ;;  %v14782_v57 = vld [vmem:[#allocation5 + $0xb40] sm:$0xff]  }
 0x17a   :  { %v169_v62 = vld [vmem:[#allocation2 + $0x298] sm:$0xff]  ;;  %v14783_v58 = vld [vmem:[#allocation5 + $0xbc0] sm:$0xff]  }
 0x17b   :  { %13346 = vmatpush3.bf16.msra.mxu0 %v14716_v63  ;;  %v11856_v63 = vcombine.low %v105_v61, %v169_v62 }
 0x17c   :  { %13368 = vmatpush3.bf16.msra.mxu1 %v14717_v0  ;;  %13375 = vmatprep.subr.bf16.mxu0 %v14718_v9  ;;  %v11857_v0 = vcombine.high %v105_v61, %v169_v62  ;;  %v14758_v9 = vld [vmem:[#allocation5 + $0xa50] sm:$0xff]   ;;  %v14786_v61 = vld [vmem:[#allocation5 + $0xb48] sm:$0xff]  }
 0x17d   :  { %13397 = vmatprep.subr.bf16.mxu1 %v14719_v10  ;;  %v14759_v10 = vld [vmem:[#allocation5 + $0xad0] sm:$0xff]   ;;  %v14787_v62 = vld [vmem:[#allocation5 + $0xbc8] sm:$0xff]  }
 0x17e   :  { %9742 = vmatmul.mubr.bf16.vlgmr.msra.gmra.mrb[32].mxu0 %v11850_v4  ;;  %v14753_v4 = vld [vmem:[#allocation5 + $0xa80] sm:$0xff]  }
 0x17f   :  { %9783 = vmatmul.mubr.bf16.vlgmr.msra.gmra.mrb[32].mxu1 %v11852_v7  ;;  %13376 = vmatpush3.bf16.msra.mxu0 %v14720_v11  ;;  %v14756_v7 = vld [vmem:[#allocation5 + $0xa08] sm:$0xff]   ;;  %v14760_v11 = vld [vmem:[#allocation5 + $0xa10] sm:$0xff]  }
 0x180   :  { %13398 = vmatpush3.bf16.msra.mxu1 %v14721_v12  ;;  %13377 = vmatprep.subr.bf16.mxu0 %v14722_v13  ;;  %v14761_v12 = vld [vmem:[#allocation5 + $0xa90] sm:$0xff]   ;;  %v14762_v13 = vld [vmem:[#allocation5 + $0xa58] sm:$0xff]  }
 0x181   :  { %13399 = vmatprep.subr.bf16.mxu1 %v14723_v14  ;;  %9823 = vmatprep.mubr.bf16.mxu0 %v11855_v60  ;;  %v14763_v14 = vld [vmem:[#allocation5 + $0xad8] sm:$0xff]   ;;  %v14785_v60 = vld [vmem:[#allocation5 + $0xb80] sm:$0xff]  }
 0x182   :  { %9864 = vmatprep.mubr.bf16.mxu1 %v11857_v0  ;;  %v14789_v0 = vld [vmem:[#allocation5 + $0xb88] sm:$0xff]  }
 0x183   :  { %13378 = vmatpush3.bf16.msra.mxu0 %v14724_v15 }
 0x184   :  { %13400 = vmatpush3.bf16.msra.mxu1 %v14725_v16  ;;  %13379 = vmatprep.subr.bf16.mxu0 %v14726_v17  ;;  %v14764_v16 = vld [vmem:[#allocation5 + $0xa18] sm:$0xff]  }
 0x185   :  { %13401 = vmatprep.subr.bf16.mxu1 %v14727_v18  ;;  %v14765_v18 = vld [vmem:[#allocation5 + $0xa98] sm:$0xff]  }
 0x187   :  { %13380 = vmatpush3.bf16.msra.mxu0 %v14728_v19 }
 0x188   :  { %13402 = vmatpush3.bf16.msra.mxu1 %v14729_v20  ;;  %13381 = vmatprep.subr.bf16.mxu0 %v14730_v21  ;;  %v14766_v20 = vld [vmem:[#allocation5 + $0xa60] sm:$0xff]  }
 0x189   :  { %13403 = vmatprep.subr.bf16.mxu1 %v14731_v22 }
 0x18b   :  { %13382 = vmatpush3.bf16.msra.mxu0 %v14732_v24 }
 0x18c   :  { %13404 = vmatpush3.bf16.msra.mxu1 %v14733_v26  ;;  %13383 = vmatprep.subr.bf16.mxu0 %v14734_v28  ;;  %v14768_v26 = vld [vmem:[#allocation5 + $0xa20] sm:$0xff]  }
 0x18d   :  { %13405 = vmatprep.subr.bf16.mxu1 %v14735_v31 }
 0x18f   :  { %13384 = vmatpush3.bf16.msra.mxu0 %v14736_v34 }
 0x190   :  { %13406 = vmatpush3.bf16.msra.mxu1 %v14737_v37  ;;  %13385 = vmatprep.subr.bf16.mxu0 %v14738_v40  ;;  %v14772_v37 = vld [vmem:[#allocation5 + $0xa28] sm:$0xff]  }
 0x191   :  { %v13083_v23 = vpop.f32.mrb[8].mxu0  ;;  %13407 = vmatprep.subr.bf16.mxu1 %v14739_v43  ;;  %v14773_v40 = vld [vmem:[#allocation5 + $0xaa8] sm:$0xff]   ;;  %v14776_v43 = vld [vmem:[#allocation5 + $0xa30] sm:$0xff]  }
 0x192   :  { %v13105_v25 = vpop.f32.mrb[8].mxu1  ;;  %v13084_v27 = vpop.f32.mrb[9].mxu0 }
 0x193   :  { %v13085_v29 = vadd.f32 %v13084_v27, %v13083_v23  ;;  %v13106_v30 = vpop.f32.mrb[9].mxu1  ;;  %v13086_v33 = vpop.f32.mrb[10].mxu0  ;;  %13386 = vmatpush3.bf16.msra.mxu0 %v14740_v45  ;;  %v14767_v23 = vld [vmem:[#allocation5 + $0xae0] sm:$0xff]   ;;  %v14778_v45 = vld [vmem:[#allocation5 + $0xa78] sm:$0xff]  }
 0x194   :  { %v13107_v32 = vadd.f32 %v13106_v30, %v13105_v25  ;;  %v13108_v36 = vpop.f32.mrb[10].mxu1  ;;  %v13087_v38 = vpop.f32.mrb[11].mxu0  ;;  %13408 = vmatpush3.bf16.msra.mxu1 %v14741_v48  ;;  %13387 = vmatprep.subr.bf16.mxu0 %v14742_v49  ;;  %v14780_v48 = vld [vmem:[#allocation5 + $0xa38] sm:$0xff]   ;;  %v106_v49 = vld [vmem:[#allocation2 + $0xa0] sm:$0xff] }
 0x195   :  { %v9252_v35 = vadd.f32 %v13085_v29, %v15711_v47  ;;  %v13088_v41 = vadd.f32 %v13087_v38, %v13086_v33  ;;  %v13109_v42 = vpop.f32.mrb[11].mxu1  ;;  %13409 = vmatprep.subr.bf16.mxu1 %v14743_v50  ;;  %v14769_v29 = vld [vmem:[#allocation5 + $0xaa0] sm:$0xff]  }
 0x196   :  { %v13110_v44 = vadd.f32 %v13109_v42, %v13108_v36  ;;  %v14775_v42 = vld [vmem:[#allocation5 + $0xaf0] sm:$0xff]   ;;  %v170_v50 = vld [vmem:[#allocation2 + $0x2a0] sm:$0xff] }
 0x197   :  { %v15717_v39 = vadd.f32 %v13107_v32, %v9252_v35  ;;  %v9255_v46 = vadd.f32 %v13088_v41, %v15714_v56  ;;  %13388 = vmatpush3.bf16.msra.mxu0 %v14744_v51  ;;  %v14749_v56 = vld [vmem:[#allocation5 + $0x9b8] sm:$0xff]   ;;  %v14770_v32 = vld [vmem:[#allocation5 + $0xa68] sm:$0xff]   ;;  %v14774_v41 = vld [vmem:[#allocation5 + $0xa70] sm:$0xff]  }
 0x198   :  { %13410 = vmatpush3.bf16.msra.mxu1 %v14745_v52  ;;  %13389 = vmatprep.subr.bf16.mxu0 %v14746_v53  ;;  %v14771_v35 = vld [vmem:[#allocation5 + $0xae8] sm:$0xff]   ;;  %v11858_v53 = vcombine.low %v106_v49, %v170_v50 }
 0x199   :  { %v15720_v47 = vadd.f32 %v13110_v44, %v9255_v46  ;;  %13411 = vmatprep.subr.bf16.mxu1 %v14747_v54  ;;  %v14777_v44 = vld [vmem:[#allocation5 + $0xab0] sm:$0xff]   ;;  %v14779_v46 = vld [vmem:[#allocation5 + $0xaf8] sm:$0xff]   ;;  %v107_v51 = vld [vmem:[#allocation2 + $0xa8] sm:$0xff]  ;;  %v11859_v54 = vcombine.high %v106_v49, %v170_v50 }
 0x19a   :  { %v171_v52 = vld [vmem:[#allocation2 + $0x2a8] sm:$0xff]  ;;  %v14814_v49 = vld [vmem:[#allocation5 + $0xc40] sm:$0xff]  }
 0x19b   :  { %13390 = vmatpush3.bf16.msra.mxu0 %v14748_v55  ;;  %v11860_v55 = vcombine.low %v107_v51, %v171_v52  ;;  %v14815_v50 = vld [vmem:[#allocation5 + $0xcc0] sm:$0xff]  }
 0x19c   :  { %13412 = vmatpush3.bf16.msra.mxu1 %v14749_v56  ;;  %13419 = vmatprep.subr.bf16.mxu0 %v14750_v1  ;;  %v11861_v56 = vcombine.high %v107_v51, %v171_v52  ;;  %v14790_v1 = vld [vmem:[#allocation5 + $0xb50] sm:$0xff]   ;;  %v14816_v51 = vld [vmem:[#allocation5 + $0xc00] sm:$0xff]  }
 0x19d   :  { %13441 = vmatprep.subr.bf16.mxu1 %v14751_v2  ;;  %v14791_v2 = vld [vmem:[#allocation5 + $0xbd0] sm:$0xff]   ;;  %v14817_v52 = vld [vmem:[#allocation5 + $0xc80] sm:$0xff]  }
 0x19e   :  { %9824 = vmatmul.mubr.bf16.vlgmr.msra.gmra.mrb[36].mxu0 %v11854_v59  ;;  %v14784_v59 = vld [vmem:[#allocation5 + $0xb00] sm:$0xff]  }
 0x19f   :  { %9865 = vmatmul.mubr.bf16.vlgmr.msra.gmra.mrb[36].mxu1 %v11856_v63  ;;  %13420 = vmatpush3.bf16.msra.mxu0 %v14752_v3  ;;  %v14788_v63 = vld [vmem:[#allocation5 + $0xb08] sm:$0xff]   ;;  %v14792_v3 = vld [vmem:[#allocation5 + $0xb10] sm:$0xff]  }
 0x1a0   :  { %13442 = vmatpush3.bf16.msra.mxu1 %v14753_v4  ;;  %13421 = vmatprep.subr.bf16.mxu0 %v14754_v5  ;;  %v14793_v4 = vld [vmem:[#allocation5 + $0xb90] sm:$0xff]   ;;  %v14794_v5 = vld [vmem:[#allocation5 + $0xb58] sm:$0xff]  }
 0x1a1   :  { %13443 = vmatprep.subr.bf16.mxu1 %v14755_v6  ;;  %9905 = vmatprep.mubr.bf16.mxu0 %v11859_v54  ;;  %v14795_v6 = vld [vmem:[#allocation5 + $0xbd8] sm:$0xff]   ;;  %v14819_v54 = vld [vmem:[#allocation5 + $0xcc8] sm:$0xff]  }
 0x1a2   :  { %9946 = vmatprep.mubr.bf16.mxu1 %v11861_v56  ;;  %v14821_v56 = vld [vmem:[#allocation5 + $0xc88] sm:$0xff]  }
 0x1a3   :  { %13422 = vmatpush3.bf16.msra.mxu0 %v14756_v7 }
 0x1a4   :  { %13444 = vmatpush3.bf16.msra.mxu1 %v14757_v8  ;;  %13423 = vmatprep.subr.bf16.mxu0 %v14758_v9  ;;  %v14796_v8 = vld [vmem:[#allocation5 + $0xb18] sm:$0xff]  }
 0x1a5   :  { %13445 = vmatprep.subr.bf16.mxu1 %v14759_v10  ;;  %v14797_v10 = vld [vmem:[#allocation5 + $0xb98] sm:$0xff]  }
 0x1a7   :  { %13424 = vmatpush3.bf16.msra.mxu0 %v14760_v11 }
 0x1a8   :  { %13446 = vmatpush3.bf16.msra.mxu1 %v14761_v12  ;;  %13425 = vmatprep.subr.bf16.mxu0 %v14762_v13  ;;  %v14798_v12 = vld [vmem:[#allocation5 + $0xb60] sm:$0xff]  }
 0x1a9   :  { %13447 = vmatprep.subr.bf16.mxu1 %v14763_v14 }
 0x1ab   :  { %13426 = vmatpush3.bf16.msra.mxu0 %v14764_v16 }
 0x1ac   :  { %13448 = vmatpush3.bf16.msra.mxu1 %v14765_v18  ;;  %13427 = vmatprep.subr.bf16.mxu0 %v14766_v20  ;;  %v14800_v18 = vld [vmem:[#allocation5 + $0xb20] sm:$0xff]  }
 0x1ad   :  { %13449 = vmatprep.subr.bf16.mxu1 %v14767_v23 }
 0x1af   :  { %13428 = vmatpush3.bf16.msra.mxu0 %v14768_v26 }
 0x1b0   :  { %13450 = vmatpush3.bf16.msra.mxu1 %v14769_v29  ;;  %13429 = vmatprep.subr.bf16.mxu0 %v14770_v32  ;;  %v14804_v29 = vld [vmem:[#allocation5 + $0xb28] sm:$0xff]  }
 0x1b1   :  { %v13127_v15 = vpop.f32.mrb[12].mxu0  ;;  %13451 = vmatprep.subr.bf16.mxu1 %v14771_v35  ;;  %v14805_v32 = vld [vmem:[#allocation5 + $0xba8] sm:$0xff]   ;;  %v14808_v35 = vld [vmem:[#allocation5 + $0xb30] sm:$0xff]  }
 0x1b2   :  { %v13149_v17 = vpop.f32.mrb[12].mxu1  ;;  %v13128_v19 = vpop.f32.mrb[13].mxu0 }
 0x1b3   :  { %v13129_v21 = vadd.f32 %v13128_v19, %v13127_v15  ;;  %v13150_v22 = vpop.f32.mrb[13].mxu1  ;;  %v13130_v25 = vpop.f32.mrb[14].mxu0  ;;  %13430 = vmatpush3.bf16.msra.mxu0 %v14772_v37  ;;  %v14799_v15 = vld [vmem:[#allocation5 + $0xbe0] sm:$0xff]   ;;  %v14810_v37 = vld [vmem:[#allocation5 + $0xb78] sm:$0xff]  }
 0x1b4   :  { %v13151_v24 = vadd.f32 %v13150_v22, %v13149_v17  ;;  %v13152_v28 = vpop.f32.mrb[14].mxu1  ;;  %v13131_v30 = vpop.f32.mrb[15].mxu0  ;;  %13452 = vmatpush3.bf16.msra.mxu1 %v14773_v40  ;;  %13431 = vmatprep.subr.bf16.mxu0 %v14774_v41  ;;  %v14812_v40 = vld [vmem:[#allocation5 + $0xb38] sm:$0xff]   ;;  %v108_v41 = vld [vmem:[#allocation2 + $0xb0] sm:$0xff] }
 0x1b5   :  { %v9334_v27 = vadd.f32 %v13129_v21, %v15717_v39  ;;  %v13132_v33 = vadd.f32 %v13131_v30, %v13130_v25  ;;  %v13153_v34 = vpop.f32.mrb[15].mxu1  ;;  %13453 = vmatprep.subr.bf16.mxu1 %v14775_v42  ;;  %v14801_v21 = vld [vmem:[#allocation5 + $0xba0] sm:$0xff]   ;;  %v172_v42 = vld [vmem:[#allocation2 + $0x2b0] sm:$0xff] }
 0x1b6   :  { %v13154_v36 = vadd.f32 %v13153_v34, %v13152_v28  ;;  %v14807_v34 = vld [vmem:[#allocation5 + $0xbf0] sm:$0xff]  }
 0x1b7   :  { %v15723_v31 = vadd.f32 %v13151_v24, %v9334_v27  ;;  %v9337_v38 = vadd.f32 %v13132_v33, %v15720_v47  ;;  %13432 = vmatpush3.bf16.msra.mxu0 %v14776_v43  ;;  %v14781_v47 = vld [vmem:[#allocation5 + $0xab8] sm:$0xff]   ;;  %v14802_v24 = vld [vmem:[#allocation5 + $0xb68] sm:$0xff]   ;;  %v14806_v33 = vld [vmem:[#allocation5 + $0xb70] sm:$0xff]  }
 0x1b8   :  { %13454 = vmatpush3.bf16.msra.mxu1 %v14777_v44  ;;  %13433 = vmatprep.subr.bf16.mxu0 %v14778_v45  ;;  %v14803_v27 = vld [vmem:[#allocation5 + $0xbe8] sm:$0xff]   ;;  %v109_v43 = vld [vmem:[#allocation2 + $0xb8] sm:$0xff]  ;;  %v11862_v44 = vcombine.low %v108_v41, %v172_v42  ;;  %v11863_v45 = vcombine.high %v108_v41, %v172_v42  ;;  %v14846_v41 = vld [vmem:[#allocation5 + $0xd40] sm:$0xff]  }
 0x1b9   :  { %v15726_v39 = vadd.f32 %v13154_v36, %v9337_v38  ;;  %13455 = vmatprep.subr.bf16.mxu1 %v14779_v46  ;;  %v14809_v36 = vld [vmem:[#allocation5 + $0xbb0] sm:$0xff]   ;;  %v14811_v38 = vld [vmem:[#allocation5 + $0xbf8] sm:$0xff]   ;;  %v14847_v42 = vld [vmem:[#allocation5 + $0xdc0] sm:$0xff]  }
 0x1ba   :  { %v173_v46 = vld [vmem:[#allocation2 + $0x2b8] sm:$0xff] }
 0x1bb   :  { %13434 = vmatpush3.bf16.msra.mxu0 %v14780_v48  ;;  %v11864_v48 = vcombine.low %v109_v43, %v173_v46 }
 0x1bc   :  { %13456 = vmatpush3.bf16.msra.mxu1 %v14781_v47  ;;  %13463 = vmatprep.subr.bf16.mxu0 %v14782_v57  ;;  %v11865_v47 = vcombine.high %v109_v43, %v173_v46  ;;  %v14822_v57 = vld [vmem:[#allocation5 + $0xc50] sm:$0xff]   ;;  %v14848_v43 = vld [vmem:[#allocation5 + $0xd00] sm:$0xff]   ;;  %v14851_v46 = vld [vmem:[#allocation5 + $0xdc8] sm:$0xff]  }
 0x1bd   :  { %13485 = vmatprep.subr.bf16.mxu1 %v14783_v58  ;;  %v14823_v58 = vld [vmem:[#allocation5 + $0xcd0] sm:$0xff]  }
 0x1be   :  { %9906 = vmatmul.mubr.bf16.vlgmr.msra.gmra.mrb[40].mxu0 %v11858_v53  ;;  %v14818_v53 = vld [vmem:[#allocation5 + $0xc48] sm:$0xff]  }
 0x1bf   :  { %9947 = vmatmul.mubr.bf16.vlgmr.msra.gmra.mrb[40].mxu1 %v11860_v55  ;;  %13464 = vmatpush3.bf16.msra.mxu0 %v14784_v59  ;;  %v14820_v55 = vld [vmem:[#allocation5 + $0xc08] sm:$0xff]   ;;  %v14824_v59 = vld [vmem:[#allocation5 + $0xc10] sm:$0xff]  }
 0x1c0   :  { %13486 = vmatpush3.bf16.msra.mxu1 %v14785_v60  ;;  %13465 = vmatprep.subr.bf16.mxu0 %v14786_v61  ;;  %v14825_v60 = vld [vmem:[#allocation5 + $0xc90] sm:$0xff]   ;;  %v14826_v61 = vld [vmem:[#allocation5 + $0xc58] sm:$0xff]  }
 0x1c1   :  { %13487 = vmatprep.subr.bf16.mxu1 %v14787_v62  ;;  %9987 = vmatprep.mubr.bf16.mxu0 %v11863_v45  ;;  %v14827_v62 = vld [vmem:[#allocation5 + $0xcd8] sm:$0xff]   ;;  %v14850_v45 = vld [vmem:[#allocation5 + $0xd48] sm:$0xff]  }
 0x1c2   :  { %10028 = vmatprep.mubr.bf16.mxu1 %v11865_v47  ;;  %v14853_v47 = vld [vmem:[#allocation5 + $0xd88] sm:$0xff]  }
 0x1c3   :  { %13466 = vmatpush3.bf16.msra.mxu0 %v14788_v63 }
 0x1c4   :  { %13488 = vmatpush3.bf16.msra.mxu1 %v14789_v0  ;;  %13467 = vmatprep.subr.bf16.mxu0 %v14790_v1  ;;  %v14828_v0 = vld [vmem:[#allocation5 + $0xc18] sm:$0xff]  }
 0x1c5   :  { %13489 = vmatprep.subr.bf16.mxu1 %v14791_v2  ;;  %v14829_v2 = vld [vmem:[#allocation5 + $0xc98] sm:$0xff]  }
 0x1c7   :  { %13468 = vmatpush3.bf16.msra.mxu0 %v14792_v3 }
 0x1c8   :  { %13490 = vmatpush3.bf16.msra.mxu1 %v14793_v4  ;;  %13469 = vmatprep.subr.bf16.mxu0 %v14794_v5  ;;  %v14830_v4 = vld [vmem:[#allocation5 + $0xc60] sm:$0xff]  }
 0x1c9   :  { %13491 = vmatprep.subr.bf16.mxu1 %v14795_v6 }
 0x1cb   :  { %13470 = vmatpush3.bf16.msra.mxu0 %v14796_v8 }
 0x1cc   :  { %13492 = vmatpush3.bf16.msra.mxu1 %v14797_v10  ;;  %13471 = vmatprep.subr.bf16.mxu0 %v14798_v12  ;;  %v14832_v10 = vld [vmem:[#allocation5 + $0xc20] sm:$0xff]  }
 0x1cd   :  { %13493 = vmatprep.subr.bf16.mxu1 %v14799_v15 }
 0x1cf   :  { %13472 = vmatpush3.bf16.msra.mxu0 %v14800_v18 }
 0x1d0   :  { %13494 = vmatpush3.bf16.msra.mxu1 %v14801_v21  ;;  %13473 = vmatprep.subr.bf16.mxu0 %v14802_v24  ;;  %v14836_v21 = vld [vmem:[#allocation5 + $0xc28] sm:$0xff]  }
 0x1d1   :  { %v13171_v7 = vpop.f32.mrb[16].mxu0  ;;  %13495 = vmatprep.subr.bf16.mxu1 %v14803_v27  ;;  %v14837_v24 = vld [vmem:[#allocation5 + $0xca8] sm:$0xff]   ;;  %v14840_v27 = vld [vmem:[#allocation5 + $0xc30] sm:$0xff]  }
 0x1d2   :  { %v13193_v9 = vpop.f32.mrb[16].mxu1  ;;  %v13172_v11 = vpop.f32.mrb[17].mxu0 }
 0x1d3   :  { %v13173_v13 = vadd.f32 %v13172_v11, %v13171_v7  ;;  %v13194_v14 = vpop.f32.mrb[17].mxu1  ;;  %v13174_v17 = vpop.f32.mrb[18].mxu0  ;;  %13474 = vmatpush3.bf16.msra.mxu0 %v14804_v29  ;;  %v14831_v7 = vld [vmem:[#allocation5 + $0xce0] sm:$0xff]   ;;  %v14842_v29 = vld [vmem:[#allocation5 + $0xc78] sm:$0xff]  }
 0x1d4   :  { %v13195_v16 = vadd.f32 %v13194_v14, %v13193_v9  ;;  %v13196_v20 = vpop.f32.mrb[18].mxu1  ;;  %v13175_v22 = vpop.f32.mrb[19].mxu0  ;;  %13496 = vmatpush3.bf16.msra.mxu1 %v14805_v32  ;;  %13475 = vmatprep.subr.bf16.mxu0 %v14806_v33  ;;  %v14844_v32 = vld [vmem:[#allocation5 + $0xc38] sm:$0xff]   ;;  %v110_v33 = vld [vmem:[#allocation2 + $0xc0] sm:$0xff] }
 0x1d5   :  { %v9416_v19 = vadd.f32 %v13173_v13, %v15723_v31  ;;  %v13176_v25 = vadd.f32 %v13175_v22, %v13174_v17  ;;  %v13197_v26 = vpop.f32.mrb[19].mxu1  ;;  %13497 = vmatprep.subr.bf16.mxu1 %v14807_v34  ;;  %v14833_v13 = vld [vmem:[#allocation5 + $0xca0] sm:$0xff]  }
 0x1d6   :  { %v13198_v28 = vadd.f32 %v13197_v26, %v13196_v20  ;;  %v14839_v26 = vld [vmem:[#allocation5 + $0xcf0] sm:$0xff]   ;;  %v174_v34 = vld [vmem:[#allocation2 + $0x2c0] sm:$0xff] }
 0x1d7   :  { %v15729_v23 = vadd.f32 %v13195_v16, %v9416_v19  ;;  %v9419_v30 = vadd.f32 %v13176_v25, %v15726_v39  ;;  %13476 = vmatpush3.bf16.msra.mxu0 %v14808_v35  ;;  %v14813_v39 = vld [vmem:[#allocation5 + $0xbb8] sm:$0xff]   ;;  %v14834_v16 = vld [vmem:[#allocation5 + $0xc68] sm:$0xff]   ;;  %v14838_v25 = vld [vmem:[#allocation5 + $0xc70] sm:$0xff]   ;;  %v11866_v35 = vcombine.low %v110_v33, %v174_v34 }
 0x1d8   :  { %13498 = vmatpush3.bf16.msra.mxu1 %v14809_v36  ;;  %13477 = vmatprep.subr.bf16.mxu0 %v14810_v37  ;;  %v14835_v19 = vld [vmem:[#allocation5 + $0xce8] sm:$0xff]   ;;  %v11867_v36 = vcombine.high %v110_v33, %v174_v34  ;;  %v14878_v33 = vld [vmem:[#allocation5 + $0xe40] sm:$0xff]  }
 0x1d9   :  { %v15732_v31 = vadd.f32 %v13198_v28, %v9419_v30  ;;  %13499 = vmatprep.subr.bf16.mxu1 %v14811_v38  ;;  %v14841_v28 = vld [vmem:[#allocation5 + $0xcb0] sm:$0xff]   ;;  %v14843_v30 = vld [vmem:[#allocation5 + $0xcf8] sm:$0xff]   ;;  %v111_v37 = vld [vmem:[#allocation2 + $0xc8] sm:$0xff] }
 0x1da   :  { %v175_v38 = vld [vmem:[#allocation2 + $0x2c8] sm:$0xff]  ;;  %v14879_v34 = vld [vmem:[#allocation5 + $0xec0] sm:$0xff]  }
 0x1db   :  { %13478 = vmatpush3.bf16.msra.mxu0 %v14812_v40  ;;  %v11868_v40 = vcombine.low %v111_v37, %v175_v38 }
 0x1dc   :  { %13500 = vmatpush3.bf16.msra.mxu1 %v14813_v39  ;;  %13507 = vmatprep.subr.bf16.mxu0 %v14814_v49  ;;  %v11869_v39 = vcombine.high %v111_v37, %v175_v38  ;;  %v14854_v49 = vld [vmem:[#allocation5 + $0xd50] sm:$0xff]   ;;  %v14882_v37 = vld [vmem:[#allocation5 + $0xe48] sm:$0xff]  }
 0x1dd   :  { %13529 = vmatprep.subr.bf16.mxu1 %v14815_v50  ;;  %v14855_v50 = vld [vmem:[#allocation5 + $0xdd0] sm:$0xff]   ;;  %v14883_v38 = vld [vmem:[#allocation5 + $0xec8] sm:$0xff]  }
 0x1de   :  { %9988 = vmatmul.mubr.bf16.vlgmr.msra.gmra.mrb[44].mxu0 %v11862_v44  ;;  %v14849_v44 = vld [vmem:[#allocation5 + $0xd80] sm:$0xff]  }
 0x1df   :  { %10029 = vmatmul.mubr.bf16.vlgmr.msra.gmra.mrb[44].mxu1 %v11864_v48  ;;  %13508 = vmatpush3.bf16.msra.mxu0 %v14816_v51  ;;  %v14852_v48 = vld [vmem:[#allocation5 + $0xd08] sm:$0xff]   ;;  %v14856_v51 = vld [vmem:[#allocation5 + $0xd10] sm:$0xff]  }
 0x1e0   :  { %13530 = vmatpush3.bf16.msra.mxu1 %v14817_v52  ;;  %13509 = vmatprep.subr.bf16.mxu0 %v14818_v53  ;;  %v14857_v52 = vld [vmem:[#allocation5 + $0xd90] sm:$0xff]   ;;  %v14858_v53 = vld [vmem:[#allocation5 + $0xd58] sm:$0xff]  }
 0x1e1   :  { %13531 = vmatprep.subr.bf16.mxu1 %v14819_v54  ;;  %10069 = vmatprep.mubr.bf16.mxu0 %v11867_v36  ;;  %v14859_v54 = vld [vmem:[#allocation5 + $0xdd8] sm:$0xff]   ;;  %v14881_v36 = vld [vmem:[#allocation5 + $0xe80] sm:$0xff]  }
 0x1e2   :  { %10110 = vmatprep.mubr.bf16.mxu1 %v11869_v39  ;;  %v14885_v39 = vld [vmem:[#allocation5 + $0xe88] sm:$0xff]  }
 0x1e3   :  { %13510 = vmatpush3.bf16.msra.mxu0 %v14820_v55 }
 0x1e4   :  { %13532 = vmatpush3.bf16.msra.mxu1 %v14821_v56  ;;  %13511 = vmatprep.subr.bf16.mxu0 %v14822_v57  ;;  %v14860_v56 = vld [vmem:[#allocation5 + $0xd18] sm:$0xff]  }
 0x1e5   :  { %13533 = vmatprep.subr.bf16.mxu1 %v14823_v58  ;;  %v14861_v58 = vld [vmem:[#allocation5 + $0xd98] sm:$0xff]  }
 0x1e7   :  { %13512 = vmatpush3.bf16.msra.mxu0 %v14824_v59 }
 0x1e8   :  { %13534 = vmatpush3.bf16.msra.mxu1 %v14825_v60  ;;  %13513 = vmatprep.subr.bf16.mxu0 %v14826_v61  ;;  %v14862_v60 = vld [vmem:[#allocation5 + $0xd60] sm:$0xff]  }
 0x1e9   :  { %13535 = vmatprep.subr.bf16.mxu1 %v14827_v62 }
 0x1eb   :  { %13514 = vmatpush3.bf16.msra.mxu0 %v14828_v0 }
 0x1ec   :  { %13536 = vmatpush3.bf16.msra.mxu1 %v14829_v2  ;;  %13515 = vmatprep.subr.bf16.mxu0 %v14830_v4  ;;  %v14864_v2 = vld [vmem:[#allocation5 + $0xd20] sm:$0xff]  }
 0x1ed   :  { %13537 = vmatprep.subr.bf16.mxu1 %v14831_v7 }
 0x1ef   :  { %13516 = vmatpush3.bf16.msra.mxu0 %v14832_v10 }
 0x1f0   :  { %13538 = vmatpush3.bf16.msra.mxu1 %v14833_v13  ;;  %13517 = vmatprep.subr.bf16.mxu0 %v14834_v16  ;;  %v14868_v13 = vld [vmem:[#allocation5 + $0xd28] sm:$0xff]  }
 0x1f1   :  { %v13215_v63 = vpop.f32.mrb[20].mxu0  ;;  %13539 = vmatprep.subr.bf16.mxu1 %v14835_v19  ;;  %v14869_v16 = vld [vmem:[#allocation5 + $0xda8] sm:$0xff]   ;;  %v14872_v19 = vld [vmem:[#allocation5 + $0xd30] sm:$0xff]  }
 0x1f2   :  { %v13237_v1 = vpop.f32.mrb[20].mxu1  ;;  %v13216_v3 = vpop.f32.mrb[21].mxu0 }
 0x1f3   :  { %v13217_v5 = vadd.f32 %v13216_v3, %v13215_v63  ;;  %v13238_v6 = vpop.f32.mrb[21].mxu1  ;;  %v13218_v9 = vpop.f32.mrb[22].mxu0  ;;  %13518 = vmatpush3.bf16.msra.mxu0 %v14836_v21  ;;  %v14863_v63 = vld [vmem:[#allocation5 + $0xde0] sm:$0xff]   ;;  %v14874_v21 = vld [vmem:[#allocation5 + $0xd78] sm:$0xff]  }
 0x1f4   :  { %v13239_v8 = vadd.f32 %v13238_v6, %v13237_v1  ;;  %v13240_v12 = vpop.f32.mrb[22].mxu1  ;;  %v13219_v14 = vpop.f32.mrb[23].mxu0  ;;  %13540 = vmatpush3.bf16.msra.mxu1 %v14837_v24  ;;  %13519 = vmatprep.subr.bf16.mxu0 %v14838_v25  ;;  %v14876_v24 = vld [vmem:[#allocation5 + $0xd38] sm:$0xff]   ;;  %v112_v25 = vld [vmem:[#allocation2 + $0xd0] sm:$0xff] }
 0x1f5   :  { %v9498_v11 = vadd.f32 %v13217_v5, %v15729_v23  ;;  %v13220_v17 = vadd.f32 %v13219_v14, %v13218_v9  ;;  %v13241_v18 = vpop.f32.mrb[23].mxu1  ;;  %13541 = vmatprep.subr.bf16.mxu1 %v14839_v26  ;;  %v14865_v5 = vld [vmem:[#allocation5 + $0xda0] sm:$0xff]   ;;  %v176_v26 = vld [vmem:[#allocation2 + $0x2d0] sm:$0xff] }
 0x1f6   :  { %v13242_v20 = vadd.f32 %v13241_v18, %v13240_v12  ;;  %v14871_v18 = vld [vmem:[#allocation5 + $0xdf0] sm:$0xff]  }
 0x1f7   :  { %v15735_v15 = vadd.f32 %v13239_v8, %v9498_v11  ;;  %v9501_v22 = vadd.f32 %v13220_v17, %v15732_v31  ;;  %13520 = vmatpush3.bf16.msra.mxu0 %v14840_v27  ;;  %v14845_v31 = vld [vmem:[#allocation5 + $0xcb8] sm:$0xff]   ;;  %v14866_v8 = vld [vmem:[#allocation5 + $0xd68] sm:$0xff]   ;;  %v14870_v17 = vld [vmem:[#allocation5 + $0xd70] sm:$0xff]  }
 0x1f8   :  { %13542 = vmatpush3.bf16.msra.mxu1 %v14841_v28  ;;  %13521 = vmatprep.subr.bf16.mxu0 %v14842_v29  ;;  %v14867_v11 = vld [vmem:[#allocation5 + $0xde8] sm:$0xff]   ;;  %v113_v27 = vld [vmem:[#allocation2 + $0xd8] sm:$0xff]  ;;  %v11870_v29 = vcombine.low %v112_v25, %v176_v26 }
 0x1f9   :  { %v15738_v23 = vadd.f32 %v13242_v20, %v9501_v22  ;;  %13543 = vmatprep.subr.bf16.mxu1 %v14843_v30  ;;  %v14873_v20 = vld [vmem:[#allocation5 + $0xdb0] sm:$0xff]   ;;  %v14875_v22 = vld [vmem:[#allocation5 + $0xdf8] sm:$0xff]   ;;  %v11871_v30 = vcombine.high %v112_v25, %v176_v26  ;;  %v14910_v25 = vld [vmem:[#allocation5 + $0xf40] sm:$0xff]  }
 0x1fa   :  { %v177_v28 = vld [vmem:[#allocation2 + $0x2d8] sm:$0xff]  ;;  %v14911_v26 = vld [vmem:[#allocation5 + $0xfc0] sm:$0xff]  }
 0x1fb   :  { %13522 = vmatpush3.bf16.msra.mxu0 %v14844_v32  ;;  %v11872_v32 = vcombine.low %v113_v27, %v177_v28 }
 0x1fc   :  { %13544 = vmatpush3.bf16.msra.mxu1 %v14845_v31  ;;  %13551 = vmatprep.subr.bf16.mxu0 %v14846_v41  ;;  %v11873_v31 = vcombine.high %v113_v27, %v177_v28  ;;  %v14886_v41 = vld [vmem:[#allocation5 + $0xe50] sm:$0xff]   ;;  %v14912_v27 = vld [vmem:[#allocation5 + $0xf00] sm:$0xff]  }
 0x1fd   :  { %13573 = vmatprep.subr.bf16.mxu1 %v14847_v42  ;;  %v14887_v42 = vld [vmem:[#allocation5 + $0xed0] sm:$0xff]   ;;  %v14913_v28 = vld [vmem:[#allocation5 + $0xf80] sm:$0xff]  }
 0x1fe   :  { %10070 = vmatmul.mubr.bf16.vlgmr.msra.gmra.mrb[48].mxu0 %v11866_v35  ;;  %v14880_v35 = vld [vmem:[#allocation5 + $0xe00] sm:$0xff]  }
 0x1ff   :  { %10111 = vmatmul.mubr.bf16.vlgmr.msra.gmra.mrb[48].mxu1 %v11868_v40  ;;  %13552 = vmatpush3.bf16.msra.mxu0 %v14848_v43  ;;  %v14884_v40 = vld [vmem:[#allocation5 + $0xe08] sm:$0xff]   ;;  %v14888_v43 = vld [vmem:[#allocation5 + $0xe10] sm:$0xff]  }
 0x200   :  { %13574 = vmatpush3.bf16.msra.mxu1 %v14849_v44  ;;  %13553 = vmatprep.subr.bf16.mxu0 %v14850_v45  ;;  %v14889_v44 = vld [vmem:[#allocation5 + $0xe90] sm:$0xff]   ;;  %v14890_v45 = vld [vmem:[#allocation5 + $0xe58] sm:$0xff]  }
 0x201   :  { %13575 = vmatprep.subr.bf16.mxu1 %v14851_v46  ;;  %10151 = vmatprep.mubr.bf16.mxu0 %v11871_v30  ;;  %v14891_v46 = vld [vmem:[#allocation5 + $0xed8] sm:$0xff]   ;;  %v14915_v30 = vld [vmem:[#allocation5 + $0xfc8] sm:$0xff]  }
 0x202   :  { %10192 = vmatprep.mubr.bf16.mxu1 %v11873_v31  ;;  %v14917_v31 = vld [vmem:[#allocation5 + $0xf88] sm:$0xff]  }
 0x203   :  { %13554 = vmatpush3.bf16.msra.mxu0 %v14852_v48  ;;  %v14892_v48 = vld [vmem:[#allocation5 + $0xe18] sm:$0xff]  }
 0x204   :  { %13576 = vmatpush3.bf16.msra.mxu1 %v14853_v47  ;;  %13555 = vmatprep.subr.bf16.mxu0 %v14854_v49  ;;  %v14893_v49 = vld [vmem:[#allocation5 + $0xe98] sm:$0xff]  }
 0x205   :  { %13577 = vmatprep.subr.bf16.mxu1 %v14855_v50 }
 0x207   :  { %13556 = vmatpush3.bf16.msra.mxu0 %v14856_v51  ;;  %v14894_v51 = vld [vmem:[#allocation5 + $0xe60] sm:$0xff]  }
 0x208   :  { %13578 = vmatpush3.bf16.msra.mxu1 %v14857_v52  ;;  %13557 = vmatprep.subr.bf16.mxu0 %v14858_v53  ;;  %v14895_v53 = vld [vmem:[#allocation5 + $0xee0] sm:$0xff]  }
 0x209   :  { %13579 = vmatprep.subr.bf16.mxu1 %v14859_v54 }
 0x20b   :  { %13558 = vmatpush3.bf16.msra.mxu0 %v14860_v56  ;;  %v14896_v56 = vld [vmem:[#allocation5 + $0xe20] sm:$0xff]  }
 0x20c   :  { %13580 = vmatpush3.bf16.msra.mxu1 %v14861_v58  ;;  %13559 = vmatprep.subr.bf16.mxu0 %v14862_v60 }
 0x20d   :  { %13581 = vmatprep.subr.bf16.mxu1 %v14863_v63 }
 0x20f   :  { %13560 = vmatpush3.bf16.msra.mxu0 %v14864_v2 }
 0x210   :  { %13582 = vmatpush3.bf16.msra.mxu1 %v14865_v5  ;;  %13561 = vmatprep.subr.bf16.mxu0 %v14866_v8 }
 0x211   :  { %v13259_v55 = vpop.f32.mrb[24].mxu0  ;;  %13583 = vmatprep.subr.bf16.mxu1 %v14867_v11  ;;  %v14904_v11 = vld [vmem:[#allocation5 + $0xe30] sm:$0xff]  }
 0x212   :  { %v13281_v57 = vpop.f32.mrb[24].mxu1  ;;  %v13260_v59 = vpop.f32.mrb[25].mxu0 }
 0x213   :  { %v13261_v61 = vadd.f32 %v13260_v59, %v13259_v55  ;;  %v13282_v62 = vpop.f32.mrb[25].mxu1  ;;  %v13262_v1 = vpop.f32.mrb[26].mxu0  ;;  %13562 = vmatpush3.bf16.msra.mxu0 %v14868_v13  ;;  %v14897_v59 = vld [vmem:[#allocation5 + $0xea0] sm:$0xff]   ;;  %v14906_v13 = vld [vmem:[#allocation5 + $0xe78] sm:$0xff]  }
 0x214   :  { %v13283_v0 = vadd.f32 %v13282_v62, %v13281_v57  ;;  %v13284_v4 = vpop.f32.mrb[26].mxu1  ;;  %v13263_v6 = vpop.f32.mrb[27].mxu0  ;;  %13584 = vmatpush3.bf16.msra.mxu1 %v14869_v16  ;;  %13563 = vmatprep.subr.bf16.mxu0 %v14870_v17  ;;  %v14898_v62 = vld [vmem:[#allocation5 + $0xe68] sm:$0xff]   ;;  %v14908_v16 = vld [vmem:[#allocation5 + $0xe38] sm:$0xff]  }
 0x215   :  { %v9580_v3 = vadd.f32 %v13261_v61, %v15735_v15  ;;  %v13264_v9 = vadd.f32 %v13263_v6, %v13262_v1  ;;  %v13285_v10 = vpop.f32.mrb[27].mxu1  ;;  %13585 = vmatprep.subr.bf16.mxu1 %v14871_v18  ;;  %v14899_v1 = vld [vmem:[#allocation5 + $0xee8] sm:$0xff]   ;;  %v14909_v17 = vld [vmem:[#allocation5 + $0xeb8] sm:$0xff]   ;;  %v114_v18 = vld [vmem:[#allocation2 + $0xe0] sm:$0xff] }
 0x216   :  { %v13286_v12 = vadd.f32 %v13285_v10, %v13284_v4  ;;  %v14900_v4 = vld [vmem:[#allocation5 + $0xe28] sm:$0xff]   ;;  %v14903_v10 = vld [vmem:[#allocation5 + $0xef0] sm:$0xff]  }
 0x217   :  { %v15741_v7 = vadd.f32 %v13283_v0, %v9580_v3  ;;  %v9583_v14 = vadd.f32 %v13264_v9, %v15738_v23  ;;  %13564 = vmatpush3.bf16.msra.mxu0 %v14872_v19  ;;  %v14877_v23 = vld [vmem:[#allocation5 + $0xdb8] sm:$0xff]   ;;  %v14901_v6 = vld [vmem:[#allocation5 + $0xea8] sm:$0xff]   ;;  %v14902_v9 = vld [vmem:[#allocation5 + $0xe70] sm:$0xff]  }
 0x218   :  { %13586 = vmatpush3.bf16.msra.mxu1 %v14873_v20  ;;  %13565 = vmatprep.subr.bf16.mxu0 %v14874_v21  ;;  %v115_v19 = vld [vmem:[#allocation2 + $0xe8] sm:$0xff] }
 0x219   :  { %v15744_v15 = vadd.f32 %v13286_v12, %v9583_v14  ;;  %13587 = vmatprep.subr.bf16.mxu1 %v14875_v22  ;;  %v14905_v12 = vld [vmem:[#allocation5 + $0xeb0] sm:$0xff]   ;;  %v14907_v14 = vld [vmem:[#allocation5 + $0xef8] sm:$0xff]   ;;  %v179_v22 = vld [vmem:[#allocation2 + $0x2e8] sm:$0xff] }
 0x21b   :  { %13566 = vmatpush3.bf16.msra.mxu0 %v14876_v24  ;;  %v11876_v24 = vcombine.low %v115_v19, %v179_v22 }
 0x21c   :  { %13588 = vmatpush3.bf16.msra.mxu1 %v14877_v23  ;;  %13595 = vmatprep.subr.bf16.mxu0 %v14878_v33  ;;  %v11877_v23 = vcombine.high %v115_v19, %v179_v22  ;;  %v14918_v33 = vld [vmem:[#allocation5 + $0xf50] sm:$0xff]   ;;  %v14944_v19 = vld [vmem:[#allocation5 + $0x1000] sm:$0xff]   ;;  %v14947_v22 = vld [vmem:[#allocation5 + $0x10c8] sm:$0xff]  }
 0x21d   :  { %13617 = vmatprep.subr.bf16.mxu1 %v14879_v34  ;;  %v14919_v34 = vld [vmem:[#allocation5 + $0xfd0] sm:$0xff]  }
 0x21e   :  { %10152 = vmatmul.mubr.bf16.vlgmr.msra.gmra.mrb[52].mxu0 %v11870_v29  ;;  %v14914_v29 = vld [vmem:[#allocation5 + $0xf48] sm:$0xff]  }
 0x21f   :  { %10193 = vmatmul.mubr.bf16.vlgmr.msra.gmra.mrb[52].mxu1 %v11872_v32  ;;  %13596 = vmatpush3.bf16.msra.mxu0 %v14880_v35  ;;  %v14916_v32 = vld [vmem:[#allocation5 + $0xf08] sm:$0xff]   ;;  %v14920_v35 = vld [vmem:[#allocation5 + $0xf10] sm:$0xff]  }
 0x220   :  { %13618 = vmatpush3.bf16.msra.mxu1 %v14881_v36  ;;  %13597 = vmatprep.subr.bf16.mxu0 %v14882_v37  ;;  %v14921_v36 = vld [vmem:[#allocation5 + $0xf90] sm:$0xff]   ;;  %v14922_v37 = vld [vmem:[#allocation5 + $0xf58] sm:$0xff]  }
 0x221   :  { %13619 = vmatprep.subr.bf16.mxu1 %v14883_v38  ;;  %10274 = vmatprep.mubr.bf16.mxu1 %v11877_v23  ;;  %v14923_v38 = vld [vmem:[#allocation5 + $0xfd8] sm:$0xff]   ;;  %v14949_v23 = vld [vmem:[#allocation5 + $0x1088] sm:$0xff]  }
 0x223   :  { %13598 = vmatpush3.bf16.msra.mxu0 %v14884_v40 }
 0x224   :  { %13620 = vmatpush3.bf16.msra.mxu1 %v14885_v39  ;;  %13599 = vmatprep.subr.bf16.mxu0 %v14886_v41  ;;  %v14924_v39 = vld [vmem:[#allocation5 + $0xf18] sm:$0xff]  }
 0x225   :  { %13621 = vmatprep.subr.bf16.mxu1 %v14887_v42  ;;  %v14925_v42 = vld [vmem:[#allocation5 + $0xf98] sm:$0xff]  }
 0x227   :  { %13600 = vmatpush3.bf16.msra.mxu0 %v14888_v43 }
 0x228   :  { %13622 = vmatpush3.bf16.msra.mxu1 %v14889_v44  ;;  %13601 = vmatprep.subr.bf16.mxu0 %v14890_v45  ;;  %v14926_v44 = vld [vmem:[#allocation5 + $0xf60] sm:$0xff]  }
 0x229   :  { %13623 = vmatprep.subr.bf16.mxu1 %v14891_v46 }
 0x22b   :  { %13602 = vmatpush3.bf16.msra.mxu0 %v14892_v48  ;;  %v14927_v48 = vld [vmem:[#allocation5 + $0xfe0] sm:$0xff]  }
 0x22c   :  { %13624 = vmatpush3.bf16.msra.mxu1 %v14893_v49  ;;  %13603 = vmatprep.subr.bf16.mxu0 %v14894_v51 }
 0x22d   :  { %13625 = vmatprep.subr.bf16.mxu1 %v14895_v53  ;;  %v14929_v53 = vld [vmem:[#allocation5 + $0xfa0] sm:$0xff]  }
 0x22f   :  { %13604 = vmatpush3.bf16.msra.mxu0 %v14896_v56  ;;  %v14930_v56 = vld [vmem:[#allocation5 + $0xf68] sm:$0xff]  }
 0x230   :  { %13626 = vmatpush3.bf16.msra.mxu1 %v14897_v59  ;;  %13605 = vmatprep.subr.bf16.mxu0 %v14898_v62  ;;  %v14931_v59 = vld [vmem:[#allocation5 + $0xfe8] sm:$0xff]  }
 0x231   :  { %v13303_v47 = vpop.f32.mrb[28].mxu0  ;;  %13627 = vmatprep.subr.bf16.mxu1 %v14899_v1  ;;  %v14934_v1 = vld [vmem:[#allocation5 + $0xf70] sm:$0xff]  }
 0x232   :  { %v13325_v50 = vpop.f32.mrb[28].mxu1  ;;  %v13304_v52 = vpop.f32.mrb[29].mxu0 }
 0x233   :  { %v13305_v54 = vadd.f32 %v13304_v52, %v13303_v47  ;;  %v13326_v55 = vpop.f32.mrb[29].mxu1  ;;  %v13306_v58 = vpop.f32.mrb[30].mxu0  ;;  %13606 = vmatpush3.bf16.msra.mxu0 %v14900_v4  ;;  %v14937_v4 = vld [vmem:[#allocation5 + $0xfb0] sm:$0xff]  }
 0x234   :  { %v13327_v57 = vadd.f32 %v13326_v55, %v13325_v50  ;;  %v13328_v61 = vpop.f32.mrb[30].mxu1  ;;  %v13307_v63 = vpop.f32.mrb[31].mxu0  ;;  %13628 = vmatpush3.bf16.msra.mxu1 %v14901_v6  ;;  %13607 = vmatprep.subr.bf16.mxu0 %v14902_v9  ;;  %v14928_v50 = vld [vmem:[#allocation5 + $0xf20] sm:$0xff]   ;;  %v14939_v6 = vld [vmem:[#allocation5 + $0xff8] sm:$0xff]  }
 0x235   :  { %v9662_v60 = vadd.f32 %v13305_v54, %v15741_v7  ;;  %v13308_v2 = vadd.f32 %v13307_v63, %v13306_v58  ;;  %v13329_v3 = vpop.f32.mrb[31].mxu1  ;;  %13629 = vmatprep.subr.bf16.mxu1 %v14903_v10  ;;  %v14933_v63 = vld [vmem:[#allocation5 + $0xfa8] sm:$0xff]   ;;  %v14941_v9 = vld [vmem:[#allocation5 + $0xfb8] sm:$0xff]   ;;  %v180_v10 = vld [vmem:[#allocation2 + $0x2f0] sm:$0xff] }
 0x236   :  { %v13330_v5 = vadd.f32 %v13329_v3, %v13328_v61  ;;  %v14932_v61 = vld [vmem:[#allocation5 + $0xf28] sm:$0xff]   ;;  %v14936_v3 = vld [vmem:[#allocation5 + $0xf30] sm:$0xff]  }
 0x237   :  { %v15747_v0 = vadd.f32 %v13327_v57, %v9662_v60  ;;  %v9665_v8 = vadd.f32 %v13308_v2, %v15744_v15  ;;  %13608 = vmatpush3.bf16.msra.mxu0 %v14904_v11  ;;  %v178_v15 = vld [vmem:[#allocation2 + $0x2e0] sm:$0xff]  ;;  %v14935_v2 = vld [vmem:[#allocation5 + $0xff0] sm:$0xff]  }
 0x238   :  { %13630 = vmatpush3.bf16.msra.mxu1 %v14905_v12  ;;  %13609 = vmatprep.subr.bf16.mxu0 %v14906_v13  ;;  %v11874_v20 = vcombine.low %v114_v18, %v178_v15  ;;  %v11875_v21 = vcombine.high %v114_v18, %v178_v15  ;;  %v117_v13 = vld [vmem:[#allocation2 + $0xf8] sm:$0xff]  ;;  %v14942_v18 = vld [vmem:[#allocation5 + $0x1040] sm:$0xff]  }
 0x239   :  { %v15750_v7 = vadd.f32 %v13330_v5, %v9665_v8  ;;  %13631 = vmatprep.subr.bf16.mxu1 %v14907_v14  ;;  %v14938_v5 = vld [vmem:[#allocation5 + $0xf78] sm:$0xff]   ;;  %v14943_v15 = vld [vmem:[#allocation5 + $0x10c0] sm:$0xff]  }
 0x23a   :  { %10233 = vmatprep.mubr.bf16.mxu0 %v11875_v21  ;;  %v14940_v8 = vld [vmem:[#allocation5 + $0xf38] sm:$0xff]   ;;  %v14946_v21 = vld [vmem:[#allocation5 + $0x1048] sm:$0xff]  }
 0x23b   :  { %13610 = vmatpush3.bf16.msra.mxu0 %v14908_v16  ;;  %v181_v14 = vld [vmem:[#allocation2 + $0x2f8] sm:$0xff] }
 0x23c   :  { %13632 = vmatpush3.bf16.msra.mxu1 %v14909_v17  ;;  %13639 = vmatprep.subr.bf16.mxu0 %v14910_v25  ;;  %v11880_v16 = vcombine.low %v117_v13, %v181_v14  ;;  %v11881_v17 = vcombine.high %v117_v13, %v181_v14  ;;  %v14950_v25 = vld [vmem:[#allocation5 + $0x1050] sm:$0xff]   ;;  %v14978_v13 = vld [vmem:[#allocation5 + $0x1148] sm:$0xff]  }
 0x23d   :  { %13661 = vmatprep.subr.bf16.mxu1 %v14911_v26  ;;  %v14951_v26 = vld [vmem:[#allocation5 + $0x10d0] sm:$0xff]   ;;  %v14979_v14 = vld [vmem:[#allocation5 + $0x11c8] sm:$0xff]  }
 0x23e   :  { %10234 = vmatmul.mubr.bf16.vlgmr.msra.gmra.mrb[56].mxu0 %v11874_v20  ;;  %v14945_v20 = vld [vmem:[#allocation5 + $0x1080] sm:$0xff]  }
 0x23f   :  { %10275 = vmatmul.mubr.bf16.vlgmr.msra.gmra.mrb[56].mxu1 %v11876_v24  ;;  %13640 = vmatpush3.bf16.msra.mxu0 %v14912_v27  ;;  %v14948_v24 = vld [vmem:[#allocation5 + $0x1008] sm:$0xff]   ;;  %v14952_v27 = vld [vmem:[#allocation5 + $0x1010] sm:$0xff]  }
 0x240   :  { %13662 = vmatpush3.bf16.msra.mxu1 %v14913_v28  ;;  %13641 = vmatprep.subr.bf16.mxu0 %v14914_v29  ;;  %v14953_v28 = vld [vmem:[#allocation5 + $0x1090] sm:$0xff]   ;;  %v14954_v29 = vld [vmem:[#allocation5 + $0x1058] sm:$0xff]  }
 0x241   :  { %13663 = vmatprep.subr.bf16.mxu1 %v14915_v30  ;;  %10356 = vmatprep.mubr.bf16.mxu1 %v11881_v17  ;;  %v14955_v30 = vld [vmem:[#allocation5 + $0x10d8] sm:$0xff]   ;;  %v14981_v17 = vld [vmem:[#allocation5 + $0x1188] sm:$0xff]  }
 0x243   :  { %13642 = vmatpush3.bf16.msra.mxu0 %v14916_v32 }
 0x244   :  { %13664 = vmatpush3.bf16.msra.mxu1 %v14917_v31  ;;  %13643 = vmatprep.subr.bf16.mxu0 %v14918_v33  ;;  %v14956_v31 = vld [vmem:[#allocation5 + $0x1018] sm:$0xff]  }
 0x245   :  { %13665 = vmatprep.subr.bf16.mxu1 %v14919_v34  ;;  %v14957_v34 = vld [vmem:[#allocation5 + $0x1098] sm:$0xff]  }
 0x247   :  { %13644 = vmatpush3.bf16.msra.mxu0 %v14920_v35 }
 0x248   :  { %13666 = vmatpush3.bf16.msra.mxu1 %v14921_v36  ;;  %13645 = vmatprep.subr.bf16.mxu0 %v14922_v37  ;;  %v14958_v36 = vld [vmem:[#allocation5 + $0x1060] sm:$0xff]  }
 0x249   :  { %13667 = vmatprep.subr.bf16.mxu1 %v14923_v38 }
 0x24b   :  { %13646 = vmatpush3.bf16.msra.mxu0 %v14924_v39 }
 0x24c   :  { %13668 = vmatpush3.bf16.msra.mxu1 %v14925_v42  ;;  %13647 = vmatprep.subr.bf16.mxu0 %v14926_v44  ;;  %v14960_v42 = vld [vmem:[#allocation5 + $0x1020] sm:$0xff]  }
 0x24d   :  { %13669 = vmatprep.subr.bf16.mxu1 %v14927_v48 }
 0x24f   :  { %13648 = vmatpush3.bf16.msra.mxu0 %v14928_v50 }
 0x250   :  { %13670 = vmatpush3.bf16.msra.mxu1 %v14929_v53  ;;  %13649 = vmatprep.subr.bf16.mxu0 %v14930_v56  ;;  %v14964_v53 = vld [vmem:[#allocation5 + $0x1028] sm:$0xff]  }
 0x251   :  { %v13347_v40 = vpop.f32.mrb[32].mxu0  ;;  %13671 = vmatprep.subr.bf16.mxu1 %v14931_v59  ;;  %v14965_v56 = vld [vmem:[#allocation5 + $0x10a8] sm:$0xff]   ;;  %v14968_v59 = vld [vmem:[#allocation5 + $0x1030] sm:$0xff]  }
 0x252   :  { %v13369_v41 = vpop.f32.mrb[32].mxu1  ;;  %v13348_v43 = vpop.f32.mrb[33].mxu0 }
 0x253   :  { %v13349_v45 = vadd.f32 %v13348_v43, %v13347_v40  ;;  %v13370_v46 = vpop.f32.mrb[33].mxu1  ;;  %v13350_v49 = vpop.f32.mrb[34].mxu0  ;;  %13650 = vmatpush3.bf16.msra.mxu0 %v14932_v61  ;;  %v14959_v40 = vld [vmem:[#allocation5 + $0x10e0] sm:$0xff]   ;;  %v14970_v61 = vld [vmem:[#allocation5 + $0x1078] sm:$0xff]  }
 0x254   :  { %v13371_v47 = vadd.f32 %v13370_v46, %v13369_v41  ;;  %v13372_v52 = vpop.f32.mrb[34].mxu1  ;;  %v13351_v54 = vpop.f32.mrb[35].mxu0  ;;  %13672 = vmatpush3.bf16.msra.mxu1 %v14933_v63  ;;  %13651 = vmatprep.subr.bf16.mxu0 %v14934_v1  ;;  %v14972_v63 = vld [vmem:[#allocation5 + $0x1038] sm:$0xff]   ;;  %v118_v1 = vld [vmem:[#allocation2 + $0x100] sm:$0xff] }
 0x255   :  { %v9744_v51 = vadd.f32 %v13349_v45, %v15747_v0  ;;  %v13352_v57 = vadd.f32 %v13351_v54, %v13350_v49  ;;  %v13373_v58 = vpop.f32.mrb[35].mxu1  ;;  %13673 = vmatprep.subr.bf16.mxu1 %v14935_v2  ;;  %v14961_v45 = vld [vmem:[#allocation5 + $0x10a0] sm:$0xff]  }
 0x256   :  { %v13374_v60 = vadd.f32 %v13373_v58, %v13372_v52  ;;  %v14967_v58 = vld [vmem:[#allocation5 + $0x10f0] sm:$0xff]   ;;  %v182_v2 = vld [vmem:[#allocation2 + $0x300] sm:$0xff] }
 0x257   :  { %v15753_v55 = vadd.f32 %v13371_v47, %v9744_v51  ;;  %v9747_v62 = vadd.f32 %v13352_v57, %v15750_v7  ;;  %13652 = vmatpush3.bf16.msra.mxu0 %v14936_v3  ;;  %v116_v7 = vld [vmem:[#allocation2 + $0xf0] sm:$0xff]  ;;  %v14962_v47 = vld [vmem:[#allocation5 + $0x1068] sm:$0xff]  }
 0x258   :  { %13674 = vmatpush3.bf16.msra.mxu1 %v14937_v4  ;;  %13653 = vmatprep.subr.bf16.mxu0 %v14938_v5  ;;  %v11878_v11 = vcombine.low %v116_v7, %v180_v10  ;;  %v11879_v12 = vcombine.high %v116_v7, %v180_v10  ;;  %v14963_v51 = vld [vmem:[#allocation5 + $0x10e8] sm:$0xff]   ;;  %v14966_v57 = vld [vmem:[#allocation5 + $0x1070] sm:$0xff]   ;;  %v11882_v5 = vcombine.low %v118_v1, %v182_v2  ;;  %v14974_v7 = vld [vmem:[#allocation5 + $0x1140] sm:$0xff]  }
 0x259   :  { %v15756_v0 = vadd.f32 %v13374_v60, %v9747_v62  ;;  %13675 = vmatprep.subr.bf16.mxu1 %v14939_v6  ;;  %v14969_v60 = vld [vmem:[#allocation5 + $0x10b0] sm:$0xff]   ;;  %v14971_v62 = vld [vmem:[#allocation5 + $0x10f8] sm:$0xff]   ;;  %v119_v3 = vld [vmem:[#allocation2 + $0x108] sm:$0xff]  ;;  %v11883_v6 = vcombine.high %v118_v1, %v182_v2 }
 0x25a   :  { %10315 = vmatprep.mubr.bf16.mxu0 %v11879_v12  ;;  %v183_v4 = vld [vmem:[#allocation2 + $0x308] sm:$0xff]  ;;  %v14975_v10 = vld [vmem:[#allocation5 + $0x11c0] sm:$0xff]  }
 0x25b   :  { %13654 = vmatpush3.bf16.msra.mxu0 %v14940_v8  ;;  %v11884_v8 = vcombine.low %v119_v3, %v183_v4  ;;  %v14977_v12 = vld [vmem:[#allocation5 + $0x1180] sm:$0xff]  }
 0x25c   :  { %13676 = vmatpush3.bf16.msra.mxu1 %v14941_v9  ;;  %13683 = vmatprep.subr.bf16.mxu0 %v14942_v18  ;;  %v11885_v9 = vcombine.high %v119_v3, %v183_v4  ;;  %v14982_v18 = vld [vmem:[#allocation5 + $0x1150] sm:$0xff]   ;;  %v15006_v1 = vld [vmem:[#allocation5 + $0x1240] sm:$0xff]  }
 0x25d   :  { %13705 = vmatprep.subr.bf16.mxu1 %v14943_v15  ;;  %v14983_v15 = vld [vmem:[#allocation5 + $0x11d0] sm:$0xff]   ;;  %v15007_v2 = vld [vmem:[#allocation5 + $0x12c0] sm:$0xff]  }
 0x25e   :  { %10316 = vmatmul.mubr.bf16.vlgmr.msra.gmra.mrb[60].mxu0 %v11878_v11  ;;  %v14976_v11 = vld [vmem:[#allocation5 + $0x1100] sm:$0xff]  }
 0x25f   :  { %10357 = vmatmul.mubr.bf16.vlgmr.msra.gmra.mrb[60].mxu1 %v11880_v16  ;;  %13684 = vmatpush3.bf16.msra.mxu0 %v14944_v19  ;;  %v14980_v16 = vld [vmem:[#allocation5 + $0x1108] sm:$0xff]   ;;  %v14984_v19 = vld [vmem:[#allocation5 + $0x1110] sm:$0xff]   ;;  %v15008_v3 = vld [vmem:[#allocation5 + $0x1200] sm:$0xff]  }
 0x260   :  { %13706 = vmatpush3.bf16.msra.mxu1 %v14945_v20  ;;  %13685 = vmatprep.subr.bf16.mxu0 %v14946_v21  ;;  %v14985_v20 = vld [vmem:[#allocation5 + $0x1190] sm:$0xff]   ;;  %v14986_v21 = vld [vmem:[#allocation5 + $0x1158] sm:$0xff]   ;;  %v15009_v4 = vld [vmem:[#allocation5 + $0x1280] sm:$0xff]  }
 0x261   :  { %13707 = vmatprep.subr.bf16.mxu1 %v14947_v22  ;;  %10397 = vmatprep.mubr.bf16.mxu0 %v11883_v6  ;;  %v14987_v22 = vld [vmem:[#allocation5 + $0x11d8] sm:$0xff]   ;;  %v15011_v6 = vld [vmem:[#allocation5 + $0x12c8] sm:$0xff]  }
 0x262   :  { %10438 = vmatprep.mubr.bf16.mxu1 %v11885_v9  ;;  %v15013_v9 = vld [vmem:[#allocation5 + $0x1288] sm:$0xff]  }
 0x263   :  { %13686 = vmatpush3.bf16.msra.mxu0 %v14948_v24  ;;  %v14988_v24 = vld [vmem:[#allocation5 + $0x1118] sm:$0xff]  }
 0x264   :  { %13708 = vmatpush3.bf16.msra.mxu1 %v14949_v23  ;;  %13687 = vmatprep.subr.bf16.mxu0 %v14950_v25  ;;  %v14989_v25 = vld [vmem:[#allocation5 + $0x1198] sm:$0xff]  }
 0x265   :  { %13709 = vmatprep.subr.bf16.mxu1 %v14951_v26 }
 0x267   :  { %13688 = vmatpush3.bf16.msra.mxu0 %v14952_v27  ;;  %v14990_v27 = vld [vmem:[#allocation5 + $0x1160] sm:$0xff]  }
 0x268   :  { %13710 = vmatpush3.bf16.msra.mxu1 %v14953_v28  ;;  %13689 = vmatprep.subr.bf16.mxu0 %v14954_v29  ;;  %v14991_v29 = vld [vmem:[#allocation5 + $0x11e0] sm:$0xff]  }
 0x269   :  { %13711 = vmatprep.subr.bf16.mxu1 %v14955_v30 }
 0x26b   :  { %13690 = vmatpush3.bf16.msra.mxu0 %v14956_v31  ;;  %v14992_v31 = vld [vmem:[#allocation5 + $0x1120] sm:$0xff]  }
 0x26c   :  { %13712 = vmatpush3.bf16.msra.mxu1 %v14957_v34  ;;  %13691 = vmatprep.subr.bf16.mxu0 %v14958_v36 }
 0x26d   :  { %13713 = vmatprep.subr.bf16.mxu1 %v14959_v40 }
 0x26f   :  { %13692 = vmatpush3.bf16.msra.mxu0 %v14960_v42 }
 0x270   :  { %13714 = vmatpush3.bf16.msra.mxu1 %v14961_v45  ;;  %13693 = vmatprep.subr.bf16.mxu0 %v14962_v47 }
 0x271   :  { %v13391_v32 = vpop.f32.mrb[36].mxu0  ;;  %13715 = vmatprep.subr.bf16.mxu1 %v14963_v51  ;;  %v15000_v51 = vld [vmem:[#allocation5 + $0x1130] sm:$0xff]  }
 0x272   :  { %v13413_v33 = vpop.f32.mrb[36].mxu1  ;;  %v13392_v35 = vpop.f32.mrb[37].mxu0 }
 0x273   :  { %v13393_v37 = vadd.f32 %v13392_v35, %v13391_v32  ;;  %v13414_v38 = vpop.f32.mrb[37].mxu1  ;;  %v13394_v41 = vpop.f32.mrb[38].mxu0  ;;  %13694 = vmatpush3.bf16.msra.mxu0 %v14964_v53  ;;  %v14993_v35 = vld [vmem:[#allocation5 + $0x11a0] sm:$0xff]   ;;  %v15002_v53 = vld [vmem:[#allocation5 + $0x1178] sm:$0xff]  }
 0x274   :  { %v13415_v39 = vadd.f32 %v13414_v38, %v13413_v33  ;;  %v13416_v44 = vpop.f32.mrb[38].mxu1  ;;  %v13395_v46 = vpop.f32.mrb[39].mxu0  ;;  %13716 = vmatpush3.bf16.msra.mxu1 %v14965_v56  ;;  %13695 = vmatprep.subr.bf16.mxu0 %v14966_v57  ;;  %v14994_v38 = vld [vmem:[#allocation5 + $0x1168] sm:$0xff]   ;;  %v15004_v56 = vld [vmem:[#allocation5 + $0x1138] sm:$0xff]  }
 0x275   :  { %v9826_v43 = vadd.f32 %v13393_v37, %v15753_v55  ;;  %v13396_v49 = vadd.f32 %v13395_v46, %v13394_v41  ;;  %v13417_v50 = vpop.f32.mrb[39].mxu1  ;;  %13717 = vmatprep.subr.bf16.mxu1 %v14967_v58  ;;  %v14995_v41 = vld [vmem:[#allocation5 + $0x11e8] sm:$0xff]   ;;  %v15005_v57 = vld [vmem:[#allocation5 + $0x11b8] sm:$0xff]   ;;  %v120_v58 = vld [vmem:[#allocation2 + $0x110] sm:$0xff] }
 0x276   :  { %v13418_v52 = vadd.f32 %v13417_v50, %v13416_v44  ;;  %v14996_v44 = vld [vmem:[#allocation5 + $0x1128] sm:$0xff]   ;;  %v14999_v50 = vld [vmem:[#allocation5 + $0x11f0] sm:$0xff]  }
 0x277   :  { %v15759_v48 = vadd.f32 %v13415_v39, %v9826_v43  ;;  %v9829_v54 = vadd.f32 %v13396_v49, %v15756_v0  ;;  %13696 = vmatpush3.bf16.msra.mxu0 %v14968_v59  ;;  %v14973_v0 = vld [vmem:[#allocation5 + $0x10b8] sm:$0xff]   ;;  %v14997_v46 = vld [vmem:[#allocation5 + $0x11a8] sm:$0xff]   ;;  %v14998_v49 = vld [vmem:[#allocation5 + $0x1170] sm:$0xff]  }
 0x278   :  { %13718 = vmatpush3.bf16.msra.mxu1 %v14969_v60  ;;  %13697 = vmatprep.subr.bf16.mxu0 %v14970_v61  ;;  %v121_v59 = vld [vmem:[#allocation2 + $0x118] sm:$0xff] }
 0x279   :  { %v15762_v55 = vadd.f32 %v13418_v52, %v9829_v54  ;;  %13719 = vmatprep.subr.bf16.mxu1 %v14971_v62  ;;  %v15001_v52 = vld [vmem:[#allocation5 + $0x11b0] sm:$0xff]   ;;  %v15003_v54 = vld [vmem:[#allocation5 + $0x11f8] sm:$0xff]  }
 0x27a   :  { %v185_v62 = vld [vmem:[#allocation2 + $0x318] sm:$0xff] }
 0x27b   :  { %13698 = vmatpush3.bf16.msra.mxu0 %v14972_v63  ;;  %v11888_v63 = vcombine.low %v121_v59, %v185_v62 }
 0x27c   :  { %13720 = vmatpush3.bf16.msra.mxu1 %v14973_v0  ;;  %13727 = vmatprep.subr.bf16.mxu0 %v14974_v7  ;;  %v11889_v0 = vcombine.high %v121_v59, %v185_v62  ;;  %v15014_v7 = vld [vmem:[#allocation5 + $0x1250] sm:$0xff]   ;;  %v15040_v59 = vld [vmem:[#allocation5 + $0x1300] sm:$0xff]   ;;  %v15043_v62 = vld [vmem:[#allocation5 + $0x13c8] sm:$0xff]  }
 0x27d   :  { %13749 = vmatprep.subr.bf16.mxu1 %v14975_v10  ;;  %v15015_v10 = vld [vmem:[#allocation5 + $0x12d0] sm:$0xff]  }
 0x27e   :  { %10398 = vmatmul.mubr.bf16.vlgmr.msra.gmra.mrb[64].mxu0 %v11882_v5  ;;  %v15010_v5 = vld [vmem:[#allocation5 + $0x1248] sm:$0xff]  }
 0x27f   :  { %10439 = vmatmul.mubr.bf16.vlgmr.msra.gmra.mrb[64].mxu1 %v11884_v8  ;;  %13728 = vmatpush3.bf16.msra.mxu0 %v14976_v11  ;;  %v15012_v8 = vld [vmem:[#allocation5 + $0x1208] sm:$0xff]   ;;  %v15016_v11 = vld [vmem:[#allocation5 + $0x1210] sm:$0xff]  }
 0x280   :  { %13750 = vmatpush3.bf16.msra.mxu1 %v14977_v12  ;;  %13729 = vmatprep.subr.bf16.mxu0 %v14978_v13  ;;  %v15017_v12 = vld [vmem:[#allocation5 + $0x1290] sm:$0xff]   ;;  %v15018_v13 = vld [vmem:[#allocation5 + $0x1258] sm:$0xff]  }
 0x281   :  { %13751 = vmatprep.subr.bf16.mxu1 %v14979_v14  ;;  %10520 = vmatprep.mubr.bf16.mxu1 %v11889_v0  ;;  %v15019_v14 = vld [vmem:[#allocation5 + $0x12d8] sm:$0xff]   ;;  %v15045_v0 = vld [vmem:[#allocation5 + $0x1388] sm:$0xff]  }
 0x283   :  { %13730 = vmatpush3.bf16.msra.mxu0 %v14980_v16 }
 0x284   :  { %13752 = vmatpush3.bf16.msra.mxu1 %v14981_v17  ;;  %13731 = vmatprep.subr.bf16.mxu0 %v14982_v18  ;;  %v15020_v17 = vld [vmem:[#allocation5 + $0x1218] sm:$0xff]  }
 0x285   :  { %13753 = vmatprep.subr.bf16.mxu1 %v14983_v15  ;;  %v15021_v15 = vld [vmem:[#allocation5 + $0x1298] sm:$0xff]  }
 0x287   :  { %13732 = vmatpush3.bf16.msra.mxu0 %v14984_v19 }
 0x288   :  { %13754 = vmatpush3.bf16.msra.mxu1 %v14985_v20  ;;  %13733 = vmatprep.subr.bf16.mxu0 %v14986_v21  ;;  %v15022_v20 = vld [vmem:[#allocation5 + $0x1260] sm:$0xff]  }
 0x289   :  { %13755 = vmatprep.subr.bf16.mxu1 %v14987_v22 }
 0x28b   :  { %13734 = vmatpush3.bf16.msra.mxu0 %v14988_v24  ;;  %v15023_v24 = vld [vmem:[#allocation5 + $0x12e0] sm:$0xff]  }
 0x28c   :  { %13756 = vmatpush3.bf16.msra.mxu1 %v14989_v25  ;;  %13735 = vmatprep.subr.bf16.mxu0 %v14990_v27 }
 0x28d   :  { %13757 = vmatprep.subr.bf16.mxu1 %v14991_v29  ;;  %v15025_v29 = vld [vmem:[#allocation5 + $0x12a0] sm:$0xff]  }
 0x28f   :  { %13736 = vmatpush3.bf16.msra.mxu0 %v14992_v31  ;;  %v15026_v31 = vld [vmem:[#allocation5 + $0x1268] sm:$0xff]  }
 0x290   :  { %13758 = vmatpush3.bf16.msra.mxu1 %v14993_v35  ;;  %13737 = vmatprep.subr.bf16.mxu0 %v14994_v38  ;;  %v15027_v35 = vld [vmem:[#allocation5 + $0x12e8] sm:$0xff]  }
 0x291   :  { %v13435_v23 = vpop.f32.mrb[40].mxu0  ;;  %13759 = vmatprep.subr.bf16.mxu1 %v14995_v41  ;;  %v15030_v41 = vld [vmem:[#allocation5 + $0x1270] sm:$0xff]  }
 0x292   :  { %v13457_v26 = vpop.f32.mrb[40].mxu1  ;;  %v13436_v28 = vpop.f32.mrb[41].mxu0 }
 0x293   :  { %v13437_v30 = vadd.f32 %v13436_v28, %v13435_v23  ;;  %v13458_v32 = vpop.f32.mrb[41].mxu1  ;;  %v13438_v34 = vpop.f32.mrb[42].mxu0  ;;  %13738 = vmatpush3.bf16.msra.mxu0 %v14996_v44  ;;  %v15033_v44 = vld [vmem:[#allocation5 + $0x12b0] sm:$0xff]  }
 0x294   :  { %v13459_v33 = vadd.f32 %v13458_v32, %v13457_v26  ;;  %v13460_v37 = vpop.f32.mrb[42].mxu1  ;;  %v13439_v40 = vpop.f32.mrb[43].mxu0  ;;  %13760 = vmatpush3.bf16.msra.mxu1 %v14997_v46  ;;  %13739 = vmatprep.subr.bf16.mxu0 %v14998_v49  ;;  %v15024_v26 = vld [vmem:[#allocation5 + $0x1220] sm:$0xff]   ;;  %v15035_v46 = vld [vmem:[#allocation5 + $0x12f8] sm:$0xff]  }
 0x295   :  { %v9908_v36 = vadd.f32 %v13437_v30, %v15759_v48  ;;  %v13440_v42 = vadd.f32 %v13439_v40, %v13438_v34  ;;  %v13461_v43 = vpop.f32.mrb[43].mxu1  ;;  %13761 = vmatprep.subr.bf16.mxu1 %v14999_v50  ;;  %v15029_v40 = vld [vmem:[#allocation5 + $0x12a8] sm:$0xff]   ;;  %v15037_v49 = vld [vmem:[#allocation5 + $0x12b8] sm:$0xff]   ;;  %v186_v50 = vld [vmem:[#allocation2 + $0x320] sm:$0xff] }
 0x296   :  { %v13462_v45 = vadd.f32 %v13461_v43, %v13460_v37  ;;  %v15028_v37 = vld [vmem:[#allocation5 + $0x1228] sm:$0xff]   ;;  %v15032_v43 = vld [vmem:[#allocation5 + $0x1230] sm:$0xff]  }
 0x297   :  { %v15765_v39 = vadd.f32 %v13459_v33, %v9908_v36  ;;  %v9911_v47 = vadd.f32 %v13440_v42, %v15762_v55  ;;  %13740 = vmatpush3.bf16.msra.mxu0 %v15000_v51  ;;  %v184_v55 = vld [vmem:[#allocation2 + $0x310] sm:$0xff] }
 0x298   :  { %13762 = vmatpush3.bf16.msra.mxu1 %v15001_v52  ;;  %13741 = vmatprep.subr.bf16.mxu0 %v15002_v53  ;;  %v11886_v60 = vcombine.low %v120_v58, %v184_v55  ;;  %v11887_v61 = vcombine.high %v120_v58, %v184_v55  ;;  %v15031_v42 = vld [vmem:[#allocation5 + $0x12f0] sm:$0xff]   ;;  %v123_v53 = vld [vmem:[#allocation2 + $0x128] sm:$0xff]  ;;  %v15038_v58 = vld [vmem:[#allocation5 + $0x1340] sm:$0xff]  }
 0x299   :  { %v15768_v48 = vadd.f32 %v13462_v45, %v9911_v47  ;;  %13763 = vmatprep.subr.bf16.mxu1 %v15003_v54  ;;  %v15034_v45 = vld [vmem:[#allocation5 + $0x1278] sm:$0xff]   ;;  %v187_v54 = vld [vmem:[#allocation2 + $0x328] sm:$0xff]  ;;  %v15039_v55 = vld [vmem:[#allocation5 + $0x13c0] sm:$0xff]  }
 0x29a   :  { %10479 = vmatprep.mubr.bf16.mxu0 %v11887_v61  ;;  %v15036_v47 = vld [vmem:[#allocation5 + $0x1238] sm:$0xff]   ;;  %v15042_v61 = vld [vmem:[#allocation5 + $0x1348] sm:$0xff]  }
 0x29b   :  { %13742 = vmatpush3.bf16.msra.mxu0 %v15004_v56  ;;  %v11892_v56 = vcombine.low %v123_v53, %v187_v54 }
 0x29c   :  { %13764 = vmatpush3.bf16.msra.mxu1 %v15005_v57  ;;  %13771 = vmatprep.subr.bf16.mxu0 %v15006_v1  ;;  %v11893_v57 = vcombine.high %v123_v53, %v187_v54  ;;  %v15046_v1 = vld [vmem:[#allocation5 + $0x1350] sm:$0xff]   ;;  %v15074_v53 = vld [vmem:[#allocation5 + $0x1448] sm:$0xff]  }
 0x29d   :  { %13793 = vmatprep.subr.bf16.mxu1 %v15007_v2  ;;  %v15047_v2 = vld [vmem:[#allocation5 + $0x13d0] sm:$0xff]   ;;  %v15075_v54 = vld [vmem:[#allocation5 + $0x14c8] sm:$0xff]  }
 0x29e   :  { %10480 = vmatmul.mubr.bf16.vlgmr.msra.gmra.mrb[68].mxu0 %v11886_v60  ;;  %v15041_v60 = vld [vmem:[#allocation5 + $0x1380] sm:$0xff]  }
 0x29f   :  { %10521 = vmatmul.mubr.bf16.vlgmr.msra.gmra.mrb[68].mxu1 %v11888_v63  ;;  %13772 = vmatpush3.bf16.msra.mxu0 %v15008_v3  ;;  %v15044_v63 = vld [vmem:[#allocation5 + $0x1308] sm:$0xff]   ;;  %v15048_v3 = vld [vmem:[#allocation5 + $0x1310] sm:$0xff]  }
 0x2a0   :  { %13794 = vmatpush3.bf16.msra.mxu1 %v15009_v4  ;;  %13773 = vmatprep.subr.bf16.mxu0 %v15010_v5  ;;  %v15049_v4 = vld [vmem:[#allocation5 + $0x1390] sm:$0xff]   ;;  %v15050_v5 = vld [vmem:[#allocation5 + $0x1358] sm:$0xff]  }
 0x2a1   :  { %13795 = vmatprep.subr.bf16.mxu1 %v15011_v6  ;;  %10602 = vmatprep.mubr.bf16.mxu1 %v11893_v57  ;;  %v15051_v6 = vld [vmem:[#allocation5 + $0x13d8] sm:$0xff]   ;;  %v15077_v57 = vld [vmem:[#allocation5 + $0x1488] sm:$0xff]  }
 0x2a3   :  { %13774 = vmatpush3.bf16.msra.mxu0 %v15012_v8 }
 0x2a4   :  { %13796 = vmatpush3.bf16.msra.mxu1 %v15013_v9  ;;  %13775 = vmatprep.subr.bf16.mxu0 %v15014_v7  ;;  %v15052_v9 = vld [vmem:[#allocation5 + $0x1318] sm:$0xff]  }
 0x2a5   :  { %13797 = vmatprep.subr.bf16.mxu1 %v15015_v10  ;;  %v15053_v10 = vld [vmem:[#allocation5 + $0x1398] sm:$0xff]  }
 0x2a7   :  { %13776 = vmatpush3.bf16.msra.mxu0 %v15016_v11 }
 0x2a8   :  { %13798 = vmatpush3.bf16.msra.mxu1 %v15017_v12  ;;  %13777 = vmatprep.subr.bf16.mxu0 %v15018_v13  ;;  %v15054_v12 = vld [vmem:[#allocation5 + $0x1360] sm:$0xff]  }
 0x2a9   :  { %13799 = vmatprep.subr.bf16.mxu1 %v15019_v14 }
 0x2ab   :  { %13778 = vmatpush3.bf16.msra.mxu0 %v15020_v17 }
 0x2ac   :  { %13800 = vmatpush3.bf16.msra.mxu1 %v15021_v15  ;;  %13779 = vmatprep.subr.bf16.mxu0 %v15022_v20  ;;  %v15056_v15 = vld [vmem:[#allocation5 + $0x1320] sm:$0xff]  }
 0x2ad   :  { %13801 = vmatprep.subr.bf16.mxu1 %v15023_v24 }
 0x2af   :  { %13780 = vmatpush3.bf16.msra.mxu0 %v15024_v26 }
 0x2b0   :  { %13802 = vmatpush3.bf16.msra.mxu1 %v15025_v29  ;;  %13781 = vmatprep.subr.bf16.mxu0 %v15026_v31  ;;  %v15060_v29 = vld [vmem:[#allocation5 + $0x1328] sm:$0xff]  }
 0x2b1   :  { %v13479_v16 = vpop.f32.mrb[44].mxu0  ;;  %13803 = vmatprep.subr.bf16.mxu1 %v15027_v35  ;;  %v15061_v31 = vld [vmem:[#allocation5 + $0x13a8] sm:$0xff]   ;;  %v15064_v35 = vld [vmem:[#allocation5 + $0x1330] sm:$0xff]  }
 0x2b2   :  { %v13501_v18 = vpop.f32.mrb[44].mxu1  ;;  %v13480_v19 = vpop.f32.mrb[45].mxu0 }
 0x2b3   :  { %v13481_v21 = vadd.f32 %v13480_v19, %v13479_v16  ;;  %v13502_v22 = vpop.f32.mrb[45].mxu1  ;;  %v13482_v25 = vpop.f32.mrb[46].mxu0  ;;  %13782 = vmatpush3.bf16.msra.mxu0 %v15028_v37  ;;  %v15055_v16 = vld [vmem:[#allocation5 + $0x13e0] sm:$0xff]   ;;  %v15066_v37 = vld [vmem:[#allocation5 + $0x1378] sm:$0xff]  }
 0x2b4   :  { %v13503_v23 = vadd.f32 %v13502_v22, %v13501_v18  ;;  %v13504_v28 = vpop.f32.mrb[46].mxu1  ;;  %v13483_v30 = vpop.f32.mrb[47].mxu0  ;;  %13804 = vmatpush3.bf16.msra.mxu1 %v15029_v40  ;;  %13783 = vmatprep.subr.bf16.mxu0 %v15030_v41  ;;  %v15068_v40 = vld [vmem:[#allocation5 + $0x1338] sm:$0xff]   ;;  %v124_v41 = vld [vmem:[#allocation2 + $0x130] sm:$0xff] }
 0x2b5   :  { %v9990_v27 = vadd.f32 %v13481_v21, %v15765_v39  ;;  %v13484_v33 = vadd.f32 %v13483_v30, %v13482_v25  ;;  %v13505_v34 = vpop.f32.mrb[47].mxu1  ;;  %13805 = vmatprep.subr.bf16.mxu1 %v15031_v42  ;;  %v15057_v21 = vld [vmem:[#allocation5 + $0x13a0] sm:$0xff]   ;;  %v188_v42 = vld [vmem:[#allocation2 + $0x330] sm:$0xff] }
 0x2b6   :  { %v13506_v36 = vadd.f32 %v13505_v34, %v13504_v28  ;;  %v15063_v34 = vld [vmem:[#allocation5 + $0x13f0] sm:$0xff]  }
 0x2b7   :  { %v15771_v32 = vadd.f32 %v13503_v23, %v9990_v27  ;;  %v9993_v38 = vadd.f32 %v13484_v33, %v15768_v48  ;;  %13784 = vmatpush3.bf16.msra.mxu0 %v15032_v43  ;;  %v122_v48 = vld [vmem:[#allocation2 + $0x120] sm:$0xff]  ;;  %v15058_v23 = vld [vmem:[#allocation5 + $0x1368] sm:$0xff]   ;;  %v15062_v33 = vld [vmem:[#allocation5 + $0x1370] sm:$0xff]  }
 0x2b8   :  { %13806 = vmatpush3.bf16.msra.mxu1 %v15033_v44  ;;  %13785 = vmatprep.subr.bf16.mxu0 %v15034_v45  ;;  %v11890_v51 = vcombine.low %v122_v48, %v186_v50  ;;  %v11891_v52 = vcombine.high %v122_v48, %v186_v50  ;;  %v15059_v27 = vld [vmem:[#allocation5 + $0x13e8] sm:$0xff]   ;;  %v125_v43 = vld [vmem:[#allocation2 + $0x138] sm:$0xff]  ;;  %v11894_v45 = vcombine.low %v124_v41, %v188_v42  ;;  %v15070_v48 = vld [vmem:[#allocation5 + $0x1440] sm:$0xff]  }
 0x2b9   :  { %v15774_v39 = vadd.f32 %v13506_v36, %v9993_v38  ;;  %13807 = vmatprep.subr.bf16.mxu1 %v15035_v46  ;;  %v15065_v36 = vld [vmem:[#allocation5 + $0x13b0] sm:$0xff]   ;;  %v15067_v38 = vld [vmem:[#allocation5 + $0x13f8] sm:$0xff]   ;;  %v11895_v46 = vcombine.high %v124_v41, %v188_v42  ;;  %v15071_v50 = vld [vmem:[#allocation5 + $0x14c0] sm:$0xff]  }
 0x2ba   :  { %10561 = vmatprep.mubr.bf16.mxu0 %v11891_v52  ;;  %v189_v44 = vld [vmem:[#allocation2 + $0x338] sm:$0xff]  ;;  %v15073_v52 = vld [vmem:[#allocation5 + $0x1480] sm:$0xff]  }
 0x2bb   :  { %13786 = vmatpush3.bf16.msra.mxu0 %v15036_v47  ;;  %v11896_v47 = vcombine.low %v125_v43, %v189_v44  ;;  %v15102_v41 = vld [vmem:[#allocation5 + $0x1540] sm:$0xff]  }
 0x2bc   :  { %13808 = vmatpush3.bf16.msra.mxu1 %v15037_v49  ;;  %13815 = vmatprep.subr.bf16.mxu0 %v15038_v58  ;;  %v11897_v49 = vcombine.high %v125_v43, %v189_v44  ;;  %v15078_v58 = vld [vmem:[#allocation5 + $0x1450] sm:$0xff]   ;;  %v15103_v42 = vld [vmem:[#allocation5 + $0x15c0] sm:$0xff]  }
 0x2bd   :  { %13837 = vmatprep.subr.bf16.mxu1 %v15039_v55  ;;  %v15079_v55 = vld [vmem:[#allocation5 + $0x14d0] sm:$0xff]   ;;  %v15104_v43 = vld [vmem:[#allocation5 + $0x1500] sm:$0xff]  }
 0x2be   :  { %10562 = vmatmul.mubr.bf16.vlgmr.msra.gmra.mrb[72].mxu0 %v11890_v51  ;;  %v15072_v51 = vld [vmem:[#allocation5 + $0x1400] sm:$0xff]  }
 0x2bf   :  { %10603 = vmatmul.mubr.bf16.vlgmr.msra.gmra.mrb[72].mxu1 %v11892_v56  ;;  %13816 = vmatpush3.bf16.msra.mxu0 %v15040_v59  ;;  %v15076_v56 = vld [vmem:[#allocation5 + $0x1408] sm:$0xff]   ;;  %v15080_v59 = vld [vmem:[#allocation5 + $0x1410] sm:$0xff]   ;;  %v15105_v44 = vld [vmem:[#allocation5 + $0x1580] sm:$0xff]  }
 0x2c0   :  { %13838 = vmatpush3.bf16.msra.mxu1 %v15041_v60  ;;  %13817 = vmatprep.subr.bf16.mxu0 %v15042_v61  ;;  %v15081_v60 = vld [vmem:[#allocation5 + $0x1490] sm:$0xff]   ;;  %v15082_v61 = vld [vmem:[#allocation5 + $0x1458] sm:$0xff]  }
 0x2c1   :  { %13839 = vmatprep.subr.bf16.mxu1 %v15043_v62  ;;  %10643 = vmatprep.mubr.bf16.mxu0 %v11895_v46  ;;  %v15083_v62 = vld [vmem:[#allocation5 + $0x14d8] sm:$0xff]   ;;  %v15107_v46 = vld [vmem:[#allocation5 + $0x15c8] sm:$0xff]  }
 0x2c2   :  { %10684 = vmatprep.mubr.bf16.mxu1 %v11897_v49  ;;  %v15109_v49 = vld [vmem:[#allocation5 + $0x1588] sm:$0xff]  }
 0x2c3   :  { %13818 = vmatpush3.bf16.msra.mxu0 %v15044_v63  ;;  %v15084_v63 = vld [vmem:[#allocation5 + $0x1418] sm:$0xff]  }
 0x2c4   :  { %13840 = vmatpush3.bf16.msra.mxu1 %v15045_v0  ;;  %13819 = vmatprep.subr.bf16.mxu0 %v15046_v1  ;;  %v15085_v1 = vld [vmem:[#allocation5 + $0x1498] sm:$0xff]  }
 0x2c5   :  { %13841 = vmatprep.subr.bf16.mxu1 %v15047_v2 }
 0x2c7   :  { %13820 = vmatpush3.bf16.msra.mxu0 %v15048_v3  ;;  %v15086_v3 = vld [vmem:[#allocation5 + $0x1460] sm:$0xff]  }
 0x2c8   :  { %13842 = vmatpush3.bf16.msra.mxu1 %v15049_v4  ;;  %13821 = vmatprep.subr.bf16.mxu0 %v15050_v5  ;;  %v15087_v5 = vld [vmem:[#allocation5 + $0x14e0] sm:$0xff]  }
 0x2c9   :  { %13843 = vmatprep.subr.bf16.mxu1 %v15051_v6 }
 0x2cb   :  { %13822 = vmatpush3.bf16.msra.mxu0 %v15052_v9  ;;  %v15088_v9 = vld [vmem:[#allocation5 + $0x1420] sm:$0xff]  }
 0x2cc   :  { %13844 = vmatpush3.bf16.msra.mxu1 %v15053_v10  ;;  %13823 = vmatprep.subr.bf16.mxu0 %v15054_v12 }
 0x2cd   :  { %13845 = vmatprep.subr.bf16.mxu1 %v15055_v16 }
 0x2cf   :  { %13824 = vmatpush3.bf16.msra.mxu0 %v15056_v15 }
 0x2d0   :  { %13846 = vmatpush3.bf16.msra.mxu1 %v15057_v21  ;;  %13825 = vmatprep.subr.bf16.mxu0 %v15058_v23 }
 0x2d1   :  { %v13523_v8 = vpop.f32.mrb[48].mxu0  ;;  %13847 = vmatprep.subr.bf16.mxu1 %v15059_v27  ;;  %v15096_v27 = vld [vmem:[#allocation5 + $0x1430] sm:$0xff]  }
 0x2d2   :  { %v13545_v7 = vpop.f32.mrb[48].mxu1  ;;  %v13524_v11 = vpop.f32.mrb[49].mxu0 }
 0x2d3   :  { %v13525_v13 = vadd.f32 %v13524_v11, %v13523_v8  ;;  %v13546_v14 = vpop.f32.mrb[49].mxu1  ;;  %v13526_v18 = vpop.f32.mrb[50].mxu0  ;;  %13826 = vmatpush3.bf16.msra.mxu0 %v15060_v29  ;;  %v15089_v11 = vld [vmem:[#allocation5 + $0x14a0] sm:$0xff]   ;;  %v15098_v29 = vld [vmem:[#allocation5 + $0x1478] sm:$0xff]  }
 0x2d4   :  { %v13547_v17 = vadd.f32 %v13546_v14, %v13545_v7  ;;  %v13548_v20 = vpop.f32.mrb[50].mxu1  ;;  %v13527_v22 = vpop.f32.mrb[51].mxu0  ;;  %13848 = vmatpush3.bf16.msra.mxu1 %v15061_v31  ;;  %13827 = vmatprep.subr.bf16.mxu0 %v15062_v33  ;;  %v15090_v14 = vld [vmem:[#allocation5 + $0x1468] sm:$0xff]   ;;  %v15100_v31 = vld [vmem:[#allocation5 + $0x1438] sm:$0xff]  }
 0x2d5   :  { %v10072_v19 = vadd.f32 %v13525_v13, %v15771_v32  ;;  %v13528_v25 = vadd.f32 %v13527_v22, %v13526_v18  ;;  %v13549_v26 = vpop.f32.mrb[51].mxu1  ;;  %13849 = vmatprep.subr.bf16.mxu1 %v15063_v34  ;;  %v15091_v18 = vld [vmem:[#allocation5 + $0x14e8] sm:$0xff]   ;;  %v15101_v33 = vld [vmem:[#allocation5 + $0x14b8] sm:$0xff]   ;;  %v126_v34 = vld [vmem:[#allocation2 + $0x140] sm:$0xff] }
 0x2d6   :  { %v13550_v28 = vadd.f32 %v13549_v26, %v13548_v20  ;;  %v15092_v20 = vld [vmem:[#allocation5 + $0x1428] sm:$0xff]   ;;  %v15095_v26 = vld [vmem:[#allocation5 + $0x14f0] sm:$0xff]  }
 0x2d7   :  { %v15777_v24 = vadd.f32 %v13547_v17, %v10072_v19  ;;  %v10075_v30 = vadd.f32 %v13528_v25, %v15774_v39  ;;  %13828 = vmatpush3.bf16.msra.mxu0 %v15064_v35  ;;  %v15069_v39 = vld [vmem:[#allocation5 + $0x13b8] sm:$0xff]   ;;  %v15093_v22 = vld [vmem:[#allocation5 + $0x14a8] sm:$0xff]   ;;  %v15094_v25 = vld [vmem:[#allocation5 + $0x1470] sm:$0xff]  }
 0x2d8   :  { %13850 = vmatpush3.bf16.msra.mxu1 %v15065_v36  ;;  %13829 = vmatprep.subr.bf16.mxu0 %v15066_v37  ;;  %v127_v35 = vld [vmem:[#allocation2 + $0x148] sm:$0xff] }
 0x2d9   :  { %v15780_v32 = vadd.f32 %v13550_v28, %v10075_v30  ;;  %13851 = vmatprep.subr.bf16.mxu1 %v15067_v38  ;;  %v15097_v28 = vld [vmem:[#allocation5 + $0x14b0] sm:$0xff]   ;;  %v15099_v30 = vld [vmem:[#allocation5 + $0x14f8] sm:$0xff]   ;;  %v191_v38 = vld [vmem:[#allocation2 + $0x348] sm:$0xff] }
 0x2db   :  { %13830 = vmatpush3.bf16.msra.mxu0 %v15068_v40  ;;  %v11900_v40 = vcombine.low %v127_v35, %v191_v38 }
 0x2dc   :  { %13852 = vmatpush3.bf16.msra.mxu1 %v15069_v39  ;;  %13859 = vmatprep.subr.bf16.mxu0 %v15070_v48  ;;  %v11901_v39 = vcombine.high %v127_v35, %v191_v38  ;;  %v15110_v48 = vld [vmem:[#allocation5 + $0x1550] sm:$0xff]   ;;  %v15136_v35 = vld [vmem:[#allocation5 + $0x1600] sm:$0xff]   ;;  %v15139_v38 = vld [vmem:[#allocation5 + $0x16c8] sm:$0xff]  }
 0x2dd   :  { %13881 = vmatprep.subr.bf16.mxu1 %v15071_v50  ;;  %v15111_v50 = vld [vmem:[#allocation5 + $0x15d0] sm:$0xff]  }
 0x2de   :  { %10644 = vmatmul.mubr.bf16.vlgmr.msra.gmra.mrb[76].mxu0 %v11894_v45  ;;  %v15106_v45 = vld [vmem:[#allocation5 + $0x1548] sm:$0xff]  }
 0x2df   :  { %10685 = vmatmul.mubr.bf16.vlgmr.msra.gmra.mrb[76].mxu1 %v11896_v47  ;;  %13860 = vmatpush3.bf16.msra.mxu0 %v15072_v51  ;;  %v15108_v47 = vld [vmem:[#allocation5 + $0x1508] sm:$0xff]   ;;  %v15112_v51 = vld [vmem:[#allocation5 + $0x1510] sm:$0xff]  }
 0x2e0   :  { %13882 = vmatpush3.bf16.msra.mxu1 %v15073_v52  ;;  %13861 = vmatprep.subr.bf16.mxu0 %v15074_v53  ;;  %v15113_v52 = vld [vmem:[#allocation5 + $0x1590] sm:$0xff]   ;;  %v15114_v53 = vld [vmem:[#allocation5 + $0x1558] sm:$0xff]  }
 0x2e1   :  { %13883 = vmatprep.subr.bf16.mxu1 %v15075_v54  ;;  %10766 = vmatprep.mubr.bf16.mxu1 %v11901_v39  ;;  %v15115_v54 = vld [vmem:[#allocation5 + $0x15d8] sm:$0xff]   ;;  %v15141_v39 = vld [vmem:[#allocation5 + $0x1688] sm:$0xff]  }
 0x2e3   :  { %13862 = vmatpush3.bf16.msra.mxu0 %v15076_v56 }
 0x2e4   :  { %13884 = vmatpush3.bf16.msra.mxu1 %v15077_v57  ;;  %13863 = vmatprep.subr.bf16.mxu0 %v15078_v58  ;;  %v15116_v57 = vld [vmem:[#allocation5 + $0x1518] sm:$0xff]  }
 0x2e5   :  { %13885 = vmatprep.subr.bf16.mxu1 %v15079_v55  ;;  %v15117_v55 = vld [vmem:[#allocation5 + $0x1598] sm:$0xff]  }
 0x2e7   :  { %13864 = vmatpush3.bf16.msra.mxu0 %v15080_v59 }
 0x2e8   :  { %13886 = vmatpush3.bf16.msra.mxu1 %v15081_v60  ;;  %13865 = vmatprep.subr.bf16.mxu0 %v15082_v61  ;;  %v15118_v60 = vld [vmem:[#allocation5 + $0x1560] sm:$0xff]  }
 0x2e9   :  { %13887 = vmatprep.subr.bf16.mxu1 %v15083_v62 }
 0x2eb   :  { %13866 = vmatpush3.bf16.msra.mxu0 %v15084_v63  ;;  %v15119_v63 = vld [vmem:[#allocation5 + $0x15e0] sm:$0xff]  }
 0x2ec   :  { %13888 = vmatpush3.bf16.msra.mxu1 %v15085_v1  ;;  %13867 = vmatprep.subr.bf16.mxu0 %v15086_v3 }
 0x2ed   :  { %13889 = vmatprep.subr.bf16.mxu1 %v15087_v5  ;;  %v15121_v5 = vld [vmem:[#allocation5 + $0x15a0] sm:$0xff]  }
 0x2ef   :  { %13868 = vmatpush3.bf16.msra.mxu0 %v15088_v9  ;;  %v15122_v9 = vld [vmem:[#allocation5 + $0x1568] sm:$0xff]  }
 0x2f0   :  { %13890 = vmatpush3.bf16.msra.mxu1 %v15089_v11  ;;  %13869 = vmatprep.subr.bf16.mxu0 %v15090_v14  ;;  %v15123_v11 = vld [vmem:[#allocation5 + $0x15e8] sm:$0xff]  }
 0x2f1   :  { %v13567_v0 = vpop.f32.mrb[52].mxu0  ;;  %13891 = vmatprep.subr.bf16.mxu1 %v15091_v18  ;;  %v15126_v18 = vld [vmem:[#allocation5 + $0x1570] sm:$0xff]  }
 0x2f2   :  { %v13589_v2 = vpop.f32.mrb[52].mxu1  ;;  %v13568_v4 = vpop.f32.mrb[53].mxu0 }
 0x2f3   :  { %v13569_v6 = vadd.f32 %v13568_v4, %v13567_v0  ;;  %v13590_v8 = vpop.f32.mrb[53].mxu1  ;;  %v13570_v10 = vpop.f32.mrb[54].mxu0  ;;  %13870 = vmatpush3.bf16.msra.mxu0 %v15092_v20  ;;  %v15129_v20 = vld [vmem:[#allocation5 + $0x15b0] sm:$0xff]  }
 0x2f4   :  { %v13591_v7 = vadd.f32 %v13590_v8, %v13589_v2  ;;  %v13592_v13 = vpop.f32.mrb[54].mxu1  ;;  %v13571_v16 = vpop.f32.mrb[55].mxu0  ;;  %13892 = vmatpush3.bf16.msra.mxu1 %v15093_v22  ;;  %13871 = vmatprep.subr.bf16.mxu0 %v15094_v25  ;;  %v15120_v2 = vld [vmem:[#allocation5 + $0x1520] sm:$0xff]   ;;  %v15131_v22 = vld [vmem:[#allocation5 + $0x15f8] sm:$0xff]  }
 0x2f5   :  { %v10154_v12 = vadd.f32 %v13569_v6, %v15777_v24  ;;  %v13572_v15 = vadd.f32 %v13571_v16, %v13570_v10  ;;  %v13593_v19 = vpop.f32.mrb[55].mxu1  ;;  %13893 = vmatprep.subr.bf16.mxu1 %v15095_v26  ;;  %v15125_v16 = vld [vmem:[#allocation5 + $0x15a8] sm:$0xff]   ;;  %v15133_v25 = vld [vmem:[#allocation5 + $0x15b8] sm:$0xff]   ;;  %v192_v26 = vld [vmem:[#allocation2 + $0x350] sm:$0xff] }
 0x2f6   :  { %v13594_v21 = vadd.f32 %v13593_v19, %v13592_v13  ;;  %v15124_v13 = vld [vmem:[#allocation5 + $0x1528] sm:$0xff]   ;;  %v15128_v19 = vld [vmem:[#allocation5 + $0x1530] sm:$0xff]  }
 0x2f7   :  { %v15783_v17 = vadd.f32 %v13591_v7, %v10154_v12  ;;  %v10157_v23 = vadd.f32 %v13572_v15, %v15780_v32  ;;  %13872 = vmatpush3.bf16.msra.mxu0 %v15096_v27  ;;  %v190_v32 = vld [vmem:[#allocation2 + $0x340] sm:$0xff]  ;;  %v15127_v15 = vld [vmem:[#allocation5 + $0x15f0] sm:$0xff]  }
 0x2f8   :  { %13894 = vmatpush3.bf16.msra.mxu1 %v15097_v28  ;;  %13873 = vmatprep.subr.bf16.mxu0 %v15098_v29  ;;  %v11898_v36 = vcombine.low %v126_v34, %v190_v32  ;;  %v11899_v37 = vcombine.high %v126_v34, %v190_v32  ;;  %v129_v29 = vld [vmem:[#allocation2 + $0x158] sm:$0xff]  ;;  %v15134_v34 = vld [vmem:[#allocation5 + $0x1640] sm:$0xff]  }
 0x2f9   :  { %v15786_v24 = vadd.f32 %v13594_v21, %v10157_v23  ;;  %13895 = vmatprep.subr.bf16.mxu1 %v15099_v30  ;;  %v15130_v21 = vld [vmem:[#allocation5 + $0x1578] sm:$0xff]   ;;  %v15135_v32 = vld [vmem:[#allocation5 + $0x16c0] sm:$0xff]  }
 0x2fa   :  { %10725 = vmatprep.mubr.bf16.mxu0 %v11899_v37  ;;  %v15132_v23 = vld [vmem:[#allocation5 + $0x1538] sm:$0xff]   ;;  %v15138_v37 = vld [vmem:[#allocation5 + $0x1648] sm:$0xff]  }
 0x2fb   :  { %13874 = vmatpush3.bf16.msra.mxu0 %v15100_v31  ;;  %v193_v30 = vld [vmem:[#allocation2 + $0x358] sm:$0xff] }
 0x2fc   :  { %13896 = vmatpush3.bf16.msra.mxu1 %v15101_v33  ;;  %13903 = vmatprep.subr.bf16.mxu0 %v15102_v41  ;;  %v11904_v31 = vcombine.low %v129_v29, %v193_v30  ;;  %v11905_v33 = vcombine.high %v129_v29, %v193_v30  ;;  %v15142_v41 = vld [vmem:[#allocation5 + $0x1650] sm:$0xff]   ;;  %v15170_v29 = vld [vmem:[#allocation5 + $0x1748] sm:$0xff]  }
 0x2fd   :  { %13925 = vmatprep.subr.bf16.mxu1 %v15103_v42  ;;  %v15143_v42 = vld [vmem:[#allocation5 + $0x16d0] sm:$0xff]   ;;  %v15171_v30 = vld [vmem:[#allocation5 + $0x17c8] sm:$0xff]  }
 0x2fe   :  { %10726 = vmatmul.mubr.bf16.vlgmr.msra.gmra.mrb[80].mxu0 %v11898_v36  ;;  %v15137_v36 = vld [vmem:[#allocation5 + $0x1680] sm:$0xff]  }
 0x2ff   :  { %10767 = vmatmul.mubr.bf16.vlgmr.msra.gmra.mrb[80].mxu1 %v11900_v40  ;;  %13904 = vmatpush3.bf16.msra.mxu0 %v15104_v43  ;;  %v15140_v40 = vld [vmem:[#allocation5 + $0x1608] sm:$0xff]   ;;  %v15144_v43 = vld [vmem:[#allocation5 + $0x1610] sm:$0xff]  }
 0x300   :  { %13926 = vmatpush3.bf16.msra.mxu1 %v15105_v44  ;;  %13905 = vmatprep.subr.bf16.mxu0 %v15106_v45  ;;  %v15145_v44 = vld [vmem:[#allocation5 + $0x1690] sm:$0xff]   ;;  %v15146_v45 = vld [vmem:[#allocation5 + $0x1658] sm:$0xff]  }
 0x301   :  { %13927 = vmatprep.subr.bf16.mxu1 %v15107_v46  ;;  %10848 = vmatprep.mubr.bf16.mxu1 %v11905_v33  ;;  %v15147_v46 = vld [vmem:[#allocation5 + $0x16d8] sm:$0xff]   ;;  %v15173_v33 = vld [vmem:[#allocation5 + $0x1788] sm:$0xff]  }
 0x303   :  { %13906 = vmatpush3.bf16.msra.mxu0 %v15108_v47 }
 0x304   :  { %13928 = vmatpush3.bf16.msra.mxu1 %v15109_v49  ;;  %13907 = vmatprep.subr.bf16.mxu0 %v15110_v48  ;;  %v15148_v49 = vld [vmem:[#allocation5 + $0x1618] sm:$0xff]  }
 0x305   :  { %13929 = vmatprep.subr.bf16.mxu1 %v15111_v50  ;;  %v15149_v50 = vld [vmem:[#allocation5 + $0x1698] sm:$0xff]  }
 0x307   :  { %13908 = vmatpush3.bf16.msra.mxu0 %v15112_v51 }
 0x308   :  { %13930 = vmatpush3.bf16.msra.mxu1 %v15113_v52  ;;  %13909 = vmatprep.subr.bf16.mxu0 %v15114_v53  ;;  %v15150_v52 = vld [vmem:[#allocation5 + $0x1660] sm:$0xff]  }
 0x309   :  { %13931 = vmatprep.subr.bf16.mxu1 %v15115_v54 }
 0x30b   :  { %13910 = vmatpush3.bf16.msra.mxu0 %v15116_v57 }
 0x30c   :  { %13932 = vmatpush3.bf16.msra.mxu1 %v15117_v55  ;;  %13911 = vmatprep.subr.bf16.mxu0 %v15118_v60  ;;  %v15152_v55 = vld [vmem:[#allocation5 + $0x1620] sm:$0xff]  }
 0x30d   :  { %13933 = vmatprep.subr.bf16.mxu1 %v15119_v63 }
 0x30f   :  { %13912 = vmatpush3.bf16.msra.mxu0 %v15120_v2 }
 0x310   :  { %13934 = vmatpush3.bf16.msra.mxu1 %v15121_v5  ;;  %13913 = vmatprep.subr.bf16.mxu0 %v15122_v9  ;;  %v15156_v5 = vld [vmem:[#allocation5 + $0x1628] sm:$0xff]  }
 0x311   :  { %v13611_v56 = vpop.f32.mrb[56].mxu0  ;;  %13935 = vmatprep.subr.bf16.mxu1 %v15123_v11  ;;  %v15157_v9 = vld [vmem:[#allocation5 + $0x16a8] sm:$0xff]   ;;  %v15160_v11 = vld [vmem:[#allocation5 + $0x1630] sm:$0xff]  }
 0x312   :  { %v13633_v58 = vpop.f32.mrb[56].mxu1  ;;  %v13612_v59 = vpop.f32.mrb[57].mxu0 }
 0x313   :  { %v13613_v61 = vadd.f32 %v13612_v59, %v13611_v56  ;;  %v13634_v62 = vpop.f32.mrb[57].mxu1  ;;  %v13614_v1 = vpop.f32.mrb[58].mxu0  ;;  %13914 = vmatpush3.bf16.msra.mxu0 %v15124_v13  ;;  %v15151_v56 = vld [vmem:[#allocation5 + $0x16e0] sm:$0xff]   ;;  %v15162_v13 = vld [vmem:[#allocation5 + $0x1678] sm:$0xff]  }
 0x314   :  { %v13635_v0 = vadd.f32 %v13634_v62, %v13633_v58  ;;  %v13636_v4 = vpop.f32.mrb[58].mxu1  ;;  %v13615_v6 = vpop.f32.mrb[59].mxu0  ;;  %13936 = vmatpush3.bf16.msra.mxu1 %v15125_v16  ;;  %13915 = vmatprep.subr.bf16.mxu0 %v15126_v18  ;;  %v15164_v16 = vld [vmem:[#allocation5 + $0x1638] sm:$0xff]   ;;  %v130_v18 = vld [vmem:[#allocation2 + $0x160] sm:$0xff] }
 0x315   :  { %v10236_v3 = vadd.f32 %v13613_v61, %v15783_v17  ;;  %v13616_v7 = vadd.f32 %v13615_v6, %v13614_v1  ;;  %v13637_v10 = vpop.f32.mrb[59].mxu1  ;;  %13937 = vmatprep.subr.bf16.mxu1 %v15127_v15  ;;  %v15153_v61 = vld [vmem:[#allocation5 + $0x16a0] sm:$0xff]  }
 0x316   :  { %v13638_v12 = vadd.f32 %v13637_v10, %v13636_v4  ;;  %v15159_v10 = vld [vmem:[#allocation5 + $0x16f0] sm:$0xff]   ;;  %v194_v15 = vld [vmem:[#allocation2 + $0x360] sm:$0xff] }
 0x317   :  { %v15789_v8 = vadd.f32 %v13635_v0, %v10236_v3  ;;  %v10239_v14 = vadd.f32 %v13616_v7, %v15786_v24  ;;  %13916 = vmatpush3.bf16.msra.mxu0 %v15128_v19  ;;  %v128_v24 = vld [vmem:[#allocation2 + $0x150] sm:$0xff]  ;;  %v15154_v0 = vld [vmem:[#allocation5 + $0x1668] sm:$0xff]  }
 0x318   :  { %13938 = vmatpush3.bf16.msra.mxu1 %v15129_v20  ;;  %13917 = vmatprep.subr.bf16.mxu0 %v15130_v21  ;;  %v11902_v27 = vcombine.low %v128_v24, %v192_v26  ;;  %v11903_v28 = vcombine.high %v128_v24, %v192_v26  ;;  %v15155_v3 = vld [vmem:[#allocation5 + $0x16e8] sm:$0xff]   ;;  %v15158_v7 = vld [vmem:[#allocation5 + $0x1670] sm:$0xff]   ;;  %v11906_v21 = vcombine.low %v130_v18, %v194_v15  ;;  %v15166_v24 = vld [vmem:[#allocation5 + $0x1740] sm:$0xff]  }
 0x319   :  { %v15792_v17 = vadd.f32 %v13638_v12, %v10239_v14  ;;  %13939 = vmatprep.subr.bf16.mxu1 %v15131_v22  ;;  %v15161_v12 = vld [vmem:[#allocation5 + $0x16b0] sm:$0xff]   ;;  %v15163_v14 = vld [vmem:[#allocation5 + $0x16f8] sm:$0xff]   ;;  %v131_v19 = vld [vmem:[#allocation2 + $0x168] sm:$0xff]  ;;  %v11907_v22 = vcombine.high %v130_v18, %v194_v15 }
 0x31a   :  { %10807 = vmatprep.mubr.bf16.mxu0 %v11903_v28  ;;  %v195_v20 = vld [vmem:[#allocation2 + $0x368] sm:$0xff]  ;;  %v15167_v26 = vld [vmem:[#allocation5 + $0x17c0] sm:$0xff]  }
 0x31b   :  { %13918 = vmatpush3.bf16.msra.mxu0 %v15132_v23  ;;  %v11908_v23 = vcombine.low %v131_v19, %v195_v20  ;;  %v15169_v28 = vld [vmem:[#allocation5 + $0x1780] sm:$0xff]  }
 0x31c   :  { %13940 = vmatpush3.bf16.msra.mxu1 %v15133_v25  ;;  %13947 = vmatprep.subr.bf16.mxu0 %v15134_v34  ;;  %v11909_v25 = vcombine.high %v131_v19, %v195_v20  ;;  %v15174_v34 = vld [vmem:[#allocation5 + $0x1750] sm:$0xff]   ;;  %v15198_v18 = vld [vmem:[#allocation5 + $0x1840] sm:$0xff]  }
 0x31d   :  { %13969 = vmatprep.subr.bf16.mxu1 %v15135_v32  ;;  %v15175_v32 = vld [vmem:[#allocation5 + $0x17d0] sm:$0xff]   ;;  %v15199_v15 = vld [vmem:[#allocation5 + $0x18c0] sm:$0xff]  }
 0x31e   :  { %10808 = vmatmul.mubr.bf16.vlgmr.msra.gmra.mrb[84].mxu0 %v11902_v27  ;;  %v15168_v27 = vld [vmem:[#allocation5 + $0x1700] sm:$0xff]  }
 0x31f   :  { %10849 = vmatmul.mubr.bf16.vlgmr.msra.gmra.mrb[84].mxu1 %v11904_v31  ;;  %13948 = vmatpush3.bf16.msra.mxu0 %v15136_v35  ;;  %v15172_v31 = vld [vmem:[#allocation5 + $0x1708] sm:$0xff]   ;;  %v15176_v35 = vld [vmem:[#allocation5 + $0x1710] sm:$0xff]   ;;  %v15200_v19 = vld [vmem:[#allocation5 + $0x1800] sm:$0xff]  }
 0x320   :  { %13970 = vmatpush3.bf16.msra.mxu1 %v15137_v36  ;;  %13949 = vmatprep.subr.bf16.mxu0 %v15138_v37  ;;  %v15177_v36 = vld [vmem:[#allocation5 + $0x1790] sm:$0xff]   ;;  %v15178_v37 = vld [vmem:[#allocation5 + $0x1758] sm:$0xff]   ;;  %v15201_v20 = vld [vmem:[#allocation5 + $0x1880] sm:$0xff]  }
 0x321   :  { %13971 = vmatprep.subr.bf16.mxu1 %v15139_v38  ;;  %10889 = vmatprep.mubr.bf16.mxu0 %v11907_v22  ;;  %v15179_v38 = vld [vmem:[#allocation5 + $0x17d8] sm:$0xff]   ;;  %v15203_v22 = vld [vmem:[#allocation5 + $0x18c8] sm:$0xff]  }
 0x322   :  { %10930 = vmatprep.mubr.bf16.mxu1 %v11909_v25  ;;  %v15205_v25 = vld [vmem:[#allocation5 + $0x1888] sm:$0xff]  }
 0x323   :  { %13950 = vmatpush3.bf16.msra.mxu0 %v15140_v40  ;;  %v15180_v40 = vld [vmem:[#allocation5 + $0x1718] sm:$0xff]  }
 0x324   :  { %13972 = vmatpush3.bf16.msra.mxu1 %v15141_v39  ;;  %13951 = vmatprep.subr.bf16.mxu0 %v15142_v41  ;;  %v15181_v41 = vld [vmem:[#allocation5 + $0x1798] sm:$0xff]  }
 0x325   :  { %13973 = vmatprep.subr.bf16.mxu1 %v15143_v42 }
 0x327   :  { %13952 = vmatpush3.bf16.msra.mxu0 %v15144_v43  ;;  %v15182_v43 = vld [vmem:[#allocation5 + $0x1760] sm:$0xff]  }
 0x328   :  { %13974 = vmatpush3.bf16.msra.mxu1 %v15145_v44  ;;  %13953 = vmatprep.subr.bf16.mxu0 %v15146_v45  ;;  %v15183_v45 = vld [vmem:[#allocation5 + $0x17e0] sm:$0xff]  }
 0x329   :  { %13975 = vmatprep.subr.bf16.mxu1 %v15147_v46 }
 0x32b   :  { %13954 = vmatpush3.bf16.msra.mxu0 %v15148_v49  ;;  %v15184_v49 = vld [vmem:[#allocation5 + $0x1720] sm:$0xff]  }
 0x32c   :  { %13976 = vmatpush3.bf16.msra.mxu1 %v15149_v50  ;;  %13955 = vmatprep.subr.bf16.mxu0 %v15150_v52 }
 0x32d   :  { %13977 = vmatprep.subr.bf16.mxu1 %v15151_v56 }
 0x32f   :  { %13956 = vmatpush3.bf16.msra.mxu0 %v15152_v55 }
 0x330   :  { %13978 = vmatpush3.bf16.msra.mxu1 %v15153_v61  ;;  %13957 = vmatprep.subr.bf16.mxu0 %v15154_v0 }
 0x331   :  { %v13655_v47 = vpop.f32.mrb[60].mxu0  ;;  %13979 = vmatprep.subr.bf16.mxu1 %v15155_v3  ;;  %v15192_v3 = vld [vmem:[#allocation5 + $0x1730] sm:$0xff]  }
 0x332   :  { %v13677_v48 = vpop.f32.mrb[60].mxu1  ;;  %v13656_v51 = vpop.f32.mrb[61].mxu0 }
 0x333   :  { %v13657_v53 = vadd.f32 %v13656_v51, %v13655_v47  ;;  %v13678_v54 = vpop.f32.mrb[61].mxu1  ;;  %v13658_v58 = vpop.f32.mrb[62].mxu0  ;;  %13958 = vmatpush3.bf16.msra.mxu0 %v15156_v5  ;;  %v15185_v51 = vld [vmem:[#allocation5 + $0x17a0] sm:$0xff]   ;;  %v15194_v5 = vld [vmem:[#allocation5 + $0x1778] sm:$0xff]  }
 0x334   :  { %v13679_v57 = vadd.f32 %v13678_v54, %v13677_v48  ;;  %v13680_v60 = vpop.f32.mrb[62].mxu1  ;;  %v13659_v62 = vpop.f32.mrb[63].mxu0  ;;  %13980 = vmatpush3.bf16.msra.mxu1 %v15157_v9  ;;  %13959 = vmatprep.subr.bf16.mxu0 %v15158_v7  ;;  %v15186_v54 = vld [vmem:[#allocation5 + $0x1768] sm:$0xff]   ;;  %v15196_v9 = vld [vmem:[#allocation5 + $0x1738] sm:$0xff]  }
 0x335   :  { %v10318_v59 = vadd.f32 %v13657_v53, %v15789_v8  ;;  %v13660_v1 = vadd.f32 %v13659_v62, %v13658_v58  ;;  %v13681_v2 = vpop.f32.mrb[63].mxu1  ;;  %13981 = vmatprep.subr.bf16.mxu1 %v15159_v10  ;;  %v15187_v58 = vld [vmem:[#allocation5 + $0x17e8] sm:$0xff]   ;;  %v15197_v7 = vld [vmem:[#allocation5 + $0x17b8] sm:$0xff]   ;;  %v132_v10 = vld [vmem:[#allocation2 + $0x170] sm:$0xff] }
 0x336   :  { %v13682_v4 = vadd.f32 %v13681_v2, %v13680_v60  ;;  %v15188_v60 = vld [vmem:[#allocation5 + $0x1728] sm:$0xff]   ;;  %v15191_v2 = vld [vmem:[#allocation5 + $0x17f0] sm:$0xff]  }
 0x337   :  { %v15795_v63 = vadd.f32 %v13679_v57, %v10318_v59  ;;  %v10321_v6 = vadd.f32 %v13660_v1, %v15792_v17  ;;  %13960 = vmatpush3.bf16.msra.mxu0 %v15160_v11  ;;  %v15165_v17 = vld [vmem:[#allocation5 + $0x16b8] sm:$0xff]   ;;  %v15189_v62 = vld [vmem:[#allocation5 + $0x17a8] sm:$0xff]   ;;  %v15190_v1 = vld [vmem:[#allocation5 + $0x1770] sm:$0xff]  }
 0x338   :  { %13982 = vmatpush3.bf16.msra.mxu1 %v15161_v12  ;;  %13961 = vmatprep.subr.bf16.mxu0 %v15162_v13  ;;  %v133_v11 = vld [vmem:[#allocation2 + $0x178] sm:$0xff] }
 0x339   :  { %v15798_v8 = vadd.f32 %v13682_v4, %v10321_v6  ;;  %13983 = vmatprep.subr.bf16.mxu1 %v15163_v14  ;;  %v15193_v4 = vld [vmem:[#allocation5 + $0x17b0] sm:$0xff]   ;;  %v15195_v6 = vld [vmem:[#allocation5 + $0x17f8] sm:$0xff]  }
 0x33a   :  { %v197_v14 = vld [vmem:[#allocation2 + $0x378] sm:$0xff] }
 0x33b   :  { %13962 = vmatpush3.bf16.msra.mxu0 %v15164_v16  ;;  %v11912_v16 = vcombine.low %v133_v11, %v197_v14 }
 0x33c   :  { %13984 = vmatpush3.bf16.msra.mxu1 %v15165_v17  ;;  %13991 = vmatprep.subr.bf16.mxu0 %v15166_v24  ;;  %v11913_v17 = vcombine.high %v133_v11, %v197_v14  ;;  %v15206_v24 = vld [vmem:[#allocation5 + $0x1850] sm:$0xff]   ;;  %v15232_v11 = vld [vmem:[#allocation5 + $0x1900] sm:$0xff]   ;;  %v15235_v14 = vld [vmem:[#allocation5 + $0x19c8] sm:$0xff]  }
 0x33d   :  { %14013 = vmatprep.subr.bf16.mxu1 %v15167_v26  ;;  %v15207_v26 = vld [vmem:[#allocation5 + $0x18d0] sm:$0xff]  }
 0x33e   :  { %10890 = vmatmul.mubr.bf16.vlgmr.msra.gmra.mrb[88].mxu0 %v11906_v21  ;;  %v15202_v21 = vld [vmem:[#allocation5 + $0x1848] sm:$0xff]  }
 0x33f   :  { %10931 = vmatmul.mubr.bf16.vlgmr.msra.gmra.mrb[88].mxu1 %v11908_v23  ;;  %13992 = vmatpush3.bf16.msra.mxu0 %v15168_v27  ;;  %v15204_v23 = vld [vmem:[#allocation5 + $0x1808] sm:$0xff]   ;;  %v15208_v27 = vld [vmem:[#allocation5 + $0x1810] sm:$0xff]  }
 0x340   :  { %14014 = vmatpush3.bf16.msra.mxu1 %v15169_v28  ;;  %13993 = vmatprep.subr.bf16.mxu0 %v15170_v29  ;;  %v15209_v28 = vld [vmem:[#allocation5 + $0x1890] sm:$0xff]   ;;  %v15210_v29 = vld [vmem:[#allocation5 + $0x1858] sm:$0xff]  }
 0x341   :  { %14015 = vmatprep.subr.bf16.mxu1 %v15171_v30  ;;  %11012 = vmatprep.mubr.bf16.mxu1 %v11913_v17  ;;  %v15211_v30 = vld [vmem:[#allocation5 + $0x18d8] sm:$0xff]   ;;  %v15237_v17 = vld [vmem:[#allocation5 + $0x1988] sm:$0xff]  }
 0x343   :  { %13994 = vmatpush3.bf16.msra.mxu0 %v15172_v31 }
 0x344   :  { %14016 = vmatpush3.bf16.msra.mxu1 %v15173_v33  ;;  %13995 = vmatprep.subr.bf16.mxu0 %v15174_v34  ;;  %v15212_v33 = vld [vmem:[#allocation5 + $0x1818] sm:$0xff]  }
 0x345   :  { %14017 = vmatprep.subr.bf16.mxu1 %v15175_v32  ;;  %v15213_v32 = vld [vmem:[#allocation5 + $0x1898] sm:$0xff]  }
 0x347   :  { %13996 = vmatpush3.bf16.msra.mxu0 %v15176_v35 }
 0x348   :  { %14018 = vmatpush3.bf16.msra.mxu1 %v15177_v36  ;;  %13997 = vmatprep.subr.bf16.mxu0 %v15178_v37  ;;  %v15214_v36 = vld [vmem:[#allocation5 + $0x1860] sm:$0xff]  }
 0x349   :  { %14019 = vmatprep.subr.bf16.mxu1 %v15179_v38 }
 0x34b   :  { %13998 = vmatpush3.bf16.msra.mxu0 %v15180_v40  ;;  %v15215_v40 = vld [vmem:[#allocation5 + $0x18e0] sm:$0xff]  }
 0x34c   :  { %14020 = vmatpush3.bf16.msra.mxu1 %v15181_v41  ;;  %13999 = vmatprep.subr.bf16.mxu0 %v15182_v43 }
 0x34d   :  { %14021 = vmatprep.subr.bf16.mxu1 %v15183_v45  ;;  %v15217_v45 = vld [vmem:[#allocation5 + $0x18a0] sm:$0xff]  }
 0x34f   :  { %14000 = vmatpush3.bf16.msra.mxu0 %v15184_v49  ;;  %v15218_v49 = vld [vmem:[#allocation5 + $0x1868] sm:$0xff]  }
 0x350   :  { %14022 = vmatpush3.bf16.msra.mxu1 %v15185_v51  ;;  %14001 = vmatprep.subr.bf16.mxu0 %v15186_v54  ;;  %v15219_v51 = vld [vmem:[#allocation5 + $0x18e8] sm:$0xff]  }
 0x351   :  { %v13699_v39 = vpop.f32.mrb[64].mxu0  ;;  %14023 = vmatprep.subr.bf16.mxu1 %v15187_v58  ;;  %v15222_v58 = vld [vmem:[#allocation5 + $0x1870] sm:$0xff]  }
 0x352   :  { %v13721_v42 = vpop.f32.mrb[64].mxu1  ;;  %v13700_v44 = vpop.f32.mrb[65].mxu0 }
 0x353   :  { %v13701_v46 = vadd.f32 %v13700_v44, %v13699_v39  ;;  %v13722_v47 = vpop.f32.mrb[65].mxu1  ;;  %v13702_v50 = vpop.f32.mrb[66].mxu0  ;;  %14002 = vmatpush3.bf16.msra.mxu0 %v15188_v60  ;;  %v15225_v60 = vld [vmem:[#allocation5 + $0x18b0] sm:$0xff]  }
 0x354   :  { %v13723_v48 = vadd.f32 %v13722_v47, %v13721_v42  ;;  %v13724_v53 = vpop.f32.mrb[66].mxu1  ;;  %v13703_v56 = vpop.f32.mrb[67].mxu0  ;;  %14024 = vmatpush3.bf16.msra.mxu1 %v15189_v62  ;;  %14003 = vmatprep.subr.bf16.mxu0 %v15190_v1  ;;  %v15216_v42 = vld [vmem:[#allocation5 + $0x1820] sm:$0xff]   ;;  %v15227_v62 = vld [vmem:[#allocation5 + $0x18f8] sm:$0xff]  }
 0x355   :  { %v10400_v52 = vadd.f32 %v13701_v46, %v15795_v63  ;;  %v13704_v55 = vadd.f32 %v13703_v56, %v13702_v50  ;;  %v13725_v59 = vpop.f32.mrb[67].mxu1  ;;  %14025 = vmatprep.subr.bf16.mxu1 %v15191_v2  ;;  %v15221_v56 = vld [vmem:[#allocation5 + $0x18a8] sm:$0xff]   ;;  %v15229_v1 = vld [vmem:[#allocation5 + $0x18b8] sm:$0xff]   ;;  %v198_v2 = vld [vmem:[#allocation2 + $0x380] sm:$0xff] }
 0x356   :  { %v13726_v61 = vadd.f32 %v13725_v59, %v13724_v53  ;;  %v15220_v53 = vld [vmem:[#allocation5 + $0x1828] sm:$0xff]   ;;  %v15224_v59 = vld [vmem:[#allocation5 + $0x1830] sm:$0xff]  }
 0x357   :  { %v15801_v57 = vadd.f32 %v13723_v48, %v10400_v52  ;;  %v10403_v0 = vadd.f32 %v13704_v55, %v15798_v8  ;;  %14004 = vmatpush3.bf16.msra.mxu0 %v15192_v3  ;;  %v196_v8 = vld [vmem:[#allocation2 + $0x370] sm:$0xff] }
 0x358   :  { %14026 = vmatpush3.bf16.msra.mxu1 %v15193_v4  ;;  %14005 = vmatprep.subr.bf16.mxu0 %v15194_v5  ;;  %v11910_v12 = vcombine.low %v132_v10, %v196_v8  ;;  %v11911_v13 = vcombine.high %v132_v10, %v196_v8  ;;  %v15223_v55 = vld [vmem:[#allocation5 + $0x18f0] sm:$0xff]   ;;  %v135_v5 = vld [vmem:[#allocation2 + $0x188] sm:$0xff]  ;;  %v15230_v10 = vld [vmem:[#allocation5 + $0x1940] sm:$0xff]  }
 0x359   :  { %v15804_v63 = vadd.f32 %v13726_v61, %v10403_v0  ;;  %14027 = vmatprep.subr.bf16.mxu1 %v15195_v6  ;;  %v15226_v61 = vld [vmem:[#allocation5 + $0x1878] sm:$0xff]   ;;  %v199_v6 = vld [vmem:[#allocation2 + $0x388] sm:$0xff]  ;;  %v15231_v8 = vld [vmem:[#allocation5 + $0x19c0] sm:$0xff]  }
 0x35a   :  { %10971 = vmatprep.mubr.bf16.mxu0 %v11911_v13  ;;  %v15228_v0 = vld [vmem:[#allocation5 + $0x1838] sm:$0xff]   ;;  %v15234_v13 = vld [vmem:[#allocation5 + $0x1948] sm:$0xff]  }
 0x35b   :  { %14006 = vmatpush3.bf16.msra.mxu0 %v15196_v9  ;;  %v11916_v9 = vcombine.low %v135_v5, %v199_v6 }
 0x35c   :  { %14028 = vmatpush3.bf16.msra.mxu1 %v15197_v7  ;;  %14035 = vmatprep.subr.bf16.mxu0 %v15198_v18  ;;  %v11917_v7 = vcombine.high %v135_v5, %v199_v6  ;;  %v15238_v18 = vld [vmem:[#allocation5 + $0x1950] sm:$0xff]   ;;  %v15266_v5 = vld [vmem:[#allocation5 + $0x1a48] sm:$0xff]  }
 0x35d   :  { %14057 = vmatprep.subr.bf16.mxu1 %v15199_v15  ;;  %v15239_v15 = vld [vmem:[#allocation5 + $0x19d0] sm:$0xff]   ;;  %v15267_v6 = vld [vmem:[#allocation5 + $0x1ac8] sm:$0xff]  }
 0x35e   :  { %10972 = vmatmul.mubr.bf16.vlgmr.msra.gmra.mrb[92].mxu0 %v11910_v12  ;;  %v15233_v12 = vld [vmem:[#allocation5 + $0x1980] sm:$0xff]  }
 0x35f   :  { %11013 = vmatmul.mubr.bf16.vlgmr.msra.gmra.mrb[92].mxu1 %v11912_v16  ;;  %14036 = vmatpush3.bf16.msra.mxu0 %v15200_v19  ;;  %v15236_v16 = vld [vmem:[#allocation5 + $0x1908] sm:$0xff]   ;;  %v15240_v19 = vld [vmem:[#allocation5 + $0x1910] sm:$0xff]  }
 0x360   :  { %14058 = vmatpush3.bf16.msra.mxu1 %v15201_v20  ;;  %14037 = vmatprep.subr.bf16.mxu0 %v15202_v21  ;;  %v15241_v20 = vld [vmem:[#allocation5 + $0x1990] sm:$0xff]   ;;  %v15242_v21 = vld [vmem:[#allocation5 + $0x1958] sm:$0xff]  }
 0x361   :  { %14059 = vmatprep.subr.bf16.mxu1 %v15203_v22  ;;  %11094 = vmatprep.mubr.bf16.mxu1 %v11917_v7  ;;  %v15243_v22 = vld [vmem:[#allocation5 + $0x19d8] sm:$0xff]   ;;  %v15269_v7 = vld [vmem:[#allocation5 + $0x1a88] sm:$0xff]  }
 0x363   :  { %14038 = vmatpush3.bf16.msra.mxu0 %v15204_v23 }
 0x364   :  { %14060 = vmatpush3.bf16.msra.mxu1 %v15205_v25  ;;  %14039 = vmatprep.subr.bf16.mxu0 %v15206_v24  ;;  %v15244_v25 = vld [vmem:[#allocation5 + $0x1918] sm:$0xff]  }
 0x365   :  { %14061 = vmatprep.subr.bf16.mxu1 %v15207_v26  ;;  %v15245_v26 = vld [vmem:[#allocation5 + $0x1998] sm:$0xff]  }
 0x367   :  { %14040 = vmatpush3.bf16.msra.mxu0 %v15208_v27 }
 0x368   :  { %14062 = vmatpush3.bf16.msra.mxu1 %v15209_v28  ;;  %14041 = vmatprep.subr.bf16.mxu0 %v15210_v29  ;;  %v15246_v28 = vld [vmem:[#allocation5 + $0x1960] sm:$0xff]  }
 0x369   :  { %14063 = vmatprep.subr.bf16.mxu1 %v15211_v30 }
 0x36b   :  { %14042 = vmatpush3.bf16.msra.mxu0 %v15212_v33 }
 0x36c   :  { %14064 = vmatpush3.bf16.msra.mxu1 %v15213_v32  ;;  %14043 = vmatprep.subr.bf16.mxu0 %v15214_v36  ;;  %v15248_v32 = vld [vmem:[#allocation5 + $0x1920] sm:$0xff]  }
 0x36d   :  { %14065 = vmatprep.subr.bf16.mxu1 %v15215_v40 }
 0x36f   :  { %14044 = vmatpush3.bf16.msra.mxu0 %v15216_v42 }
 0x370   :  { %14066 = vmatpush3.bf16.msra.mxu1 %v15217_v45  ;;  %14045 = vmatprep.subr.bf16.mxu0 %v15218_v49  ;;  %v15252_v45 = vld [vmem:[#allocation5 + $0x1928] sm:$0xff]  }
 0x371   :  { %v13743_v31 = vpop.f32.mrb[68].mxu0  ;;  %14067 = vmatprep.subr.bf16.mxu1 %v15219_v51  ;;  %v15253_v49 = vld [vmem:[#allocation5 + $0x19a8] sm:$0xff]   ;;  %v15256_v51 = vld [vmem:[#allocation5 + $0x1930] sm:$0xff]  }
 0x372   :  { %v13765_v34 = vpop.f32.mrb[68].mxu1  ;;  %v13744_v35 = vpop.f32.mrb[69].mxu0 }
 0x373   :  { %v13745_v37 = vadd.f32 %v13744_v35, %v13743_v31  ;;  %v13766_v38 = vpop.f32.mrb[69].mxu1  ;;  %v13746_v41 = vpop.f32.mrb[70].mxu0  ;;  %14046 = vmatpush3.bf16.msra.mxu0 %v15220_v53  ;;  %v15247_v31 = vld [vmem:[#allocation5 + $0x19e0] sm:$0xff]   ;;  %v15258_v53 = vld [vmem:[#allocation5 + $0x1978] sm:$0xff]  }
 0x374   :  { %v13767_v39 = vadd.f32 %v13766_v38, %v13765_v34  ;;  %v13768_v44 = vpop.f32.mrb[70].mxu1  ;;  %v13747_v46 = vpop.f32.mrb[71].mxu0  ;;  %14068 = vmatpush3.bf16.msra.mxu1 %v15221_v56  ;;  %14047 = vmatprep.subr.bf16.mxu0 %v15222_v58  ;;  %v15260_v56 = vld [vmem:[#allocation5 + $0x1938] sm:$0xff]   ;;  %v136_v58 = vld [vmem:[#allocation2 + $0x190] sm:$0xff] }
 0x375   :  { %v10482_v43 = vadd.f32 %v13745_v37, %v15801_v57  ;;  %v13748_v48 = vadd.f32 %v13747_v46, %v13746_v41  ;;  %v13769_v50 = vpop.f32.mrb[71].mxu1  ;;  %14069 = vmatprep.subr.bf16.mxu1 %v15223_v55  ;;  %v15249_v37 = vld [vmem:[#allocation5 + $0x19a0] sm:$0xff]   ;;  %v200_v55 = vld [vmem:[#allocation2 + $0x390] sm:$0xff] }
 0x376   :  { %v13770_v52 = vadd.f32 %v13769_v50, %v13768_v44  ;;  %v15255_v50 = vld [vmem:[#allocation5 + $0x19f0] sm:$0xff]  }
 0x377   :  { %v15807_v47 = vadd.f32 %v13767_v39, %v10482_v43  ;;  %v10485_v54 = vadd.f32 %v13748_v48, %v15804_v63  ;;  %14048 = vmatpush3.bf16.msra.mxu0 %v15224_v59  ;;  %v134_v63 = vld [vmem:[#allocation2 + $0x180] sm:$0xff]  ;;  %v15250_v39 = vld [vmem:[#allocation5 + $0x1968] sm:$0xff]   ;;  %v15254_v48 = vld [vmem:[#allocation5 + $0x1970] sm:$0xff]  }
 0x378   :  { %14070 = vmatpush3.bf16.msra.mxu1 %v15225_v60  ;;  %14049 = vmatprep.subr.bf16.mxu0 %v15226_v61  ;;  %v11914_v3 = vcombine.low %v134_v63, %v198_v2  ;;  %v11915_v4 = vcombine.high %v134_v63, %v198_v2  ;;  %v15251_v43 = vld [vmem:[#allocation5 + $0x19e8] sm:$0xff]   ;;  %v137_v59 = vld [vmem:[#allocation2 + $0x198] sm:$0xff]  ;;  %v11918_v61 = vcombine.low %v136_v58, %v200_v55  ;;  %v15262_v63 = vld [vmem:[#allocation5 + $0x1a40] sm:$0xff]  }
 0x379   :  { %v15810_v57 = vadd.f32 %v13770_v52, %v10485_v54  ;;  %14071 = vmatprep.subr.bf16.mxu1 %v15227_v62  ;;  %v15257_v52 = vld [vmem:[#allocation5 + $0x19b0] sm:$0xff]   ;;  %v15259_v54 = vld [vmem:[#allocation5 + $0x19f8] sm:$0xff]   ;;  %v11919_v62 = vcombine.high %v136_v58, %v200_v55  ;;  %v15263_v2 = vld [vmem:[#allocation5 + $0x1ac0] sm:$0xff]  }
 0x37a   :  { %11053 = vmatprep.mubr.bf16.mxu0 %v11915_v4  ;;  %v201_v60 = vld [vmem:[#allocation2 + $0x398] sm:$0xff]  ;;  %v15265_v4 = vld [vmem:[#allocation5 + $0x1a80] sm:$0xff]  }
 0x37b   :  { %14050 = vmatpush3.bf16.msra.mxu0 %v15228_v0  ;;  %v11920_v0 = vcombine.low %v137_v59, %v201_v60  ;;  %v15294_v58 = vld [vmem:[#allocation5 + $0x1b40] sm:$0xff]  }
 0x37c   :  { %14072 = vmatpush3.bf16.msra.mxu1 %v15229_v1  ;;  %14079 = vmatprep.subr.bf16.mxu0 %v15230_v10  ;;  %v11921_v1 = vcombine.high %v137_v59, %v201_v60  ;;  %v15270_v10 = vld [vmem:[#allocation5 + $0x1a50] sm:$0xff]   ;;  %v15295_v55 = vld [vmem:[#allocation5 + $0x1bc0] sm:$0xff]  }
 0x37d   :  { %14101 = vmatprep.subr.bf16.mxu1 %v15231_v8  ;;  %v15271_v8 = vld [vmem:[#allocation5 + $0x1ad0] sm:$0xff]   ;;  %v15296_v59 = vld [vmem:[#allocation5 + $0x1b00] sm:$0xff]  }
 0x37e   :  { %11054 = vmatmul.mubr.bf16.vlgmr.msra.gmra.mrb[96].mxu0 %v11914_v3  ;;  %v15264_v3 = vld [vmem:[#allocation5 + $0x1a00] sm:$0xff]  }
 0x37f   :  { %11095 = vmatmul.mubr.bf16.vlgmr.msra.gmra.mrb[96].mxu1 %v11916_v9  ;;  %14080 = vmatpush3.bf16.msra.mxu0 %v15232_v11  ;;  %v15268_v9 = vld [vmem:[#allocation5 + $0x1a08] sm:$0xff]   ;;  %v15272_v11 = vld [vmem:[#allocation5 + $0x1a10] sm:$0xff]   ;;  %v15297_v60 = vld [vmem:[#allocation5 + $0x1b80] sm:$0xff]  }
 0x380   :  { %14102 = vmatpush3.bf16.msra.mxu1 %v15233_v12  ;;  %14081 = vmatprep.subr.bf16.mxu0 %v15234_v13  ;;  %v15273_v12 = vld [vmem:[#allocation5 + $0x1a90] sm:$0xff]   ;;  %v15274_v13 = vld [vmem:[#allocation5 + $0x1a58] sm:$0xff]  }
 0x381   :  { %14103 = vmatprep.subr.bf16.mxu1 %v15235_v14  ;;  %11135 = vmatprep.mubr.bf16.mxu0 %v11919_v62  ;;  %v15275_v14 = vld [vmem:[#allocation5 + $0x1ad8] sm:$0xff]   ;;  %v15299_v62 = vld [vmem:[#allocation5 + $0x1bc8] sm:$0xff]  }
 0x382   :  { %11176 = vmatprep.mubr.bf16.mxu1 %v11921_v1  ;;  %v15301_v1 = vld [vmem:[#allocation5 + $0x1b88] sm:$0xff]  }
 0x383   :  { %14082 = vmatpush3.bf16.msra.mxu0 %v15236_v16  ;;  %v15276_v16 = vld [vmem:[#allocation5 + $0x1a18] sm:$0xff]  }
 0x384   :  { %14104 = vmatpush3.bf16.msra.mxu1 %v15237_v17  ;;  %14083 = vmatprep.subr.bf16.mxu0 %v15238_v18  ;;  %v15277_v18 = vld [vmem:[#allocation5 + $0x1a98] sm:$0xff]  }
 0x385   :  { %14105 = vmatprep.subr.bf16.mxu1 %v15239_v15 }
 0x387   :  { %14084 = vmatpush3.bf16.msra.mxu0 %v15240_v19  ;;  %v15278_v19 = vld [vmem:[#allocation5 + $0x1a60] sm:$0xff]  }
 0x388   :  { %14106 = vmatpush3.bf16.msra.mxu1 %v15241_v20  ;;  %14085 = vmatprep.subr.bf16.mxu0 %v15242_v21  ;;  %v15279_v21 = vld [vmem:[#allocation5 + $0x1ae0] sm:$0xff]  }
 0x389   :  { %14107 = vmatprep.subr.bf16.mxu1 %v15243_v22 }
 0x38b   :  { %14086 = vmatpush3.bf16.msra.mxu0 %v15244_v25  ;;  %v15280_v25 = vld [vmem:[#allocation5 + $0x1a20] sm:$0xff]  }
 0x38c   :  { %14108 = vmatpush3.bf16.msra.mxu1 %v15245_v26  ;;  %14087 = vmatprep.subr.bf16.mxu0 %v15246_v28 }
 0x38d   :  { %14109 = vmatprep.subr.bf16.mxu1 %v15247_v31 }
 0x38f   :  { %14088 = vmatpush3.bf16.msra.mxu0 %v15248_v32 }
 0x390   :  { %14110 = vmatpush3.bf16.msra.mxu1 %v15249_v37  ;;  %14089 = vmatprep.subr.bf16.mxu0 %v15250_v39 }
 0x391   :  { %v13787_v23 = vpop.f32.mrb[72].mxu0  ;;  %14111 = vmatprep.subr.bf16.mxu1 %v15251_v43  ;;  %v15288_v43 = vld [vmem:[#allocation5 + $0x1a30] sm:$0xff]  }
 0x392   :  { %v13809_v24 = vpop.f32.mrb[72].mxu1  ;;  %v13788_v27 = vpop.f32.mrb[73].mxu0 }
 0x393   :  { %v13789_v29 = vadd.f32 %v13788_v27, %v13787_v23  ;;  %v13810_v30 = vpop.f32.mrb[73].mxu1  ;;  %v13790_v34 = vpop.f32.mrb[74].mxu0  ;;  %14090 = vmatpush3.bf16.msra.mxu0 %v15252_v45  ;;  %v15281_v27 = vld [vmem:[#allocation5 + $0x1aa0] sm:$0xff]   ;;  %v15290_v45 = vld [vmem:[#allocation5 + $0x1a78] sm:$0xff]  }
 0x394   :  { %v13811_v33 = vadd.f32 %v13810_v30, %v13809_v24  ;;  %v13812_v36 = vpop.f32.mrb[74].mxu1  ;;  %v13791_v38 = vpop.f32.mrb[75].mxu0  ;;  %14112 = vmatpush3.bf16.msra.mxu1 %v15253_v49  ;;  %14091 = vmatprep.subr.bf16.mxu0 %v15254_v48  ;;  %v15282_v30 = vld [vmem:[#allocation5 + $0x1a68] sm:$0xff]   ;;  %v15292_v49 = vld [vmem:[#allocation5 + $0x1a38] sm:$0xff]  }
 0x395   :  { %v10564_v35 = vadd.f32 %v13789_v29, %v15807_v47  ;;  %v13792_v41 = vadd.f32 %v13791_v38, %v13790_v34  ;;  %v13813_v42 = vpop.f32.mrb[75].mxu1  ;;  %14113 = vmatprep.subr.bf16.mxu1 %v15255_v50  ;;  %v15283_v34 = vld [vmem:[#allocation5 + $0x1ae8] sm:$0xff]   ;;  %v15293_v48 = vld [vmem:[#allocation5 + $0x1ab8] sm:$0xff]   ;;  %v138_v50 = vld [vmem:[#allocation2 + $0x1a0] sm:$0xff] }
 0x396   :  { %v13814_v44 = vadd.f32 %v13813_v42, %v13812_v36  ;;  %v15284_v36 = vld [vmem:[#allocation5 + $0x1a28] sm:$0xff]   ;;  %v15287_v42 = vld [vmem:[#allocation5 + $0x1af0] sm:$0xff]  }
 0x397   :  { %v15813_v40 = vadd.f32 %v13811_v33, %v10564_v35  ;;  %v10567_v46 = vadd.f32 %v13792_v41, %v15810_v57  ;;  %14092 = vmatpush3.bf16.msra.mxu0 %v15256_v51  ;;  %v15261_v57 = vld [vmem:[#allocation5 + $0x19b8] sm:$0xff]   ;;  %v15285_v38 = vld [vmem:[#allocation5 + $0x1aa8] sm:$0xff]   ;;  %v15286_v41 = vld [vmem:[#allocation5 + $0x1a70] sm:$0xff]  }
 0x398   :  { %14114 = vmatpush3.bf16.msra.mxu1 %v15257_v52  ;;  %14093 = vmatprep.subr.bf16.mxu0 %v15258_v53  ;;  %v139_v51 = vld [vmem:[#allocation2 + $0x1a8] sm:$0xff] }
 0x399   :  { %v15816_v47 = vadd.f32 %v13814_v44, %v10567_v46  ;;  %14115 = vmatprep.subr.bf16.mxu1 %v15259_v54  ;;  %v15289_v44 = vld [vmem:[#allocation5 + $0x1ab0] sm:$0xff]   ;;  %v15291_v46 = vld [vmem:[#allocation5 + $0x1af8] sm:$0xff]   ;;  %v203_v54 = vld [vmem:[#allocation2 + $0x3a8] sm:$0xff] }
 0x39b   :  { %14094 = vmatpush3.bf16.msra.mxu0 %v15260_v56  ;;  %v11924_v56 = vcombine.low %v139_v51, %v203_v54 }
 0x39c   :  { %14116 = vmatpush3.bf16.msra.mxu1 %v15261_v57  ;;  %14123 = vmatprep.subr.bf16.mxu0 %v15262_v63  ;;  %v11925_v57 = vcombine.high %v139_v51, %v203_v54  ;;  %v15302_v63 = vld [vmem:[#allocation5 + $0x1b50] sm:$0xff]   ;;  %v15328_v51 = vld [vmem:[#allocation5 + $0x1c00] sm:$0xff]   ;;  %v15331_v54 = vld [vmem:[#allocation5 + $0x1cc8] sm:$0xff]  }
 0x39d   :  { %14145 = vmatprep.subr.bf16.mxu1 %v15263_v2  ;;  %v15303_v2 = vld [vmem:[#allocation5 + $0x1bd0] sm:$0xff]  }
 0x39e   :  { %11136 = vmatmul.mubr.bf16.vlgmr.msra.gmra.mrb[100].mxu0 %v11918_v61  ;;  %v15298_v61 = vld [vmem:[#allocation5 + $0x1b48] sm:$0xff]  }
 0x39f   :  { %11177 = vmatmul.mubr.bf16.vlgmr.msra.gmra.mrb[100].mxu1 %v11920_v0  ;;  %14124 = vmatpush3.bf16.msra.mxu0 %v15264_v3  ;;  %v15300_v0 = vld [vmem:[#allocation5 + $0x1b08] sm:$0xff]   ;;  %v15304_v3 = vld [vmem:[#allocation5 + $0x1b10] sm:$0xff]  }
 0x3a0   :  { %14146 = vmatpush3.bf16.msra.mxu1 %v15265_v4  ;;  %14125 = vmatprep.subr.bf16.mxu0 %v15266_v5  ;;  %v15305_v4 = vld [vmem:[#allocation5 + $0x1b90] sm:$0xff]   ;;  %v15306_v5 = vld [vmem:[#allocation5 + $0x1b58] sm:$0xff]  }
 0x3a1   :  { %14147 = vmatprep.subr.bf16.mxu1 %v15267_v6  ;;  %11258 = vmatprep.mubr.bf16.mxu1 %v11925_v57  ;;  %v15307_v6 = vld [vmem:[#allocation5 + $0x1bd8] sm:$0xff]   ;;  %v15333_v57 = vld [vmem:[#allocation5 + $0x1c88] sm:$0xff]  }
 0x3a3   :  { %14126 = vmatpush3.bf16.msra.mxu0 %v15268_v9 }
 0x3a4   :  { %14148 = vmatpush3.bf16.msra.mxu1 %v15269_v7  ;;  %14127 = vmatprep.subr.bf16.mxu0 %v15270_v10  ;;  %v15308_v7 = vld [vmem:[#allocation5 + $0x1b18] sm:$0xff]  }
 0x3a5   :  { %14149 = vmatprep.subr.bf16.mxu1 %v15271_v8  ;;  %v15309_v8 = vld [vmem:[#allocation5 + $0x1b98] sm:$0xff]  }
 0x3a7   :  { %14128 = vmatpush3.bf16.msra.mxu0 %v15272_v11 }
 0x3a8   :  { %14150 = vmatpush3.bf16.msra.mxu1 %v15273_v12  ;;  %14129 = vmatprep.subr.bf16.mxu0 %v15274_v13  ;;  %v15310_v12 = vld [vmem:[#allocation5 + $0x1b60] sm:$0xff]  }
 0x3a9   :  { %14151 = vmatprep.subr.bf16.mxu1 %v15275_v14 }
 0x3ab   :  { %14130 = vmatpush3.bf16.msra.mxu0 %v15276_v16  ;;  %v15311_v16 = vld [vmem:[#allocation5 + $0x1be0] sm:$0xff]  }
 0x3ac   :  { %14152 = vmatpush3.bf16.msra.mxu1 %v15277_v18  ;;  %14131 = vmatprep.subr.bf16.mxu0 %v15278_v19 }
 0x3ad   :  { %14153 = vmatprep.subr.bf16.mxu1 %v15279_v21  ;;  %v15313_v21 = vld [vmem:[#allocation5 + $0x1ba0] sm:$0xff]  }
 0x3af   :  { %14132 = vmatpush3.bf16.msra.mxu0 %v15280_v25  ;;  %v15314_v25 = vld [vmem:[#allocation5 + $0x1b68] sm:$0xff]  }
 0x3b0   :  { %14154 = vmatpush3.bf16.msra.mxu1 %v15281_v27  ;;  %14133 = vmatprep.subr.bf16.mxu0 %v15282_v30  ;;  %v15315_v27 = vld [vmem:[#allocation5 + $0x1be8] sm:$0xff]  }
 0x3b1   :  { %v13831_v17 = vpop.f32.mrb[76].mxu0  ;;  %14155 = vmatprep.subr.bf16.mxu1 %v15283_v34  ;;  %v15318_v34 = vld [vmem:[#allocation5 + $0x1b70] sm:$0xff]  }
 0x3b2   :  { %v13853_v15 = vpop.f32.mrb[76].mxu1  ;;  %v13832_v20 = vpop.f32.mrb[77].mxu0 }
 0x3b3   :  { %v13833_v22 = vadd.f32 %v13832_v20, %v13831_v17  ;;  %v13854_v23 = vpop.f32.mrb[77].mxu1  ;;  %v13834_v26 = vpop.f32.mrb[78].mxu0  ;;  %14134 = vmatpush3.bf16.msra.mxu0 %v15284_v36  ;;  %v15321_v36 = vld [vmem:[#allocation5 + $0x1bb0] sm:$0xff]  }
 0x3b4   :  { %v13855_v24 = vadd.f32 %v13854_v23, %v13853_v15  ;;  %v13856_v29 = vpop.f32.mrb[78].mxu1  ;;  %v13835_v31 = vpop.f32.mrb[79].mxu0  ;;  %14156 = vmatpush3.bf16.msra.mxu1 %v15285_v38  ;;  %14135 = vmatprep.subr.bf16.mxu0 %v15286_v41  ;;  %v15312_v15 = vld [vmem:[#allocation5 + $0x1b20] sm:$0xff]   ;;  %v15323_v38 = vld [vmem:[#allocation5 + $0x1bf8] sm:$0xff]  }
 0x3b5   :  { %v10646_v28 = vadd.f32 %v13833_v22, %v15813_v40  ;;  %v13836_v32 = vadd.f32 %v13835_v31, %v13834_v26  ;;  %v13857_v35 = vpop.f32.mrb[79].mxu1  ;;  %14157 = vmatprep.subr.bf16.mxu1 %v15287_v42  ;;  %v15317_v31 = vld [vmem:[#allocation5 + $0x1ba8] sm:$0xff]   ;;  %v15325_v41 = vld [vmem:[#allocation5 + $0x1bb8] sm:$0xff]   ;;  %v204_v42 = vld [vmem:[#allocation2 + $0x3b0] sm:$0xff] }
 0x3b6   :  { %v13858_v37 = vadd.f32 %v13857_v35, %v13856_v29  ;;  %v15316_v29 = vld [vmem:[#allocation5 + $0x1b28] sm:$0xff]   ;;  %v15320_v35 = vld [vmem:[#allocation5 + $0x1b30] sm:$0xff]  }
 0x3b7   :  { %v15819_v33 = vadd.f32 %v13855_v24, %v10646_v28  ;;  %v10649_v39 = vadd.f32 %v13836_v32, %v15816_v47  ;;  %14136 = vmatpush3.bf16.msra.mxu0 %v15288_v43  ;;  %v202_v47 = vld [vmem:[#allocation2 + $0x3a0] sm:$0xff]  ;;  %v15319_v32 = vld [vmem:[#allocation5 + $0x1bf0] sm:$0xff]  }
 0x3b8   :  { %14158 = vmatpush3.bf16.msra.mxu1 %v15289_v44  ;;  %14137 = vmatprep.subr.bf16.mxu0 %v15290_v45  ;;  %v11922_v52 = vcombine.low %v138_v50, %v202_v47  ;;  %v11923_v53 = vcombine.high %v138_v50, %v202_v47  ;;  %v141_v45 = vld [vmem:[#allocation2 + $0x1b8] sm:$0xff]  ;;  %v15326_v50 = vld [vmem:[#allocation5 + $0x1c40] sm:$0xff]  }
 0x3b9   :  { %v15822_v40 = vadd.f32 %v13858_v37, %v10649_v39  ;;  %14159 = vmatprep.subr.bf16.mxu1 %v15291_v46  ;;  %v15322_v37 = vld [vmem:[#allocation5 + $0x1b78] sm:$0xff]   ;;  %v15327_v47 = vld [vmem:[#allocation5 + $0x1cc0] sm:$0xff]  }
 0x3ba   :  { %11217 = vmatprep.mubr.bf16.mxu0 %v11923_v53  ;;  %v15324_v39 = vld [vmem:[#allocation5 + $0x1b38] sm:$0xff]   ;;  %v15330_v53 = vld [vmem:[#allocation5 + $0x1c48] sm:$0xff]  }
 0x3bb   :  { %14138 = vmatpush3.bf16.msra.mxu0 %v15292_v49  ;;  %v205_v46 = vld [vmem:[#allocation2 + $0x3b8] sm:$0xff] }
 0x3bc   :  { %14160 = vmatpush3.bf16.msra.mxu1 %v15293_v48  ;;  %14167 = vmatprep.subr.bf16.mxu0 %v15294_v58  ;;  %v11928_v49 = vcombine.low %v141_v45, %v205_v46  ;;  %v11929_v48 = vcombine.high %v141_v45, %v205_v46  ;;  %v15334_v58 = vld [vmem:[#allocation5 + $0x1c50] sm:$0xff]   ;;  %v15362_v45 = vld [vmem:[#allocation5 + $0x1d48] sm:$0xff]  }
 0x3bd   :  { %14189 = vmatprep.subr.bf16.mxu1 %v15295_v55  ;;  %v15335_v55 = vld [vmem:[#allocation5 + $0x1cd0] sm:$0xff]   ;;  %v15363_v46 = vld [vmem:[#allocation5 + $0x1dc8] sm:$0xff]  }
 0x3be   :  { %11218 = vmatmul.mubr.bf16.vlgmr.msra.gmra.mrb[104].mxu0 %v11922_v52  ;;  %v15329_v52 = vld [vmem:[#allocation5 + $0x1c80] sm:$0xff]  }
 0x3bf   :  { %11259 = vmatmul.mubr.bf16.vlgmr.msra.gmra.mrb[104].mxu1 %v11924_v56  ;;  %14168 = vmatpush3.bf16.msra.mxu0 %v15296_v59  ;;  %v15332_v56 = vld [vmem:[#allocation5 + $0x1c08] sm:$0xff]   ;;  %v15336_v59 = vld [vmem:[#allocation5 + $0x1c10] sm:$0xff]  }
 0x3c0   :  { %14190 = vmatpush3.bf16.msra.mxu1 %v15297_v60  ;;  %14169 = vmatprep.subr.bf16.mxu0 %v15298_v61  ;;  %v15337_v60 = vld [vmem:[#allocation5 + $0x1c90] sm:$0xff]   ;;  %v15338_v61 = vld [vmem:[#allocation5 + $0x1c58] sm:$0xff]  }
 0x3c1   :  { %14191 = vmatprep.subr.bf16.mxu1 %v15299_v62  ;;  %11340 = vmatprep.mubr.bf16.mxu1 %v11929_v48  ;;  %v15339_v62 = vld [vmem:[#allocation5 + $0x1cd8] sm:$0xff]   ;;  %v15365_v48 = vld [vmem:[#allocation5 + $0x1d88] sm:$0xff]  }
 0x3c3   :  { %14170 = vmatpush3.bf16.msra.mxu0 %v15300_v0 }
 0x3c4   :  { %14192 = vmatpush3.bf16.msra.mxu1 %v15301_v1  ;;  %14171 = vmatprep.subr.bf16.mxu0 %v15302_v63  ;;  %v15340_v1 = vld [vmem:[#allocation5 + $0x1c18] sm:$0xff]  }
 0x3c5   :  { %14193 = vmatprep.subr.bf16.mxu1 %v15303_v2  ;;  %v15341_v2 = vld [vmem:[#allocation5 + $0x1c98] sm:$0xff]  }
 0x3c7   :  { %14172 = vmatpush3.bf16.msra.mxu0 %v15304_v3 }
 0x3c8   :  { %14194 = vmatpush3.bf16.msra.mxu1 %v15305_v4  ;;  %14173 = vmatprep.subr.bf16.mxu0 %v15306_v5  ;;  %v15342_v4 = vld [vmem:[#allocation5 + $0x1c60] sm:$0xff]  }
 0x3c9   :  { %14195 = vmatprep.subr.bf16.mxu1 %v15307_v6 }
 0x3cb   :  { %14174 = vmatpush3.bf16.msra.mxu0 %v15308_v7 }
 0x3cc   :  { %14196 = vmatpush3.bf16.msra.mxu1 %v15309_v8  ;;  %14175 = vmatprep.subr.bf16.mxu0 %v15310_v12  ;;  %v15344_v8 = vld [vmem:[#allocation5 + $0x1c20] sm:$0xff]  }
 0x3cd   :  { %14197 = vmatprep.subr.bf16.mxu1 %v15311_v16 }
 0x3cf   :  { %14176 = vmatpush3.bf16.msra.mxu0 %v15312_v15 }
 0x3d0   :  { %14198 = vmatpush3.bf16.msra.mxu1 %v15313_v21  ;;  %14177 = vmatprep.subr.bf16.mxu0 %v15314_v25  ;;  %v15348_v21 = vld [vmem:[#allocation5 + $0x1c28] sm:$0xff]  }
 0x3d1   :  { %v13875_v9 = vpop.f32.mrb[80].mxu0  ;;  %14199 = vmatprep.subr.bf16.mxu1 %v15315_v27  ;;  %v15349_v25 = vld [vmem:[#allocation5 + $0x1ca8] sm:$0xff]   ;;  %v15352_v27 = vld [vmem:[#allocation5 + $0x1c30] sm:$0xff]  }
 0x3d2   :  { %v13897_v10 = vpop.f32.mrb[80].mxu1  ;;  %v13876_v11 = vpop.f32.mrb[81].mxu0 }
 0x3d3   :  { %v13877_v13 = vadd.f32 %v13876_v11, %v13875_v9  ;;  %v13898_v14 = vpop.f32.mrb[81].mxu1  ;;  %v13878_v18 = vpop.f32.mrb[82].mxu0  ;;  %14178 = vmatpush3.bf16.msra.mxu0 %v15316_v29  ;;  %v15343_v9 = vld [vmem:[#allocation5 + $0x1ce0] sm:$0xff]   ;;  %v15354_v29 = vld [vmem:[#allocation5 + $0x1c78] sm:$0xff]  }
 0x3d4   :  { %v13899_v17 = vadd.f32 %v13898_v14, %v13897_v10  ;;  %v13900_v20 = vpop.f32.mrb[82].mxu1  ;;  %v13879_v22 = vpop.f32.mrb[83].mxu0  ;;  %14200 = vmatpush3.bf16.msra.mxu1 %v15317_v31  ;;  %14179 = vmatprep.subr.bf16.mxu0 %v15318_v34  ;;  %v15356_v31 = vld [vmem:[#allocation5 + $0x1c38] sm:$0xff]   ;;  %v142_v34 = vld [vmem:[#allocation2 + $0x1c0] sm:$0xff] }
 0x3d5   :  { %v10728_v19 = vadd.f32 %v13877_v13, %v15819_v33  ;;  %v13880_v24 = vadd.f32 %v13879_v22, %v13878_v18  ;;  %v13901_v26 = vpop.f32.mrb[83].mxu1  ;;  %14201 = vmatprep.subr.bf16.mxu1 %v15319_v32  ;;  %v15345_v13 = vld [vmem:[#allocation5 + $0x1ca0] sm:$0xff]  }
 0x3d6   :  { %v13902_v28 = vadd.f32 %v13901_v26, %v13900_v20  ;;  %v15351_v26 = vld [vmem:[#allocation5 + $0x1cf0] sm:$0xff]   ;;  %v206_v32 = vld [vmem:[#allocation2 + $0x3c0] sm:$0xff] }
 0x3d7   :  { %v15825_v23 = vadd.f32 %v13899_v17, %v10728_v19  ;;  %v10731_v30 = vadd.f32 %v13880_v24, %v15822_v40  ;;  %14180 = vmatpush3.bf16.msra.mxu0 %v15320_v35  ;;  %v140_v40 = vld [vmem:[#allocation2 + $0x1b0] sm:$0xff]  ;;  %v15346_v17 = vld [vmem:[#allocation5 + $0x1c68] sm:$0xff]  }
 0x3d8   :  { %14202 = vmatpush3.bf16.msra.mxu1 %v15321_v36  ;;  %14181 = vmatprep.subr.bf16.mxu0 %v15322_v37  ;;  %v11926_v43 = vcombine.low %v140_v40, %v204_v42  ;;  %v11927_v44 = vcombine.high %v140_v40, %v204_v42  ;;  %v15347_v19 = vld [vmem:[#allocation5 + $0x1ce8] sm:$0xff]   ;;  %v15350_v24 = vld [vmem:[#allocation5 + $0x1c70] sm:$0xff]   ;;  %v11930_v37 = vcombine.low %v142_v34, %v206_v32  ;;  %v15358_v40 = vld [vmem:[#allocation5 + $0x1d40] sm:$0xff]  }
 0x3d9   :  { %v15828_v33 = vadd.f32 %v13902_v28, %v10731_v30  ;;  %14203 = vmatprep.subr.bf16.mxu1 %v15323_v38  ;;  %v15353_v28 = vld [vmem:[#allocation5 + $0x1cb0] sm:$0xff]   ;;  %v15355_v30 = vld [vmem:[#allocation5 + $0x1cf8] sm:$0xff]   ;;  %v143_v35 = vld [vmem:[#allocation2 + $0x1c8] sm:$0xff]  ;;  %v11931_v38 = vcombine.high %v142_v34, %v206_v32 }
 0x3da   :  { %11299 = vmatprep.mubr.bf16.mxu0 %v11927_v44  ;;  %v207_v36 = vld [vmem:[#allocation2 + $0x3c8] sm:$0xff]  ;;  %v15359_v42 = vld [vmem:[#allocation5 + $0x1dc0] sm:$0xff]  }
 0x3db   :  { %14182 = vmatpush3.bf16.msra.mxu0 %v15324_v39  ;;  %v11932_v39 = vcombine.low %v143_v35, %v207_v36  ;;  %v15361_v44 = vld [vmem:[#allocation5 + $0x1d80] sm:$0xff]  }
 0x3dc   :  { %14204 = vmatpush3.bf16.msra.mxu1 %v15325_v41  ;;  %14211 = vmatprep.subr.bf16.mxu0 %v15326_v50  ;;  %v11933_v41 = vcombine.high %v143_v35, %v207_v36  ;;  %v15366_v50 = vld [vmem:[#allocation5 + $0x1d50] sm:$0xff]   ;;  %v15390_v34 = vld [vmem:[#allocation5 + $0x1e40] sm:$0xff]  }
 0x3dd   :  { %14233 = vmatprep.subr.bf16.mxu1 %v15327_v47  ;;  %v15367_v47 = vld [vmem:[#allocation5 + $0x1dd0] sm:$0xff]   ;;  %v15391_v32 = vld [vmem:[#allocation5 + $0x1ec0] sm:$0xff]  }
 0x3de   :  { %11300 = vmatmul.mubr.bf16.vlgmr.msra.gmra.mrb[108].mxu0 %v11926_v43  ;;  %v15360_v43 = vld [vmem:[#allocation5 + $0x1d00] sm:$0xff]  }
 0x3df   :  { %11341 = vmatmul.mubr.bf16.vlgmr.msra.gmra.mrb[108].mxu1 %v11928_v49  ;;  %14212 = vmatpush3.bf16.msra.mxu0 %v15328_v51  ;;  %v15364_v49 = vld [vmem:[#allocation5 + $0x1d08] sm:$0xff]   ;;  %v15368_v51 = vld [vmem:[#allocation5 + $0x1d10] sm:$0xff]   ;;  %v15392_v35 = vld [vmem:[#allocation5 + $0x1e00] sm:$0xff]  }
 0x3e0   :  { %14234 = vmatpush3.bf16.msra.mxu1 %v15329_v52  ;;  %14213 = vmatprep.subr.bf16.mxu0 %v15330_v53  ;;  %v15369_v52 = vld [vmem:[#allocation5 + $0x1d90] sm:$0xff]   ;;  %v15370_v53 = vld [vmem:[#allocation5 + $0x1d58] sm:$0xff]   ;;  %v15393_v36 = vld [vmem:[#allocation5 + $0x1e80] sm:$0xff]  }
 0x3e1   :  { %14235 = vmatprep.subr.bf16.mxu1 %v15331_v54  ;;  %11381 = vmatprep.mubr.bf16.mxu0 %v11931_v38  ;;  %v15371_v54 = vld [vmem:[#allocation5 + $0x1dd8] sm:$0xff]   ;;  %v15395_v38 = vld [vmem:[#allocation5 + $0x1ec8] sm:$0xff]  }
 0x3e2   :  { %11422 = vmatprep.mubr.bf16.mxu1 %v11933_v41  ;;  %v15397_v41 = vld [vmem:[#allocation5 + $0x1e88] sm:$0xff]  }
 0x3e3   :  { %14214 = vmatpush3.bf16.msra.mxu0 %v15332_v56  ;;  %v15372_v56 = vld [vmem:[#allocation5 + $0x1d18] sm:$0xff]  }
 0x3e4   :  { %14236 = vmatpush3.bf16.msra.mxu1 %v15333_v57  ;;  %14215 = vmatprep.subr.bf16.mxu0 %v15334_v58  ;;  %v15373_v58 = vld [vmem:[#allocation5 + $0x1d98] sm:$0xff]  }
 0x3e5   :  { %14237 = vmatprep.subr.bf16.mxu1 %v15335_v55 }
 0x3e7   :  { %14216 = vmatpush3.bf16.msra.mxu0 %v15336_v59  ;;  %v15374_v59 = vld [vmem:[#allocation5 + $0x1d60] sm:$0xff]  }
 0x3e8   :  { %14238 = vmatpush3.bf16.msra.mxu1 %v15337_v60  ;;  %14217 = vmatprep.subr.bf16.mxu0 %v15338_v61  ;;  %v15375_v61 = vld [vmem:[#allocation5 + $0x1de0] sm:$0xff]  }
 0x3e9   :  { %14239 = vmatprep.subr.bf16.mxu1 %v15339_v62 }
 0x3eb   :  { %14218 = vmatpush3.bf16.msra.mxu0 %v15340_v1  ;;  %v15376_v1 = vld [vmem:[#allocation5 + $0x1d20] sm:$0xff]  }
 0x3ec   :  { %14240 = vmatpush3.bf16.msra.mxu1 %v15341_v2  ;;  %14219 = vmatprep.subr.bf16.mxu0 %v15342_v4 }
 0x3ed   :  { %14241 = vmatprep.subr.bf16.mxu1 %v15343_v9 }
 0x3ef   :  { %14220 = vmatpush3.bf16.msra.mxu0 %v15344_v8 }
 0x3f0   :  { %14242 = vmatpush3.bf16.msra.mxu1 %v15345_v13  ;;  %14221 = vmatprep.subr.bf16.mxu0 %v15346_v17 }
 0x3f1   :  { %v13919_v0 = vpop.f32.mrb[84].mxu0  ;;  %14243 = vmatprep.subr.bf16.mxu1 %v15347_v19  ;;  %v15384_v19 = vld [vmem:[#allocation5 + $0x1d30] sm:$0xff]  }
 0x3f2   :  { %v13941_v63 = vpop.f32.mrb[84].mxu1  ;;  %v13920_v3 = vpop.f32.mrb[85].mxu0 }
 0x3f3   :  { %v13921_v5 = vadd.f32 %v13920_v3, %v13919_v0  ;;  %v13942_v6 = vpop.f32.mrb[85].mxu1  ;;  %v13922_v10 = vpop.f32.mrb[86].mxu0  ;;  %14222 = vmatpush3.bf16.msra.mxu0 %v15348_v21  ;;  %v15377_v3 = vld [vmem:[#allocation5 + $0x1da0] sm:$0xff]   ;;  %v15386_v21 = vld [vmem:[#allocation5 + $0x1d78] sm:$0xff]  }
 0x3f4   :  { %v13943_v7 = vadd.f32 %v13942_v6, %v13941_v63  ;;  %v13944_v12 = vpop.f32.mrb[86].mxu1  ;;  %v13923_v14 = vpop.f32.mrb[87].mxu0  ;;  %14244 = vmatpush3.bf16.msra.mxu1 %v15349_v25  ;;  %14223 = vmatprep.subr.bf16.mxu0 %v15350_v24  ;;  %v15378_v6 = vld [vmem:[#allocation5 + $0x1d68] sm:$0xff]   ;;  %v15388_v25 = vld [vmem:[#allocation5 + $0x1d38] sm:$0xff]  }
 0x3f5   :  { %v10810_v11 = vadd.f32 %v13921_v5, %v15825_v23  ;;  %v13924_v18 = vadd.f32 %v13923_v14, %v13922_v10  ;;  %v13945_v15 = vpop.f32.mrb[87].mxu1  ;;  %14245 = vmatprep.subr.bf16.mxu1 %v15351_v26  ;;  %v15379_v10 = vld [vmem:[#allocation5 + $0x1de8] sm:$0xff]   ;;  %v15389_v24 = vld [vmem:[#allocation5 + $0x1db8] sm:$0xff]   ;;  %v144_v26 = vld [vmem:[#allocation2 + $0x1d0] sm:$0xff] }
 0x3f6   :  { %v13946_v20 = vadd.f32 %v13945_v15, %v13944_v12  ;;  %v15380_v12 = vld [vmem:[#allocation5 + $0x1d28] sm:$0xff]   ;;  %v15383_v15 = vld [vmem:[#allocation5 + $0x1df0] sm:$0xff]  }
 0x3f7   :  { %v15831_v16 = vadd.f32 %v13943_v7, %v10810_v11  ;;  %v10813_v22 = vadd.f32 %v13924_v18, %v15828_v33  ;;  %14224 = vmatpush3.bf16.msra.mxu0 %v15352_v27  ;;  %v15357_v33 = vld [vmem:[#allocation5 + $0x1cb8] sm:$0xff]   ;;  %v15381_v14 = vld [vmem:[#allocation5 + $0x1da8] sm:$0xff]   ;;  %v15382_v18 = vld [vmem:[#allocation5 + $0x1d70] sm:$0xff]  }
 0x3f8   :  { %14246 = vmatpush3.bf16.msra.mxu1 %v15353_v28  ;;  %14225 = vmatprep.subr.bf16.mxu0 %v15354_v29  ;;  %v145_v27 = vld [vmem:[#allocation2 + $0x1d8] sm:$0xff] }
 0x3f9   :  { %v15834_v23 = vadd.f32 %v13946_v20, %v10813_v22  ;;  %14247 = vmatprep.subr.bf16.mxu1 %v15355_v30  ;;  %v15385_v20 = vld [vmem:[#allocation5 + $0x1db0] sm:$0xff]   ;;  %v15387_v22 = vld [vmem:[#allocation5 + $0x1df8] sm:$0xff]  }
 0x3fa   :  { %v209_v30 = vld [vmem:[#allocation2 + $0x3d8] sm:$0xff] }
 0x3fb   :  { %14226 = vmatpush3.bf16.msra.mxu0 %v15356_v31  ;;  %v11936_v31 = vcombine.low %v145_v27, %v209_v30 }
 0x3fc   :  { %14248 = vmatpush3.bf16.msra.mxu1 %v15357_v33  ;;  %14255 = vmatprep.subr.bf16.mxu0 %v15358_v40  ;;  %v11937_v33 = vcombine.high %v145_v27, %v209_v30  ;;  %v15398_v40 = vld [vmem:[#allocation5 + $0x1e50] sm:$0xff]   ;;  %v15424_v27 = vld [vmem:[#allocation5 + $0x1f00] sm:$0xff]   ;;  %v15427_v30 = vld [vmem:[#allocation5 + $0x1fc8] sm:$0xff]  }
 0x3fd   :  { %14277 = vmatprep.subr.bf16.mxu1 %v15359_v42  ;;  %v15399_v42 = vld [vmem:[#allocation5 + $0x1ed0] sm:$0xff]  }
 0x3fe   :  { %11382 = vmatmul.mubr.bf16.vlgmr.msra.gmra.mrb[112].mxu0 %v11930_v37  ;;  %v15394_v37 = vld [vmem:[#allocation5 + $0x1e48] sm:$0xff]  }
 0x3ff   :  { %11423 = vmatmul.mubr.bf16.vlgmr.msra.gmra.mrb[112].mxu1 %v11932_v39  ;;  %14256 = vmatpush3.bf16.msra.mxu0 %v15360_v43  ;;  %v15396_v39 = vld [vmem:[#allocation5 + $0x1e08] sm:$0xff]   ;;  %v15400_v43 = vld [vmem:[#allocation5 + $0x1e10] sm:$0xff]  }
 0x400   :  { %14278 = vmatpush3.bf16.msra.mxu1 %v15361_v44  ;;  %14257 = vmatprep.subr.bf16.mxu0 %v15362_v45  ;;  %v15401_v44 = vld [vmem:[#allocation5 + $0x1e90] sm:$0xff]   ;;  %v15402_v45 = vld [vmem:[#allocation5 + $0x1e58] sm:$0xff]  }
 0x401   :  { %14279 = vmatprep.subr.bf16.mxu1 %v15363_v46  ;;  %11504 = vmatprep.mubr.bf16.mxu1 %v11937_v33  ;;  %v15403_v46 = vld [vmem:[#allocation5 + $0x1ed8] sm:$0xff]   ;;  %v15429_v33 = vld [vmem:[#allocation5 + $0x1f88] sm:$0xff]  }
 0x403   :  { %14258 = vmatpush3.bf16.msra.mxu0 %v15364_v49 }
 0x404   :  { %14280 = vmatpush3.bf16.msra.mxu1 %v15365_v48  ;;  %14259 = vmatprep.subr.bf16.mxu0 %v15366_v50  ;;  %v15404_v48 = vld [vmem:[#allocation5 + $0x1e18] sm:$0xff]  }
 0x405   :  { %14281 = vmatprep.subr.bf16.mxu1 %v15367_v47  ;;  %v15405_v47 = vld [vmem:[#allocation5 + $0x1e98] sm:$0xff]  }
 0x407   :  { %14260 = vmatpush3.bf16.msra.mxu0 %v15368_v51 }
 0x408   :  { %14282 = vmatpush3.bf16.msra.mxu1 %v15369_v52  ;;  %14261 = vmatprep.subr.bf16.mxu0 %v15370_v53  ;;  %v15406_v52 = vld [vmem:[#allocation5 + $0x1e60] sm:$0xff]  }
 0x409   :  { %14283 = vmatprep.subr.bf16.mxu1 %v15371_v54 }
 0x40b   :  { %14262 = vmatpush3.bf16.msra.mxu0 %v15372_v56  ;;  %v15407_v56 = vld [vmem:[#allocation5 + $0x1ee0] sm:$0xff]  }
 0x40c   :  { %14284 = vmatpush3.bf16.msra.mxu1 %v15373_v58  ;;  %14263 = vmatprep.subr.bf16.mxu0 %v15374_v59 }
 0x40d   :  { %14285 = vmatprep.subr.bf16.mxu1 %v15375_v61  ;;  %v15409_v61 = vld [vmem:[#allocation5 + $0x1ea0] sm:$0xff]  }
 0x40f   :  { %14264 = vmatpush3.bf16.msra.mxu0 %v15376_v1  ;;  %v15410_v1 = vld [vmem:[#allocation5 + $0x1e68] sm:$0xff]  }
 0x410   :  { %14286 = vmatpush3.bf16.msra.mxu1 %v15377_v3  ;;  %14265 = vmatprep.subr.bf16.mxu0 %v15378_v6  ;;  %v15411_v3 = vld [vmem:[#allocation5 + $0x1ee8] sm:$0xff]  }
 0x411   :  { %v13963_v57 = vpop.f32.mrb[88].mxu0  ;;  %14287 = vmatprep.subr.bf16.mxu1 %v15379_v10  ;;  %v15414_v10 = vld [vmem:[#allocation5 + $0x1e70] sm:$0xff]  }
 0x412   :  { %v13985_v55 = vpop.f32.mrb[88].mxu1  ;;  %v13964_v60 = vpop.f32.mrb[89].mxu0 }
 0x413   :  { %v13965_v62 = vadd.f32 %v13964_v60, %v13963_v57  ;;  %v13986_v0 = vpop.f32.mrb[89].mxu1  ;;  %v13966_v2 = vpop.f32.mrb[90].mxu0  ;;  %14266 = vmatpush3.bf16.msra.mxu0 %v15380_v12  ;;  %v15417_v12 = vld [vmem:[#allocation5 + $0x1eb0] sm:$0xff]  }
 0x414   :  { %v13987_v63 = vadd.f32 %v13986_v0, %v13985_v55  ;;  %v13988_v5 = vpop.f32.mrb[90].mxu1  ;;  %v13967_v9 = vpop.f32.mrb[91].mxu0  ;;  %14288 = vmatpush3.bf16.msra.mxu1 %v15381_v14  ;;  %14267 = vmatprep.subr.bf16.mxu0 %v15382_v18  ;;  %v15408_v55 = vld [vmem:[#allocation5 + $0x1e20] sm:$0xff]   ;;  %v15419_v14 = vld [vmem:[#allocation5 + $0x1ef8] sm:$0xff]  }
 0x415   :  { %v10892_v4 = vadd.f32 %v13965_v62, %v15831_v16  ;;  %v13968_v8 = vadd.f32 %v13967_v9, %v13966_v2  ;;  %v13989_v11 = vpop.f32.mrb[91].mxu1  ;;  %14289 = vmatprep.subr.bf16.mxu1 %v15383_v15  ;;  %v15413_v9 = vld [vmem:[#allocation5 + $0x1ea8] sm:$0xff]   ;;  %v15421_v18 = vld [vmem:[#allocation5 + $0x1eb8] sm:$0xff]   ;;  %v210_v15 = vld [vmem:[#allocation2 + $0x3e0] sm:$0xff] }
 0x416   :  { %v13990_v13 = vadd.f32 %v13989_v11, %v13988_v5  ;;  %v15412_v5 = vld [vmem:[#allocation5 + $0x1e28] sm:$0xff]   ;;  %v15416_v11 = vld [vmem:[#allocation5 + $0x1e30] sm:$0xff]  }
 0x417   :  { %v15837_v7 = vadd.f32 %v13987_v63, %v10892_v4  ;;  %v10895_v17 = vadd.f32 %v13968_v8, %v15834_v23  ;;  %14268 = vmatpush3.bf16.msra.mxu0 %v15384_v19  ;;  %v208_v23 = vld [vmem:[#allocation2 + $0x3d0] sm:$0xff] }
 0x418   :  { %14290 = vmatpush3.bf16.msra.mxu1 %v15385_v20  ;;  %14269 = vmatprep.subr.bf16.mxu0 %v15386_v21  ;;  %v11934_v28 = vcombine.low %v144_v26, %v208_v23  ;;  %v11935_v29 = vcombine.high %v144_v26, %v208_v23  ;;  %v15415_v8 = vld [vmem:[#allocation5 + $0x1ef0] sm:$0xff]   ;;  %v147_v21 = vld [vmem:[#allocation2 + $0x1e8] sm:$0xff]  ;;  %v15422_v26 = vld [vmem:[#allocation5 + $0x1f40] sm:$0xff]  }
 0x419   :  { %v15840_v16 = vadd.f32 %v13990_v13, %v10895_v17  ;;  %14291 = vmatprep.subr.bf16.mxu1 %v15387_v22  ;;  %v15418_v13 = vld [vmem:[#allocation5 + $0x1e78] sm:$0xff]   ;;  %v211_v22 = vld [vmem:[#allocation2 + $0x3e8] sm:$0xff]  ;;  %v15423_v23 = vld [vmem:[#allocation5 + $0x1fc0] sm:$0xff]  }
 0x41a   :  { %11463 = vmatprep.mubr.bf16.mxu0 %v11935_v29  ;;  %v15420_v17 = vld [vmem:[#allocation5 + $0x1e38] sm:$0xff]   ;;  %v15426_v29 = vld [vmem:[#allocation5 + $0x1f48] sm:$0xff]  }
 0x41b   :  { %14270 = vmatpush3.bf16.msra.mxu0 %v15388_v25  ;;  %v11940_v25 = vcombine.low %v147_v21, %v211_v22 }
 0x41c   :  { %14292 = vmatpush3.bf16.msra.mxu1 %v15389_v24  ;;  %14299 = vmatprep.subr.bf16.mxu0 %v15390_v34  ;;  %v11941_v24 = vcombine.high %v147_v21, %v211_v22  ;;  %v15430_v34 = vld [vmem:[#allocation5 + $0x1f50] sm:$0xff]  }
 0x41d   :  { %14321 = vmatprep.subr.bf16.mxu1 %v15391_v32  ;;  %v15431_v32 = vld [vmem:[#allocation5 + $0x1fd0] sm:$0xff]  }
 0x41e   :  { %11464 = vmatmul.mubr.bf16.vlgmr.msra.gmra.mrb[116].mxu0 %v11934_v28  ;;  %v15425_v28 = vld [vmem:[#allocation5 + $0x1f80] sm:$0xff]  }
 0x41f   :  { %11505 = vmatmul.mubr.bf16.vlgmr.msra.gmra.mrb[116].mxu1 %v11936_v31  ;;  %14300 = vmatpush3.bf16.msra.mxu0 %v15392_v35  ;;  %v15428_v31 = vld [vmem:[#allocation5 + $0x1f08] sm:$0xff]   ;;  %v15432_v35 = vld [vmem:[#allocation5 + $0x1f10] sm:$0xff]  }
 0x420   :  { %14322 = vmatpush3.bf16.msra.mxu1 %v15393_v36  ;;  %14301 = vmatprep.subr.bf16.mxu0 %v15394_v37  ;;  %v15433_v36 = vld [vmem:[#allocation5 + $0x1f90] sm:$0xff]   ;;  %v15434_v37 = vld [vmem:[#allocation5 + $0x1f58] sm:$0xff]  }
 0x421   :  { %14323 = vmatprep.subr.bf16.mxu1 %v15395_v38  ;;  %11586 = vmatprep.mubr.bf16.mxu1 %v11941_v24  ;;  %v15435_v38 = vld [vmem:[#allocation5 + $0x1fd8] sm:$0xff]  }
 0x423   :  { %14302 = vmatpush3.bf16.msra.mxu0 %v15396_v39 }
 0x424   :  { %14324 = vmatpush3.bf16.msra.mxu1 %v15397_v41  ;;  %14303 = vmatprep.subr.bf16.mxu0 %v15398_v40  ;;  %v15436_v41 = vld [vmem:[#allocation5 + $0x1f18] sm:$0xff]  }
 0x425   :  { %14325 = vmatprep.subr.bf16.mxu1 %v15399_v42  ;;  %v15437_v42 = vld [vmem:[#allocation5 + $0x1f98] sm:$0xff]  }
 0x427   :  { %14304 = vmatpush3.bf16.msra.mxu0 %v15400_v43 }
 0x428   :  { %14326 = vmatpush3.bf16.msra.mxu1 %v15401_v44  ;;  %14305 = vmatprep.subr.bf16.mxu0 %v15402_v45  ;;  %v15438_v44 = vld [vmem:[#allocation5 + $0x1f60] sm:$0xff]  }
 0x429   :  { %14327 = vmatprep.subr.bf16.mxu1 %v15403_v46 }
 0x42b   :  { %14306 = vmatpush3.bf16.msra.mxu0 %v15404_v48 }
 0x42c   :  { %14328 = vmatpush3.bf16.msra.mxu1 %v15405_v47  ;;  %14307 = vmatprep.subr.bf16.mxu0 %v15406_v52  ;;  %v15440_v47 = vld [vmem:[#allocation5 + $0x1f20] sm:$0xff]  }
 0x42d   :  { %14329 = vmatprep.subr.bf16.mxu1 %v15407_v56 }
 0x42f   :  { %14308 = vmatpush3.bf16.msra.mxu0 %v15408_v55 }
 0x430   :  { %14330 = vmatpush3.bf16.msra.mxu1 %v15409_v61  ;;  %14309 = vmatprep.subr.bf16.mxu0 %v15410_v1  ;;  %v15444_v61 = vld [vmem:[#allocation5 + $0x1f28] sm:$0xff]  }
 0x431   :  { %v14007_v49 = vpop.f32.mrb[92].mxu0  ;;  %14331 = vmatprep.subr.bf16.mxu1 %v15411_v3  ;;  %v15445_v1 = vld [vmem:[#allocation5 + $0x1fa8] sm:$0xff]   ;;  %v15448_v3 = vld [vmem:[#allocation5 + $0x1f30] sm:$0xff]  }
 0x432   :  { %v14029_v50 = vpop.f32.mrb[92].mxu1  ;;  %v14008_v51 = vpop.f32.mrb[93].mxu0 }
 0x433   :  { %v14009_v53 = vadd.f32 %v14008_v51, %v14007_v49  ;;  %v14030_v54 = vpop.f32.mrb[93].mxu1  ;;  %v14010_v58 = vpop.f32.mrb[94].mxu0  ;;  %14310 = vmatpush3.bf16.msra.mxu0 %v15412_v5  ;;  %v15439_v49 = vld [vmem:[#allocation5 + $0x1fe0] sm:$0xff]   ;;  %v15450_v5 = vld [vmem:[#allocation5 + $0x1f78] sm:$0xff]  }
 0x434   :  { %v14031_v57 = vadd.f32 %v14030_v54, %v14029_v50  ;;  %v14032_v60 = vpop.f32.mrb[94].mxu1  ;;  %v14011_v62 = vpop.f32.mrb[95].mxu0  ;;  %14332 = vmatpush3.bf16.msra.mxu1 %v15413_v9  ;;  %14311 = vmatprep.subr.bf16.mxu0 %v15414_v10  ;;  %v15452_v9 = vld [vmem:[#allocation5 + $0x1f38] sm:$0xff]  }
 0x435   :  { %v10974_v59 = vadd.f32 %v14009_v53, %v15837_v7  ;;  %v14012_v63 = vadd.f32 %v14011_v62, %v14010_v58  ;;  %v14033_v2 = vpop.f32.mrb[95].mxu1  ;;  %14333 = vmatprep.subr.bf16.mxu1 %v15415_v8  ;;  %v15441_v53 = vld [vmem:[#allocation5 + $0x1fa0] sm:$0xff]   ;;  %v15453_v10 = vld [vmem:[#allocation5 + $0x1fb8] sm:$0xff]   ;;  %v212_v8 = vld [vmem:[#allocation2 + $0x3f0] sm:$0xff] }
 0x436   :  { %v14034_v4 = vadd.f32 %v14033_v2, %v14032_v60  ;;  %v15447_v2 = vld [vmem:[#allocation5 + $0x1ff0] sm:$0xff]  }
 0x437   :  { %v15843_v0 = vadd.f32 %v14031_v57, %v10974_v59  ;;  %v10977_v6 = vadd.f32 %v14012_v63, %v15840_v16  ;;  %14312 = vmatpush3.bf16.msra.mxu0 %v15416_v11  ;;  %v146_v16 = vld [vmem:[#allocation2 + $0x1e0] sm:$0xff]  ;;  %v15442_v57 = vld [vmem:[#allocation5 + $0x1f68] sm:$0xff]   ;;  %v15446_v63 = vld [vmem:[#allocation5 + $0x1f70] sm:$0xff]  }
 0x438   :  { %14334 = vmatpush3.bf16.msra.mxu1 %v15417_v12  ;;  %14313 = vmatprep.subr.bf16.mxu0 %v15418_v13  ;;  %v11938_v19 = vcombine.low %v146_v16, %v210_v15  ;;  %v11939_v20 = vcombine.high %v146_v16, %v210_v15  ;;  %v15443_v59 = vld [vmem:[#allocation5 + $0x1fe8] sm:$0xff]   ;;  %v149_v11 = vld [vmem:[#allocation2 + $0x1f8] sm:$0xff] }
 0x439   :  { %v15846_v7 = vadd.f32 %v14034_v4, %v10977_v6  ;;  %14335 = vmatprep.subr.bf16.mxu1 %v15419_v14  ;;  %v15449_v4 = vld [vmem:[#allocation5 + $0x1fb0] sm:$0xff]   ;;  %v15451_v6 = vld [vmem:[#allocation5 + $0x1ff8] sm:$0xff]  }
 0x43a   :  { %11545 = vmatprep.mubr.bf16.mxu0 %v11939_v20  ;;  %v213_v12 = vld [vmem:[#allocation2 + $0x3f8] sm:$0xff] }
 0x43b   :  { %14314 = vmatpush3.bf16.msra.mxu0 %v15420_v17  ;;  %v11944_v17 = vcombine.low %v149_v11, %v213_v12 }
 0x43c   :  { %14336 = vmatpush3.bf16.msra.mxu1 %v15421_v18  ;;  %14343 = vmatprep.subr.bf16.mxu0 %v15422_v26  ;;  %v11945_v18 = vcombine.high %v149_v11, %v213_v12 }
 0x43d   :  { %14365 = vmatprep.subr.bf16.mxu1 %v15423_v23 }
 0x43e   :  { %11546 = vmatmul.mubr.bf16.vlgmr.msra.gmra.mrb[120].mxu0 %v11938_v19 }
 0x43f   :  { %11587 = vmatmul.mubr.bf16.vlgmr.msra.gmra.mrb[120].mxu1 %v11940_v25  ;;  %14344 = vmatpush3.bf16.msra.mxu0 %v15424_v27 }
 0x440   :  { %14366 = vmatpush3.bf16.msra.mxu1 %v15425_v28  ;;  %14345 = vmatprep.subr.bf16.mxu0 %v15426_v29 }
 0x441   :  { %14367 = vmatprep.subr.bf16.mxu1 %v15427_v30  ;;  %11668 = vmatprep.mubr.bf16.mxu1 %v11945_v18 }
 0x443   :  { %14346 = vmatpush3.bf16.msra.mxu0 %v15428_v31 }
 0x444   :  { %14368 = vmatpush3.bf16.msra.mxu1 %v15429_v33  ;;  %14347 = vmatprep.subr.bf16.mxu0 %v15430_v34 }
 0x445   :  { %14369 = vmatprep.subr.bf16.mxu1 %v15431_v32 }
 0x447   :  { %14348 = vmatpush3.bf16.msra.mxu0 %v15432_v35 }
 0x448   :  { %14370 = vmatpush3.bf16.msra.mxu1 %v15433_v36  ;;  %14349 = vmatprep.subr.bf16.mxu0 %v15434_v37 }
 0x449   :  { %14371 = vmatprep.subr.bf16.mxu1 %v15435_v38 }
 0x44b   :  { %14350 = vmatpush3.bf16.msra.mxu0 %v15436_v41 }
 0x44c   :  { %14372 = vmatpush3.bf16.msra.mxu1 %v15437_v42  ;;  %14351 = vmatprep.subr.bf16.mxu0 %v15438_v44 }
 0x44d   :  { %14373 = vmatprep.subr.bf16.mxu1 %v15439_v49 }
 0x44f   :  { %14352 = vmatpush3.bf16.msra.mxu0 %v15440_v47  ;;  %v15611_v47 = vmov 0.0  }
 0x450   :  { %14374 = vmatpush3.bf16.msra.mxu1 %v15441_v53  ;;  %14353 = vmatprep.subr.bf16.mxu0 %v15442_v57  ;;  %v15457_v53 = vld [vmem:[#allocation8 + $0x18] sm:$0xff]  }
 0x451   :  { %v14051_v39 = vpop.f32.mrb[96].mxu0  ;;  %14375 = vmatprep.subr.bf16.mxu1 %v15443_v59 }
 0x452   :  { %v14073_v40 = vpop.f32.mrb[96].mxu1  ;;  %v14052_v43 = vpop.f32.mrb[97].mxu0 }
 0x453   :  { %v14053_v45 = vadd.f32 %v14052_v43, %v14051_v39  ;;  %v14074_v46 = vpop.f32.mrb[97].mxu1  ;;  %v14054_v50 = vpop.f32.mrb[98].mxu0  ;;  %14354 = vmatpush3.bf16.msra.mxu0 %v15444_v61 }
 0x454   :  { %v14075_v48 = vadd.f32 %v14074_v46, %v14073_v40  ;;  %v14076_v52 = vpop.f32.mrb[98].mxu1  ;;  %v14055_v54 = vpop.f32.mrb[99].mxu0  ;;  %14376 = vmatpush3.bf16.msra.mxu1 %v15445_v1  ;;  %14355 = vmatprep.subr.bf16.mxu0 %v15446_v63 }
 0x455   :  { %v11056_v51 = vadd.f32 %v14053_v45, %v15843_v0  ;;  %v14056_v58 = vadd.f32 %v14055_v54, %v14054_v50  ;;  %v14077_v55 = vpop.f32.mrb[99].mxu1  ;;  %14377 = vmatprep.subr.bf16.mxu1 %v15447_v2  ;;  %v15454_v50 = vld [vmem:[#allocation8] sm:$0xff]  }
 0x456   :  { %v14078_v60 = vadd.f32 %v14077_v55, %v14076_v52  ;;  %v15456_v52 = vld [vmem:[#allocation8 + $0x10] sm:$0xff]   ;;  %v15458_v2 = vld [vmem:[#allocation8 + $0x20] sm:$0xff]  }
 0x457   :  { %v11097_v56 = vadd.f32 %v14075_v48, %v11056_v51  ;;  %v11059_v62 = vadd.f32 %v14056_v58, %v15846_v7  ;;  %14356 = vmatpush3.bf16.msra.mxu0 %v15448_v3  ;;  %v148_v7 = vld [vmem:[#allocation2 + $0x1f0] sm:$0xff] }
 0x458   :  { %14378 = vmatpush3.bf16.msra.mxu1 %v15449_v4  ;;  %14357 = vmatprep.subr.bf16.mxu0 %v15450_v5  ;;  %v11942_v13 = vcombine.low %v148_v7, %v212_v8  ;;  %v11943_v14 = vcombine.high %v148_v7, %v212_v8  ;;  %v15455_v51 = vld [vmem:[#allocation8 + $0x8] sm:$0xff]   ;;  %v15461_v7 = vld [vmem:[#allocation8 + $0x38] sm:$0xff]  }
 0x459   :  { %v11100_v0 = vadd.f32 %v14078_v60, %v11059_v62  ;;  %14379 = vmatprep.subr.bf16.mxu1 %v15451_v6 }
 0x45a   :  { %11627 = vmatprep.mubr.bf16.mxu0 %v11943_v14 }
 0x45b   :  { %14358 = vmatpush3.bf16.msra.mxu0 %v15452_v9  ;;  %v15459_v9 = vld [vmem:[#allocation8 + $0x28] sm:$0xff]  }
 0x45c   :  { %14380 = vmatpush3.bf16.msra.mxu1 %v15453_v10  ;;  %14396 = vmatprep.subr.bf16.mxu0 %v15611_v47  ;;  %v15460_v10 = vld [vmem:[#allocation8 + $0x30] sm:$0xff]  }
 0x45e   :  { %11628 = vmatmul.mubr.bf16.vlgmr.msra.gmra.mrb[124].mxu0 %v11942_v13 }
 0x45f   :  { %11669 = vmatmul.mubr.bf16.vlgmr.msra.gmra.mrb[124].mxu1 %v11944_v17  ;;  %14397 = vmatpush3.bf16.msra.mxu0 %v15454_v50 }
 0x460   :  { %14398 = vmatprep.subr.bf16.mxu0 %v15611_v47  ;;  %14412 = vmatprep.mubr.msk.bf16.mxu0 %vm15612_vm0, %v15611_v47 }
 0x463   :  { %14399 = vmatpush3.bf16.msra.mxu0 %v15455_v51 }
 0x464   :  { %14400 = vmatprep.subr.bf16.mxu0 %v15611_v47 }
 0x467   :  { %14401 = vmatpush3.bf16.msra.mxu0 %v15456_v52 }
 0x468   :  { %14402 = vmatprep.subr.bf16.mxu0 %v15611_v47 }
 0x46b   :  { %14403 = vmatpush3.bf16.msra.mxu0 %v15457_v53 }
 0x46c   :  { %14404 = vmatprep.subr.bf16.mxu0 %v15611_v47 }
 0x46f   :  { %14405 = vmatpush3.bf16.msra.mxu0 %v15458_v2 }
 0x470   :  { %14406 = vmatprep.subr.bf16.mxu0 %v15611_v47 }
 0x471   :  { %v14095_v16 = vpop.f32.mrb[100].mxu0 }
 0x472   :  { %v14117_v15 = vpop.f32.mrb[100].mxu1  ;;  %v14096_v19 = vpop.f32.mrb[101].mxu0 }
 0x473   :  { %v14118_v20 = vpop.f32.mrb[101].mxu1  ;;  %v14097_v21 = vadd.f32 %v14096_v19, %v14095_v16  ;;  %v14098_v25 = vpop.f32.mrb[102].mxu0  ;;  %14407 = vmatpush3.bf16.msra.mxu0 %v15459_v9 }
 0x474   :  { %v14119_v22 = vadd.f32 %v14118_v20, %v14117_v15  ;;  %v14120_v24 = vpop.f32.mrb[102].mxu1  ;;  %v14099_v26 = vpop.f32.mrb[103].mxu0  ;;  %14408 = vmatprep.subr.bf16.mxu0 %v15611_v47 }
 0x475   :  { %v14121_v23 = vpop.f32.mrb[103].mxu1  ;;  %v11138_v27 = vadd.f32 %v14097_v21, %v11097_v56  ;;  %v14100_v28 = vadd.f32 %v14099_v26, %v14098_v25 }
 0x476   :  { %v14122_v29 = vadd.f32 %v14121_v23, %v14120_v24 }
 0x477   :  { %v11179_v30 = vadd.f32 %v14119_v22, %v11138_v27  ;;  %v11141_v31 = vadd.f32 %v14100_v28, %v11100_v0  ;;  %14409 = vmatpush3.bf16.msra.mxu0 %v15460_v10 }
 0x478   :  { %14410 = vmatprep.subr.bf16.mxu0 %v15611_v47 }
 0x479   :  { %v11182_v33 = vadd.f32 %v14122_v29, %v11141_v31 }
 0x47b   :  { %14411 = vmatpush3.bf16.msra.mxu0 %v15461_v7 }
 0x491   :  { %v14139_v34 = vpop.f32.mrb[104].mxu0 }
 0x492   :  { %v14161_v32 = vpop.f32.mrb[104].mxu1  ;;  %v14140_v35 = vpop.f32.mrb[105].mxu0 }
 0x493   :  { %v14141_v36 = vadd.f32 %v14140_v35, %v14139_v34  ;;  %v14162_v37 = vpop.f32.mrb[105].mxu1  ;;  %v14142_v38 = vpop.f32.mrb[106].mxu0 }
 0x494   :  { %v14163_v39 = vadd.f32 %v14162_v37, %v14161_v32  ;;  %v14164_v41 = vpop.f32.mrb[106].mxu1  ;;  %v14143_v40 = vpop.f32.mrb[107].mxu0 }
 0x495   :  { %v11220_v42 = vadd.f32 %v14141_v36, %v11179_v30  ;;  %v14144_v43 = vadd.f32 %v14143_v40, %v14142_v38  ;;  %v14165_v44 = vpop.f32.mrb[107].mxu1 }
 0x496   :  { %v14166_v45 = vadd.f32 %v14165_v44, %v14164_v41 }
 0x497   :  { %v11261_v46 = vadd.f32 %v14163_v39, %v11220_v42  ;;  %v11223_v49 = vadd.f32 %v14144_v43, %v11182_v33 }
 0x499   :  { %v11264_v48 = vadd.f32 %v14166_v45, %v11223_v49 }
 0x4b1   :  { %v14183_v54 = vpop.f32.mrb[108].mxu0 }
 0x4b2   :  { %v14205_v56 = vpop.f32.mrb[108].mxu1  ;;  %v14184_v57 = vpop.f32.mrb[109].mxu0 }
 0x4b3   :  { %v14185_v58 = vadd.f32 %v14184_v57, %v14183_v54  ;;  %v14206_v55 = vpop.f32.mrb[109].mxu1  ;;  %v14186_v59 = vpop.f32.mrb[110].mxu0 }
 0x4b4   :  { %v14207_v60 = vadd.f32 %v14206_v55, %v14205_v56  ;;  %v14208_v61 = vpop.f32.mrb[110].mxu1  ;;  %v14187_v62 = vpop.f32.mrb[111].mxu0 }
 0x4b5   :  { %v11302_v1 = vadd.f32 %v14185_v58, %v11261_v46  ;;  %v14188_v0 = vadd.f32 %v14187_v62, %v14186_v59  ;;  %v14209_v63 = vpop.f32.mrb[111].mxu1 }
 0x4b6   :  { %v14210_v3 = vadd.f32 %v14209_v63, %v14208_v61 }
 0x4b7   :  { %v11343_v4 = vadd.f32 %v14207_v60, %v11302_v1  ;;  %v11305_v5 = vadd.f32 %v14188_v0, %v11264_v48 }
 0x4b9   :  { %v11346_v6 = vadd.f32 %v14210_v3, %v11305_v5 }
 0x4d1   :  { %v14227_v8 = vpop.f32.mrb[112].mxu0 }
 0x4d2   :  { %v14249_v11 = vpop.f32.mrb[112].mxu1  ;;  %v14228_v12 = vpop.f32.mrb[113].mxu0 }
 0x4d3   :  { %v14250_v13 = vpop.f32.mrb[113].mxu1  ;;  %v14229_v14 = vadd.f32 %v14228_v12, %v14227_v8  ;;  %v14230_v18 = vpop.f32.mrb[114].mxu0 }
 0x4d4   :  { %v14251_v17 = vadd.f32 %v14250_v13, %v14249_v11  ;;  %v14252_v16 = vpop.f32.mrb[114].mxu1  ;;  %v14231_v15 = vpop.f32.mrb[115].mxu0 }
 0x4d5   :  { %v14253_v19 = vpop.f32.mrb[115].mxu1  ;;  %v11384_v20 = vadd.f32 %v14229_v14, %v11343_v4  ;;  %v14232_v21 = vadd.f32 %v14231_v15, %v14230_v18 }
 0x4d6   :  { %v14254_v22 = vadd.f32 %v14253_v19, %v14252_v16 }
 0x4d7   :  { %v11425_v25 = vadd.f32 %v14251_v17, %v11384_v20  ;;  %v11387_v24 = vadd.f32 %v14232_v21, %v11346_v6  ;;  %v12970_v17 = vld [vmem:[#allocation10] ss:$0 sm:$0xff] }
 0x4d9   :  { %v11428_v26 = vadd.f32 %v14254_v22, %v11387_v24 }
 0x4f1   :  { %v14271_v23 = vpop.f32.mrb[116].mxu0 }
 0x4f2   :  { %v14293_v27 = vpop.f32.mrb[116].mxu1  ;;  %v14272_v28 = vpop.f32.mrb[117].mxu0 }
 0x4f3   :  { %v14273_v29 = vadd.f32 %v14272_v28, %v14271_v23  ;;  %v14294_v30 = vpop.f32.mrb[117].mxu1  ;;  %v14274_v31 = vpop.f32.mrb[118].mxu0 }
 0x4f4   :  { %v14295_v33 = vadd.f32 %v14294_v30, %v14293_v27  ;;  %v14296_v34 = vpop.f32.mrb[118].mxu1  ;;  %v14275_v32 = vpop.f32.mrb[119].mxu0 }
 0x4f5   :  { %v11466_v35 = vadd.f32 %v14273_v29, %v11425_v25  ;;  %v14276_v36 = vadd.f32 %v14275_v32, %v14274_v31  ;;  %v14297_v37 = vpop.f32.mrb[119].mxu1 }
 0x4f6   :  { %v14298_v38 = vadd.f32 %v14297_v37, %v14296_v34 }
 0x4f7   :  { %v11507_v39 = vadd.f32 %v14295_v33, %v11466_v35  ;;  %v11469_v41 = vadd.f32 %v14276_v36, %v11428_v26 }
 0x4f9   :  { %v11510_v40 = vadd.f32 %v14298_v38, %v11469_v41 }
 0x511   :  { %v14315_v42 = vpop.f32.mrb[120].mxu0 }
 0x512   :  { %v14337_v43 = vpop.f32.mrb[120].mxu1  ;;  %v14316_v44 = vpop.f32.mrb[121].mxu0 }
 0x513   :  { %v14317_v45 = vadd.f32 %v14316_v44, %v14315_v42  ;;  %v14338_v46 = vpop.f32.mrb[121].mxu1  ;;  %v14318_v49 = vpop.f32.mrb[122].mxu0 }
 0x514   :  { %v14339_v48 = vadd.f32 %v14338_v46, %v14337_v43  ;;  %v14340_v50 = vpop.f32.mrb[122].mxu1  ;;  %v14319_v47 = vpop.f32.mrb[123].mxu0 }
 0x515   :  { %v11548_v51 = vadd.f32 %v14317_v45, %v11507_v39  ;;  %v14320_v52 = vadd.f32 %v14319_v47, %v14318_v49  ;;  %v14341_v53 = vpop.f32.mrb[123].mxu1 }
 0x516   :  { %v14342_v54 = vadd.f32 %v14341_v53, %v14340_v50 }
 0x517   :  { %v11589_v56 = vadd.f32 %v14339_v48, %v11548_v51  ;;  %v11551_v57 = vadd.f32 %v14320_v52, %v11510_v40 }
 0x519   :  { %v11592_v58 = vadd.f32 %v14342_v54, %v11551_v57 }
 0x531   :  { %v14359_v55 = vpop.f32.mrb[124].mxu0 }
 0x532   :  { %v14381_v59 = vpop.f32.mrb[124].mxu1  ;;  %v14360_v60 = vpop.f32.mrb[125].mxu0 }
 0x533   :  { %v14382_v61 = vpop.f32.mrb[125].mxu1  ;;  %v14361_v62 = vadd.f32 %v14360_v60, %v14359_v55  ;;  %v14362_v0 = vpop.f32.mrb[126].mxu0 }
 0x534   :  { %v14383_v1 = vadd.f32 %v14382_v61, %v14381_v59  ;;  %v14384_v63 = vpop.f32.mrb[126].mxu1  ;;  %v14363_v2 = vpop.f32.mrb[127].mxu0 }
 0x535   :  { %v14385_v3 = vpop.f32.mrb[127].mxu1  ;;  %v11630_v4 = vadd.f32 %v14361_v62, %v11589_v56  ;;  %v14364_v5 = vadd.f32 %v14363_v2, %v14362_v0 }
 0x536   :  { %v14386_v6 = vadd.f32 %v14385_v3, %v14384_v63 }
 0x537   :  { %v11671_v9 = vadd.f32 %v14383_v1, %v11630_v4  ;;  %v11633_v10 = vadd.f32 %v14364_v5, %v11592_v58 }
 0x539   :  { %v11679_v7 = vmul.f32 0.01, %v11671_v9  ;;  %v11674_v8 = vadd.f32 %v14386_v6, %v11633_v10  ;;  %vm11677_vm1 = vcmp.ge.f32.partialorder %v11671_v9, 0.0 }
 0x53b   :  { %vm11678_vm2 = vcmp.ge.f32.partialorder %v11674_v8, 0.0  ;;  %v11680_v11 = vmul.f32 0.01, %v11674_v8  ;;  %v11681_v12 = vsel %vm11677_vm1, %v11671_v9, %v11679_v7 }
 0x53d   :  { %v11682_v13 = vsel %vm11678_vm2, %v11674_v8, %v11680_v11 }
 0x53e   :  { %v11683_v14 = vpack.c.bf16 %v11682_v13, %v11681_v12 }
 0x540   :  { %14413 = vmatmul.mubr.bf16.vlgmr.msra.gmra.mrb[128].mxu0 %v11683_v14 }
 0x613   :  { %v11789_v18 = vpop.f32.mrb[128].mxu0 }
 0x614   :  { %v11790_v16 = vadd.f32 %v12970_v17, %v11789_v18  ;;  %v14414_v15 = vpop.f32.mrb[129].mxu0 }
 0x615   :  { %v11792_v19 = vpop.f32.mrb[130].mxu0 }
 0x616   :  { %11796 = vst [vmem:[#allocation11] sm:$0xff] %v11790_v16  ;;  %v11793_v20 = vadd.f32 %v12970_v17, %v11792_v19  ;;  %v14415_v21 = vpop.f32.mrb[131].mxu0 }
 0x618   :  { %11797 = vst [vmem:[#allocation11 + $0x8] sm:$0xff] %v11793_v20 }
 0x619   :  { %15583 = shalt.err (!%p15580_p2)
}
 0x61a   :  { %s15584_s7 = scalar_lea.hbm %s15867_s5, 256 }
 0x61b   :  { %p15585_p3 = scmp.ne.s32.totalorder %s15867_s5, %s15584_s7  ;;  %p15588_p4 = scmp.lt.u32.totalorder %s15584_s7, %s15867_s5 }
 0x61d   :  { %p15590_p5 = pnand %p15588_p4, %p15585_p3 }
 0x61f   :  { %15593 = shalt.err (!%p15590_p5)
}
 0x620   :  { %s15614_s13 = smov 128   ;;  %s15615_s14 = smov 8  }
 0x621   :  { %11809 = dma.vmem_to_hbm [thread:$0]  %s11804_s28, 256, %s15867_s5, [#allocation4], %s15614_s13, %s15614_s13, %s15615_s14  }
 0x622   :  { %15600 = dma.done.wait [#allocation4], 256  }
 0x623   :  { %15601 = vsyncadd [#allocation4], 4294967040 }
 0x624   :  { %11813 = vsyncpa [#allocation3], 1 }
 0x625   :  { %11814 = vsyncpa [#allocation6], 1 }
 0x626   :  { %11815 = vsyncpa [#allocation9], 1 }
 0x627   :  { %11816 = vsyncpa [#allocation4], 1 }

</bundles_post_ra>
